<compile_context>
chip_gen: v7x
topology: tpu7x:2x2x1
jax: 0.10.0
libtpu: 0.0.40
codegen_flags: <defaults>
</compile_context>

<pallas_src>
import functools

import jax
import jax.numpy as jnp
from jax import lax
from jax.experimental import pallas as pl
from jax.experimental.pallas import tpu as pltpu

K = 7          # conv kernel size
PAD = K // 2   # "same" padding


def _spatial4_kernel(w_ref, b_ref, x1_ref, x2_ref, o_ref, pad_ref, *, H, W):
    # w_ref  : SMEM (2*7*7,) flattened conv weight, order [c, kh, kw]
    # b_ref  : SMEM (1,) conv bias
    # x1_ref, x2_ref : VMEM (Bblk, C, H, W) blocks (whole batch block)
    # o_ref  : VMEM (Bblk, 1, H, W) output block
    # pad_ref: VMEM scratch (2, Bblk, H + 2*PAD, W + 2*PAD)
    x1 = x1_ref[...].astype(jnp.float32)   # (Bblk, C, H, W)
    x2 = x2_ref[...].astype(jnp.float32)

    # Channel-wise reductions (dim=1 in NCHW), vectorized over the batch block.
    feat_avg = jnp.mean(x1, axis=1) + jnp.mean(x2, axis=1)   # (Bblk, H, W)
    feat_max = jnp.max(x1, axis=1) + jnp.max(x2, axis=1)     # (Bblk, H, W)

    # Zero-padded 2-channel feature map in a tiny (~8 KiB) VMEM scratch.
    # The memset is unconditional: it is negligible, and gating it on
    # program_id == 0 would be incorrect under core-parallel sharding of the
    # batch axis (a core may never execute grid index 0).
    pad_ref[...] = jnp.zeros_like(pad_ref)
    pad_ref[0, :, PAD:PAD + H, PAD:PAD + W] = feat_avg
    pad_ref[1, :, PAD:PAD + H, PAD:PAD + W] = feat_max

    # 7x7 "same" convolution, 2 in-channels -> 1 out-channel, fully unrolled.
    # One row-band VMEM load per (c, kh); kw shifts are register slices.
    # Two partial accumulators per input channel (4 total) restore ILP on the
    # 4-wide VALU instead of a single 98-deep dependency chain.
    def channel_taps(c):
        acc_even = jnp.zeros(feat_avg.shape, jnp.float32)
        acc_odd = jnp.zeros(feat_avg.shape, jnp.float32)
        for kh in range(K):
            band = pad_ref[c, :, kh:kh + H, :]        # (Bblk, H, W + 2*PAD)
            for kw in range(K):
                w = w_ref[c * K * K + kh * K + kw]    # scalar from SMEM
                tap = w * band[:, :, kw:kw + W]       # register lane slice
                if kw % 2 == 0:
                    acc_even = acc_even + tap
                else:
                    acc_odd = acc_odd + tap
        return acc_even + acc_odd

    acc = channel_taps(0) + channel_taps(1) + b_ref[0]

    # Sigmoid: exp goes to the EUP; keep the reciprocal exact so results stay
    # within tight tolerance of the reference (approx=True would not).
    o_ref[:, 0] = pl.reciprocal(1.0 + jnp.exp(-acc))


def spatial_4_forward(x1, x2, x3, x4, conv_w, conv_b, *, batch_block=None):
    """Pallas implementation of Spatial_4.forward.

    x1..x4 : (B, C, H, W) float32 (x3, x4 are dead inputs, kept for parity).
    conv_w : (1, 2, 7, 7) float32, conv_b : (1,) float32.
    Returns (B, 1, H, W) float32.
    """
    del x3, x4  # dead code in the reference forward
    B, C, H, W = x1.shape
    bblk = B if batch_block is None else batch_block
    assert B % bblk == 0, "batch_block must divide the batch size"

    w_flat = conv_w.reshape(-1).astype(jnp.float32)   # (98,)
    b_flat = conv_b.reshape(-1).astype(jnp.float32)   # (1,)

    kernel = functools.partial(_spatial4_kernel, H=H, W=W)

    return pl.pallas_call(
        kernel,
        out_shape=jax.ShapeDtypeStruct((B, 1, H, W), jnp.float32),
        grid=(B // bblk,),
        in_specs=[
            pl.BlockSpec(memory_space=pltpu.MemorySpace.SMEM),        # weights
            pl.BlockSpec(memory_space=pltpu.MemorySpace.SMEM),        # bias
            pl.BlockSpec((bblk, C, H, W), lambda b: (b, 0, 0, 0)),    # x1
            pl.BlockSpec((bblk, C, H, W), lambda b: (b, 0, 0, 0)),    # x2
        ],
        out_specs=pl.BlockSpec((bblk, 1, H, W), lambda b: (b, 0, 0, 0)),
        scratch_shapes=[
            pltpu.VMEM((2, bblk, H + 2 * PAD, W + 2 * PAD), jnp.float32)],
        compiler_params=pltpu.CompilerParams(
            dimension_semantics=("parallel",)),
    )(w_flat, b_flat, x1, x2)


def _reference(x1, x2, conv_w, conv_b):
    """Pure-JAX reference mirroring the PyTorch forward (effective path)."""
    feat_avg = jnp.mean(x1, axis=1, keepdims=True) + jnp.mean(x2, axis=1, keepdims=True)
    feat_max = jnp.max(x1, axis=1, keepdims=True) + jnp.max(x2, axis=1, keepdims=True)
    result = jnp.concatenate([feat_avg, feat_max], axis=1)       # (B, 2, H, W)
    out = lax.conv_general_dilated(
        result, conv_w, window_strides=(1, 1), padding="SAME",
        dimension_numbers=("NCHW", "OIHW", "NCHW"))
    out = out + conv_b.reshape(1, -1, 1, 1)
    return jax.nn.sigmoid(out)


if __name__ == "__main__":
    key = jax.random.PRNGKey(0)
    k1, k2, k3, k4, kw, kb = jax.random.split(key, 6)

    B, C, H, W = 2, 4, 16, 16
    x1 = jax.random.normal(k1, (B, C, H, W), dtype=jnp.float32)
    x2 = jax.random.normal(k2, (B, C, H, W), dtype=jnp.float32)
    x3 = jax.random.normal(k3, (B, C, H, W), dtype=jnp.float32)
    x4 = jax.random.normal(k4, (B, C, H, W), dtype=jnp.float32)

    # Deterministic parameter init (synthetic; shapes from nn.Conv2d(2, 1, 7)).
    fan_in = 2 * K * K
    bound = 1.0 / (fan_in ** 0.5)
    conv_w = jax.random.uniform(kw, (1, 2, K, K), jnp.float32, -bound, bound)
    conv_b = jax.random.uniform(kb, (1,), jnp.float32, -bound, bound)

    out = spatial_4_forward(x1, x2, x3, x4, conv_w, conv_b)
    out = jax.block_until_ready(out)

    ref = _reference(x1, x2, conv_w, conv_b)
    assert out.shape == (B, 1, H, W), out.shape
    err = float(jnp.max(jnp.abs(out - ref)))
    assert jnp.allclose(out, ref, atol=1e-5, rtol=1e-5), err

    print("KERNEL_OK")
</pallas_src>

<mosaic_0001>
module attributes {stable_mosaic.version = 11 : i64} {
  func.func @_spatial4_kernel(%arg0: i32, %arg1: memref<98xf32, #tpu.memory_space<smem>>, %arg2: memref<1xf32, #tpu.memory_space<smem>>, %arg3: memref<2x4x16x16xf32, #tpu.memory_space<vmem>>, %arg4: memref<2x4x16x16xf32, #tpu.memory_space<vmem>>, %arg5: memref<2x1x16x16xf32, #tpu.memory_space<vmem>>, %arg6: memref<2x2x22x22xf32, #tpu.memory_space<vmem>>) attributes {dimension_semantics = [#tpu.dimension_semantics<parallel>], iteration_bounds = array<i64: 1>, scalar_prefetch = 0 : i64, scratch_operands = 1 : i64, tpu.core_type = #tpu.core_type<tc>, window_params = [{transform_indices = @transform_0, window_bounds = array<i64: 98>}, {transform_indices = @transform_1, window_bounds = array<i64: 1>}, {transform_indices = @transform_2, window_bounds = array<i64: 2, 4, 16, 16>}, {transform_indices = @transform_3, window_bounds = array<i64: 2, 4, 16, 16>}, {transform_indices = @transform_4, window_bounds = array<i64: 2, 1, 16, 16>}]} {
    %c0 = arith.constant 0 : index
    %c0_0 = arith.constant 0 : index
    %c0_1 = arith.constant 0 : index
    %c0_2 = arith.constant 0 : index
    %0 = vector.load %arg3[%c0, %c0_0, %c0_1, %c0_2] : memref<2x4x16x16xf32, #tpu.memory_space<vmem>>, vector<2x4x16x16xf32>
    %c0_3 = arith.constant 0 : index
    %c0_4 = arith.constant 0 : index
    %c0_5 = arith.constant 0 : index
    %c0_6 = arith.constant 0 : index
    %1 = vector.load %arg4[%c0_3, %c0_4, %c0_5, %c0_6] : memref<2x4x16x16xf32, #tpu.memory_space<vmem>>, vector<2x4x16x16xf32>
    %cst = arith.constant dense<0.000000e+00> : vector<2x16x16xf32>
    %2 = vector.multi_reduction <add>, %0, %cst [1] : vector<2x4x16x16xf32> to vector<2x16x16xf32>
    %cst_7 = arith.constant 4.000000e+00 : f32
    %3 = vector.broadcast %cst_7 : f32 to vector<2x16x16xf32>
    %4 = arith.divf %2, %3 : vector<2x16x16xf32>
    %cst_8 = arith.constant dense<0.000000e+00> : vector<2x16x16xf32>
    %5 = vector.multi_reduction <add>, %1, %cst_8 [1] : vector<2x4x16x16xf32> to vector<2x16x16xf32>
    %cst_9 = arith.constant 4.000000e+00 : f32
    %6 = vector.broadcast %cst_9 : f32 to vector<2x16x16xf32>
    %7 = arith.divf %5, %6 : vector<2x16x16xf32>
    %8 = arith.addf %4, %7 : vector<2x16x16xf32>
    %cst_10 = arith.constant dense<0xFF800000> : vector<2x16x16xf32>
    %9 = vector.multi_reduction <maximumf>, %0, %cst_10 [1] : vector<2x4x16x16xf32> to vector<2x16x16xf32>
    %cst_11 = arith.constant dense<0xFF800000> : vector<2x16x16xf32>
    %10 = vector.multi_reduction <maximumf>, %1, %cst_11 [1] : vector<2x4x16x16xf32> to vector<2x16x16xf32>
    %11 = arith.addf %9, %10 : vector<2x16x16xf32>
    %cst_12 = arith.constant 0.000000e+00 : f32
    %12 = vector.broadcast %cst_12 : f32 to vector<2x2x22x22xf32>
    %c0_13 = arith.constant 0 : index
    %c0_14 = arith.constant 0 : index
    %c0_15 = arith.constant 0 : index
    %c0_16 = arith.constant 0 : index
    %13 = vector.load %arg6[%c0_13, %c0_14, %c0_15, %c0_16] : memref<2x2x22x22xf32, #tpu.memory_space<vmem>>, vector<2x2x22x22xf32>
    tpu.vector_store %arg6[%c0_13, %c0_14, %c0_15, %c0_16], %12 {strides = array<i32>} : memref<2x2x22x22xf32, #tpu.memory_space<vmem>>, vector<2x2x22x22xf32>,
    %c0_17 = arith.constant 0 : index
    %c0_18 = arith.constant 0 : index
    %c3 = arith.constant 3 : index
    %c3_19 = arith.constant 3 : index
    %14 = vector.load %arg6[%c0_17, %c0_18, %c3, %c3_19] : memref<2x2x22x22xf32, #tpu.memory_space<vmem>>, vector<1x2x16x16xf32>
    %15 = vector.shape_cast %14 : vector<1x2x16x16xf32> to vector<2x16x16xf32>
    %16 = vector.shape_cast %8 : vector<2x16x16xf32> to vector<1x2x16x16xf32>
    tpu.vector_store %arg6[%c0_17, %c0_18, %c3, %c3_19], %16 {strides = array<i32>} : memref<2x2x22x22xf32, #tpu.memory_space<vmem>>, vector<1x2x16x16xf32>,
    %c1 = arith.constant 1 : index
    %c0_20 = arith.constant 0 : index
    %c3_21 = arith.constant 3 : index
    %c3_22 = arith.constant 3 : index
    %17 = vector.load %arg6[%c1, %c0_20, %c3_21, %c3_22] : memref<2x2x22x22xf32, #tpu.memory_space<vmem>>, vector<1x2x16x16xf32>
    %18 = vector.shape_cast %17 : vector<1x2x16x16xf32> to vector<2x16x16xf32>
    %19 = vector.shape_cast %11 : vector<2x16x16xf32> to vector<1x2x16x16xf32>
    tpu.vector_store %arg6[%c1, %c0_20, %c3_21, %c3_22], %19 {strides = array<i32>} : memref<2x2x22x22xf32, #tpu.memory_space<vmem>>, vector<1x2x16x16xf32>,
    %cst_23 = arith.constant 0.000000e+00 : f32
    %20 = vector.broadcast %cst_23 : f32 to vector<2x16x16xf32>
    %cst_24 = arith.constant 0.000000e+00 : f32
    %21 = vector.broadcast %cst_24 : f32 to vector<2x16x16xf32>
    %c0_25 = arith.constant 0 : index
    %c0_26 = arith.constant 0 : index
    %c0_27 = arith.constant 0 : index
    %c0_28 = arith.constant 0 : index
    %22 = vector.load %arg6[%c0_25, %c0_26, %c0_27, %c0_28] : memref<2x2x22x22xf32, #tpu.memory_space<vmem>>, vector<1x2x16x22xf32>
    %23 = vector.shape_cast %22 : vector<1x2x16x22xf32> to vector<2x16x22xf32>
    %c0_29 = arith.constant 0 : index
    %24 = memref.load %arg1[%c0_29] : memref<98xf32, #tpu.memory_space<smem>>
    %25 = vector.extract_strided_slice %23 {offsets = [0, 0, 0], sizes = [2, 16, 16], strides = [1, 1, 1]} : vector<2x16x22xf32> to vector<2x16x16xf32>
    %26 = vector.broadcast %24 : f32 to vector<2x16x16xf32>
    %27 = arith.mulf %26, %25 : vector<2x16x16xf32>
    %28 = arith.addf %20, %27 : vector<2x16x16xf32>
    %c1_30 = arith.constant 1 : index
    %29 = memref.load %arg1[%c1_30] : memref<98xf32, #tpu.memory_space<smem>>
    %30 = vector.extract_strided_slice %23 {offsets = [0, 0, 1], sizes = [2, 16, 16], strides = [1, 1, 1]} : vector<2x16x22xf32> to vector<2x16x16xf32>
    %31 = vector.broadcast %29 : f32 to vector<2x16x16xf32>
    %32 = arith.mulf %31, %30 : vector<2x16x16xf32>
    %33 = arith.addf %21, %32 : vector<2x16x16xf32>
    %c2 = arith.constant 2 : index
    %34 = memref.load %arg1[%c2] : memref<98xf32, #tpu.memory_space<smem>>
    %35 = vector.extract_strided_slice %23 {offsets = [0, 0, 2], sizes = [2, 16, 16], strides = [1, 1, 1]} : vector<2x16x22xf32> to vector<2x16x16xf32>
    %36 = vector.broadcast %34 : f32 to vector<2x16x16xf32>
    %37 = arith.mulf %36, %35 : vector<2x16x16xf32>
    %38 = arith.addf %28, %37 : vector<2x16x16xf32>
    %c3_31 = arith.constant 3 : index
    %39 = memref.load %arg1[%c3_31] : memref<98xf32, #tpu.memory_space<smem>>
    %40 = vector.extract_strided_slice %23 {offsets = [0, 0, 3], sizes = [2, 16, 16], strides = [1, 1, 1]} : vector<2x16x22xf32> to vector<2x16x16xf32>
    %41 = vector.broadcast %39 : f32 to vector<2x16x16xf32>
    %42 = arith.mulf %41, %40 : vector<2x16x16xf32>
    %43 = arith.addf %33, %42 : vector<2x16x16xf32>
    %c4 = arith.constant 4 : index
    %44 = memref.load %arg1[%c4] : memref<98xf32, #tpu.memory_space<smem>>
    %45 = vector.extract_strided_slice %23 {offsets = [0, 0, 4], sizes = [2, 16, 16], strides = [1, 1, 1]} : vector<2x16x22xf32> to vector<2x16x16xf32>
    %46 = vector.broadcast %44 : f32 to vector<2x16x16xf32>
    %47 = arith.mulf %46, %45 : vector<2x16x16xf32>
    %48 = arith.addf %38, %47 : vector<2x16x16xf32>
    %c5 = arith.constant 5 : index
    %49 = memref.load %arg1[%c5] : memref<98xf32, #tpu.memory_space<smem>>
    %50 = vector.extract_strided_slice %23 {offsets = [0, 0, 5], sizes = [2, 16, 16], strides = [1, 1, 1]} : vector<2x16x22xf32> to vector<2x16x16xf32>
    %51 = vector.broadcast %49 : f32 to vector<2x16x16xf32>
    %52 = arith.mulf %51, %50 : vector<2x16x16xf32>
    %53 = arith.addf %43, %52 : vector<2x16x16xf32>
    %c6 = arith.constant 6 : index
    %54 = memref.load %arg1[%c6] : memref<98xf32, #tpu.memory_space<smem>>
    %55 = vector.extract_strided_slice %23 {offsets = [0, 0, 6], sizes = [2, 16, 16], strides = [1, 1, 1]} : vector<2x16x22xf32> to vector<2x16x16xf32>
    %56 = vector.broadcast %54 : f32 to vector<2x16x16xf32>
    %57 = arith.mulf %56, %55 : vector<2x16x16xf32>
    %58 = arith.addf %48, %57 : vector<2x16x16xf32>
    %c0_32 = arith.constant 0 : index
    %c0_33 = arith.constant 0 : index
    %c1_34 = arith.constant 1 : index
    %c0_35 = arith.constant 0 : index
    %59 = vector.load %arg6[%c0_32, %c0_33, %c1_34, %c0_35] : memref<2x2x22x22xf32, #tpu.memory_space<vmem>>, vector<1x2x16x22xf32>
    %60 = vector.shape_cast %59 : vector<1x2x16x22xf32> to vector<2x16x22xf32>
    %c7 = arith.constant 7 : index
    %61 = memref.load %arg1[%c7] : memref<98xf32, #tpu.memory_space<smem>>
    %62 = vector.extract_strided_slice %60 {offsets = [0, 0, 0], sizes = [2, 16, 16], strides = [1, 1, 1]} : vector<2x16x22xf32> to vector<2x16x16xf32>
    %63 = vector.broadcast %61 : f32 to vector<2x16x16xf32>
    %64 = arith.mulf %63, %62 : vector<2x16x16xf32>
    %65 = arith.addf %58, %64 : vector<2x16x16xf32>
    %c8 = arith.constant 8 : index
    %66 = memref.load %arg1[%c8] : memref<98xf32, #tpu.memory_space<smem>>
    %67 = vector.extract_strided_slice %60 {offsets = [0, 0, 1], sizes = [2, 16, 16], strides = [1, 1, 1]} : vector<2x16x22xf32> to vector<2x16x16xf32>
    %68 = vector.broadcast %66 : f32 to vector<2x16x16xf32>
    %69 = arith.mulf %68, %67 : vector<2x16x16xf32>
    %70 = arith.addf %53, %69 : vector<2x16x16xf32>
    %c9 = arith.constant 9 : index
    %71 = memref.load %arg1[%c9] : memref<98xf32, #tpu.memory_space<smem>>
    %72 = vector.extract_strided_slice %60 {offsets = [0, 0, 2], sizes = [2, 16, 16], strides = [1, 1, 1]} : vector<2x16x22xf32> to vector<2x16x16xf32>
    %73 = vector.broadcast %71 : f32 to vector<2x16x16xf32>
    %74 = arith.mulf %73, %72 : vector<2x16x16xf32>
    %75 = arith.addf %65, %74 : vector<2x16x16xf32>
    %c10 = arith.constant 10 : index
    %76 = memref.load %arg1[%c10] : memref<98xf32, #tpu.memory_space<smem>>
    %77 = vector.extract_strided_slice %60 {offsets = [0, 0, 3], sizes = [2, 16, 16], strides = [1, 1, 1]} : vector<2x16x22xf32> to vector<2x16x16xf32>
    %78 = vector.broadcast %76 : f32 to vector<2x16x16xf32>
    %79 = arith.mulf %78, %77 : vector<2x16x16xf32>
    %80 = arith.addf %70, %79 : vector<2x16x16xf32>
    %c11 = arith.constant 11 : index
    %81 = memref.load %arg1[%c11] : memref<98xf32, #tpu.memory_space<smem>>
    %82 = vector.extract_strided_slice %60 {offsets = [0, 0, 4], sizes = [2, 16, 16], strides = [1, 1, 1]} : vector<2x16x22xf32> to vector<2x16x16xf32>
    %83 = vector.broadcast %81 : f32 to vector<2x16x16xf32>
    %84 = arith.mulf %83, %82 : vector<2x16x16xf32>
    %85 = arith.addf %75, %84 : vector<2x16x16xf32>
    %c12 = arith.constant 12 : index
    %86 = memref.load %arg1[%c12] : memref<98xf32, #tpu.memory_space<smem>>
    %87 = vector.extract_strided_slice %60 {offsets = [0, 0, 5], sizes = [2, 16, 16], strides = [1, 1, 1]} : vector<2x16x22xf32> to vector<2x16x16xf32>
    %88 = vector.broadcast %86 : f32 to vector<2x16x16xf32>
    %89 = arith.mulf %88, %87 : vector<2x16x16xf32>
    %90 = arith.addf %80, %89 : vector<2x16x16xf32>
    %c13 = arith.constant 13 : index
    %91 = memref.load %arg1[%c13] : memref<98xf32, #tpu.memory_space<smem>>
    %92 = vector.extract_strided_slice %60 {offsets = [0, 0, 6], sizes = [2, 16, 16], strides = [1, 1, 1]} : vector<2x16x22xf32> to vector<2x16x16xf32>
    %93 = vector.broadcast %91 : f32 to vector<2x16x16xf32>
    %94 = arith.mulf %93, %92 : vector<2x16x16xf32>
    %95 = arith.addf %85, %94 : vector<2x16x16xf32>
    %c0_36 = arith.constant 0 : index
    %c0_37 = arith.constant 0 : index
    %c2_38 = arith.constant 2 : index
    %c0_39 = arith.constant 0 : index
    %96 = vector.load %arg6[%c0_36, %c0_37, %c2_38, %c0_39] : memref<2x2x22x22xf32, #tpu.memory_space<vmem>>, vector<1x2x16x22xf32>
    %97 = vector.shape_cast %96 : vector<1x2x16x22xf32> to vector<2x16x22xf32>
    %c14 = arith.constant 14 : index
    %98 = memref.load %arg1[%c14] : memref<98xf32, #tpu.memory_space<smem>>
    %99 = vector.extract_strided_slice %97 {offsets = [0, 0, 0], sizes = [2, 16, 16], strides = [1, 1, 1]} : vector<2x16x22xf32> to vector<2x16x16xf32>
    %100 = vector.broadcast %98 : f32 to vector<2x16x16xf32>
    %101 = arith.mulf %100, %99 : vector<2x16x16xf32>
    %102 = arith.addf %95, %101 : vector<2x16x16xf32>
    %c15 = arith.constant 15 : index
    %103 = memref.load %arg1[%c15] : memref<98xf32, #tpu.memory_space<smem>>
    %104 = vector.extract_strided_slice %97 {offsets = [0, 0, 1], sizes = [2, 16, 16], strides = [1, 1, 1]} : vector<2x16x22xf32> to vector<2x16x16xf32>
    %105 = vector.broadcast %103 : f32 to vector<2x16x16xf32>
    %106 = arith.mulf %105, %104 : vector<2x16x16xf32>
    %107 = arith.addf %90, %106 : vector<2x16x16xf32>
    %c16 = arith.constant 16 : index
    %108 = memref.load %arg1[%c16] : memref<98xf32, #tpu.memory_space<smem>>
    %109 = vector.extract_strided_slice %97 {offsets = [0, 0, 2], sizes = [2, 16, 16], strides = [1, 1, 1]} : vector<2x16x22xf32> to vector<2x16x16xf32>
    %110 = vector.broadcast %108 : f32 to vector<2x16x16xf32>
    %111 = arith.mulf %110, %109 : vector<2x16x16xf32>
    %112 = arith.addf %102, %111 : vector<2x16x16xf32>
    %c17 = arith.constant 17 : index
    %113 = memref.load %arg1[%c17] : memref<98xf32, #tpu.memory_space<smem>>
    %114 = vector.extract_strided_slice %97 {offsets = [0, 0, 3], sizes = [2, 16, 16], strides = [1, 1, 1]} : vector<2x16x22xf32> to vector<2x16x16xf32>
    %115 = vector.broadcast %113 : f32 to vector<2x16x16xf32>
    %116 = arith.mulf %115, %114 : vector<2x16x16xf32>
    %117 = arith.addf %107, %116 : vector<2x16x16xf32>
    %c18 = arith.constant 18 : index
    %118 = memref.load %arg1[%c18] : memref<98xf32, #tpu.memory_space<smem>>
    %119 = vector.extract_strided_slice %97 {offsets = [0, 0, 4], sizes = [2, 16, 16], strides = [1, 1, 1]} : vector<2x16x22xf32> to vector<2x16x16xf32>
    %120 = vector.broadcast %118 : f32 to vector<2x16x16xf32>
    %121 = arith.mulf %120, %119 : vector<2x16x16xf32>
    %122 = arith.addf %112, %121 : vector<2x16x16xf32>
    %c19 = arith.constant 19 : index
    %123 = memref.load %arg1[%c19] : memref<98xf32, #tpu.memory_space<smem>>
    %124 = vector.extract_strided_slice %97 {offsets = [0, 0, 5], sizes = [2, 16, 16], strides = [1, 1, 1]} : vector<2x16x22xf32> to vector<2x16x16xf32>
    %125 = vector.broadcast %123 : f32 to vector<2x16x16xf32>
    %126 = arith.mulf %125, %124 : vector<2x16x16xf32>
    %127 = arith.addf %117, %126 : vector<2x16x16xf32>
    %c20 = arith.constant 20 : index
    %128 = memref.load %arg1[%c20] : memref<98xf32, #tpu.memory_space<smem>>
    %129 = vector.extract_strided_slice %97 {offsets = [0, 0, 6], sizes = [2, 16, 16], strides = [1, 1, 1]} : vector<2x16x22xf32> to vector<2x16x16xf32>
    %130 = vector.broadcast %128 : f32 to vector<2x16x16xf32>
    %131 = arith.mulf %130, %129 : vector<2x16x16xf32>
    %132 = arith.addf %122, %131 : vector<2x16x16xf32>
    %c0_40 = arith.constant 0 : index
    %c0_41 = arith.constant 0 : index
    %c3_42 = arith.constant 3 : index
    %c0_43 = arith.constant 0 : index
    %133 = vector.load %arg6[%c0_40, %c0_41, %c3_42, %c0_43] : memref<2x2x22x22xf32, #tpu.memory_space<vmem>>, vector<1x2x16x22xf32>
    %134 = vector.shape_cast %133 : vector<1x2x16x22xf32> to vector<2x16x22xf32>
    %c21 = arith.constant 21 : index
    %135 = memref.load %arg1[%c21] : memref<98xf32, #tpu.memory_space<smem>>
    %136 = vector.extract_strided_slice %134 {offsets = [0, 0, 0], sizes = [2, 16, 16], strides = [1, 1, 1]} : vector<2x16x22xf32> to vector<2x16x16xf32>
    %137 = vector.broadcast %135 : f32 to vector<2x16x16xf32>
    %138 = arith.mulf %137, %136 : vector<2x16x16xf32>
    %139 = arith.addf %132, %138 : vector<2x16x16xf32>
    %c22 = arith.constant 22 : index
    %140 = memref.load %arg1[%c22] : memref<98xf32, #tpu.memory_space<smem>>
    %141 = vector.extract_strided_slice %134 {offsets = [0, 0, 1], sizes = [2, 16, 16], strides = [1, 1, 1]} : vector<2x16x22xf32> to vector<2x16x16xf32>
    %142 = vector.broadcast %140 : f32 to vector<2x16x16xf32>
    %143 = arith.mulf %142, %141 : vector<2x16x16xf32>
    %144 = arith.addf %127, %143 : vector<2x16x16xf32>
    %c23 = arith.constant 23 : index
    %145 = memref.load %arg1[%c23] : memref<98xf32, #tpu.memory_space<smem>>
    %146 = vector.extract_strided_slice %134 {offsets = [0, 0, 2], sizes = [2, 16, 16], strides = [1, 1, 1]} : vector<2x16x22xf32> to vector<2x16x16xf32>
    %147 = vector.broadcast %145 : f32 to vector<2x16x16xf32>
    %148 = arith.mulf %147, %146 : vector<2x16x16xf32>
    %149 = arith.addf %139, %148 : vector<2x16x16xf32>
    %c24 = arith.constant 24 : index
    %150 = memref.load %arg1[%c24] : memref<98xf32, #tpu.memory_space<smem>>
    %151 = vector.extract_strided_slice %134 {offsets = [0, 0, 3], sizes = [2, 16, 16], strides = [1, 1, 1]} : vector<2x16x22xf32> to vector<2x16x16xf32>
    %152 = vector.broadcast %150 : f32 to vector<2x16x16xf32>
    %153 = arith.mulf %152, %151 : vector<2x16x16xf32>
    %154 = arith.addf %144, %153 : vector<2x16x16xf32>
    %c25 = arith.constant 25 : index
    %155 = memref.load %arg1[%c25] : memref<98xf32, #tpu.memory_space<smem>>
    %156 = vector.extract_strided_slice %134 {offsets = [0, 0, 4], sizes = [2, 16, 16], strides = [1, 1, 1]} : vector<2x16x22xf32> to vector<2x16x16xf32>
    %157 = vector.broadcast %155 : f32 to vector<2x16x16xf32>
    %158 = arith.mulf %157, %156 : vector<2x16x16xf32>
    %159 = arith.addf %149, %158 : vector<2x16x16xf32>
    %c26 = arith.constant 26 : index
    %160 = memref.load %arg1[%c26] : memref<98xf32, #tpu.memory_space<smem>>
    %161 = vector.extract_strided_slice %134 {offsets = [0, 0, 5], sizes = [2, 16, 16], strides = [1, 1, 1]} : vector<2x16x22xf32> to vector<2x16x16xf32>
    %162 = vector.broadcast %160 : f32 to vector<2x16x16xf32>
    %163 = arith.mulf %162, %161 : vector<2x16x16xf32>
    %164 = arith.addf %154, %163 : vector<2x16x16xf32>
    %c27 = arith.constant 27 : index
    %165 = memref.load %arg1[%c27] : memref<98xf32, #tpu.memory_space<smem>>
    %166 = vector.extract_strided_slice %134 {offsets = [0, 0, 6], sizes = [2, 16, 16], strides = [1, 1, 1]} : vector<2x16x22xf32> to vector<2x16x16xf32>
    %167 = vector.broadcast %165 : f32 to vector<2x16x16xf32>
    %168 = arith.mulf %167, %166 : vector<2x16x16xf32>
    %169 = arith.addf %159, %168 : vector<2x16x16xf32>
    %c0_44 = arith.constant 0 : index
    %c0_45 = arith.constant 0 : index
    %c4_46 = arith.constant 4 : index
    %c0_47 = arith.constant 0 : index
    %170 = vector.load %arg6[%c0_44, %c0_45, %c4_46, %c0_47] : memref<2x2x22x22xf32, #tpu.memory_space<vmem>>, vector<1x2x16x22xf32>
    %171 = vector.shape_cast %170 : vector<1x2x16x22xf32> to vector<2x16x22xf32>
    %c28 = arith.constant 28 : index
    %172 = memref.load %arg1[%c28] : memref<98xf32, #tpu.memory_space<smem>>
    %173 = vector.extract_strided_slice %171 {offsets = [0, 0, 0], sizes = [2, 16, 16], strides = [1, 1, 1]} : vector<2x16x22xf32> to vector<2x16x16xf32>
    %174 = vector.broadcast %172 : f32 to vector<2x16x16xf32>
    %175 = arith.mulf %174, %173 : vector<2x16x16xf32>
    %176 = arith.addf %169, %175 : vector<2x16x16xf32>
    %c29 = arith.constant 29 : index
    %177 = memref.load %arg1[%c29] : memref<98xf32, #tpu.memory_space<smem>>
    %178 = vector.extract_strided_slice %171 {offsets = [0, 0, 1], sizes = [2, 16, 16], strides = [1, 1, 1]} : vector<2x16x22xf32> to vector<2x16x16xf32>
    %179 = vector.broadcast %177 : f32 to vector<2x16x16xf32>
    %180 = arith.mulf %179, %178 : vector<2x16x16xf32>
    %181 = arith.addf %164, %180 : vector<2x16x16xf32>
    %c30 = arith.constant 30 : index
    %182 = memref.load %arg1[%c30] : memref<98xf32, #tpu.memory_space<smem>>
    %183 = vector.extract_strided_slice %171 {offsets = [0, 0, 2], sizes = [2, 16, 16], strides = [1, 1, 1]} : vector<2x16x22xf32> to vector<2x16x16xf32>
    %184 = vector.broadcast %182 : f32 to vector<2x16x16xf32>
    %185 = arith.mulf %184, %183 : vector<2x16x16xf32>
    %186 = arith.addf %176, %185 : vector<2x16x16xf32>
    %c31 = arith.constant 31 : index
    %187 = memref.load %arg1[%c31] : memref<98xf32, #tpu.memory_space<smem>>
    %188 = vector.extract_strided_slice %171 {offsets = [0, 0, 3], sizes = [2, 16, 16], strides = [1, 1, 1]} : vector<2x16x22xf32> to vector<2x16x16xf32>
    %189 = vector.broadcast %187 : f32 to vector<2x16x16xf32>
    %190 = arith.mulf %189, %188 : vector<2x16x16xf32>
    %191 = arith.addf %181, %190 : vector<2x16x16xf32>
    %c32 = arith.constant 32 : index
    %192 = memref.load %arg1[%c32] : memref<98xf32, #tpu.memory_space<smem>>
    %193 = vector.extract_strided_slice %171 {offsets = [0, 0, 4], sizes = [2, 16, 16], strides = [1, 1, 1]} : vector<2x16x22xf32> to vector<2x16x16xf32>
    %194 = vector.broadcast %192 : f32 to vector<2x16x16xf32>
    %195 = arith.mulf %194, %193 : vector<2x16x16xf32>
    %196 = arith.addf %186, %195 : vector<2x16x16xf32>
    %c33 = arith.constant 33 : index
    %197 = memref.load %arg1[%c33] : memref<98xf32, #tpu.memory_space<smem>>
    %198 = vector.extract_strided_slice %171 {offsets = [0, 0, 5], sizes = [2, 16, 16], strides = [1, 1, 1]} : vector<2x16x22xf32> to vector<2x16x16xf32>
    %199 = vector.broadcast %197 : f32 to vector<2x16x16xf32>
    %200 = arith.mulf %199, %198 : vector<2x16x16xf32>
    %201 = arith.addf %191, %200 : vector<2x16x16xf32>
    %c34 = arith.constant 34 : index
    %202 = memref.load %arg1[%c34] : memref<98xf32, #tpu.memory_space<smem>>
    %203 = vector.extract_strided_slice %171 {offsets = [0, 0, 6], sizes = [2, 16, 16], strides = [1, 1, 1]} : vector<2x16x22xf32> to vector<2x16x16xf32>
    %204 = vector.broadcast %202 : f32 to vector<2x16x16xf32>
    %205 = arith.mulf %204, %203 : vector<2x16x16xf32>
    %206 = arith.addf %196, %205 : vector<2x16x16xf32>
    %c0_48 = arith.constant 0 : index
    %c0_49 = arith.constant 0 : index
    %c5_50 = arith.constant 5 : index
    %c0_51 = arith.constant 0 : index
    %207 = vector.load %arg6[%c0_48, %c0_49, %c5_50, %c0_51] : memref<2x2x22x22xf32, #tpu.memory_space<vmem>>, vector<1x2x16x22xf32>
    %208 = vector.shape_cast %207 : vector<1x2x16x22xf32> to vector<2x16x22xf32>
    %c35 = arith.constant 35 : index
    %209 = memref.load %arg1[%c35] : memref<98xf32, #tpu.memory_space<smem>>
    %210 = vector.extract_strided_slice %208 {offsets = [0, 0, 0], sizes = [2, 16, 16], strides = [1, 1, 1]} : vector<2x16x22xf32> to vector<2x16x16xf32>
    %211 = vector.broadcast %209 : f32 to vector<2x16x16xf32>
    %212 = arith.mulf %211, %210 : vector<2x16x16xf32>
    %213 = arith.addf %206, %212 : vector<2x16x16xf32>
    %c36 = arith.constant 36 : index
    %214 = memref.load %arg1[%c36] : memref<98xf32, #tpu.memory_space<smem>>
    %215 = vector.extract_strided_slice %208 {offsets = [0, 0, 1], sizes = [2, 16, 16], strides = [1, 1, 1]} : vector<2x16x22xf32> to vector<2x16x16xf32>
    %216 = vector.broadcast %214 : f32 to vector<2x16x16xf32>
    %217 = arith.mulf %216, %215 : vector<2x16x16xf32>
    %218 = arith.addf %201, %217 : vector<2x16x16xf32>
    %c37 = arith.constant 37 : index
    %219 = memref.load %arg1[%c37] : memref<98xf32, #tpu.memory_space<smem>>
    %220 = vector.extract_strided_slice %208 {offsets = [0, 0, 2], sizes = [2, 16, 16], strides = [1, 1, 1]} : vector<2x16x22xf32> to vector<2x16x16xf32>
    %221 = vector.broadcast %219 : f32 to vector<2x16x16xf32>
    %222 = arith.mulf %221, %220 : vector<2x16x16xf32>
    %223 = arith.addf %213, %222 : vector<2x16x16xf32>
    %c38 = arith.constant 38 : index
    %224 = memref.load %arg1[%c38] : memref<98xf32, #tpu.memory_space<smem>>
    %225 = vector.extract_strided_slice %208 {offsets = [0, 0, 3], sizes = [2, 16, 16], strides = [1, 1, 1]} : vector<2x16x22xf32> to vector<2x16x16xf32>
    %226 = vector.broadcast %224 : f32 to vector<2x16x16xf32>
    %227 = arith.mulf %226, %225 : vector<2x16x16xf32>
    %228 = arith.addf %218, %227 : vector<2x16x16xf32>
    %c39 = arith.constant 39 : index
    %229 = memref.load %arg1[%c39] : memref<98xf32, #tpu.memory_space<smem>>
    %230 = vector.extract_strided_slice %208 {offsets = [0, 0, 4], sizes = [2, 16, 16], strides = [1, 1, 1]} : vector<2x16x22xf32> to vector<2x16x16xf32>
    %231 = vector.broadcast %229 : f32 to vector<2x16x16xf32>
    %232 = arith.mulf %231, %230 : vector<2x16x16xf32>
    %233 = arith.addf %223, %232 : vector<2x16x16xf32>
    %c40 = arith.constant 40 : index
    %234 = memref.load %arg1[%c40] : memref<98xf32, #tpu.memory_space<smem>>
    %235 = vector.extract_strided_slice %208 {offsets = [0, 0, 5], sizes = [2, 16, 16], strides = [1, 1, 1]} : vector<2x16x22xf32> to vector<2x16x16xf32>
    %236 = vector.broadcast %234 : f32 to vector<2x16x16xf32>
    %237 = arith.mulf %236, %235 : vector<2x16x16xf32>
    %238 = arith.addf %228, %237 : vector<2x16x16xf32>
    %c41 = arith.constant 41 : index
    %239 = memref.load %arg1[%c41] : memref<98xf32, #tpu.memory_space<smem>>
    %240 = vector.extract_strided_slice %208 {offsets = [0, 0, 6], sizes = [2, 16, 16], strides = [1, 1, 1]} : vector<2x16x22xf32> to vector<2x16x16xf32>
    %241 = vector.broadcast %239 : f32 to vector<2x16x16xf32>
    %242 = arith.mulf %241, %240 : vector<2x16x16xf32>
    %243 = arith.addf %233, %242 : vector<2x16x16xf32>
    %c0_52 = arith.constant 0 : index
    %c0_53 = arith.constant 0 : index
    %c6_54 = arith.constant 6 : index
    %c0_55 = arith.constant 0 : index
    %244 = vector.load %arg6[%c0_52, %c0_53, %c6_54, %c0_55] : memref<2x2x22x22xf32, #tpu.memory_space<vmem>>, vector<1x2x16x22xf32>
    %245 = vector.shape_cast %244 : vector<1x2x16x22xf32> to vector<2x16x22xf32>
    %c42 = arith.constant 42 : index
    %246 = memref.load %arg1[%c42] : memref<98xf32, #tpu.memory_space<smem>>
    %247 = vector.extract_strided_slice %245 {offsets = [0, 0, 0], sizes = [2, 16, 16], strides = [1, 1, 1]} : vector<2x16x22xf32> to vector<2x16x16xf32>
    %248 = vector.broadcast %246 : f32 to vector<2x16x16xf32>
    %249 = arith.mulf %248, %247 : vector<2x16x16xf32>
    %250 = arith.addf %243, %249 : vector<2x16x16xf32>
    %c43 = arith.constant 43 : index
    %251 = memref.load %arg1[%c43] : memref<98xf32, #tpu.memory_space<smem>>
    %252 = vector.extract_strided_slice %245 {offsets = [0, 0, 1], sizes = [2, 16, 16], strides = [1, 1, 1]} : vector<2x16x22xf32> to vector<2x16x16xf32>
    %253 = vector.broadcast %251 : f32 to vector<2x16x16xf32>
    %254 = arith.mulf %253, %252 : vector<2x16x16xf32>
    %255 = arith.addf %238, %254 : vector<2x16x16xf32>
    %c44 = arith.constant 44 : index
    %256 = memref.load %arg1[%c44] : memref<98xf32, #tpu.memory_space<smem>>
    %257 = vector.extract_strided_slice %245 {offsets = [0, 0, 2], sizes = [2, 16, 16], strides = [1, 1, 1]} : vector<2x16x22xf32> to vector<2x16x16xf32>
    %258 = vector.broadcast %256 : f32 to vector<2x16x16xf32>
    %259 = arith.mulf %258, %257 : vector<2x16x16xf32>
    %260 = arith.addf %250, %259 : vector<2x16x16xf32>
    %c45 = arith.constant 45 : index
    %261 = memref.load %arg1[%c45] : memref<98xf32, #tpu.memory_space<smem>>
    %262 = vector.extract_strided_slice %245 {offsets = [0, 0, 3], sizes = [2, 16, 16], strides = [1, 1, 1]} : vector<2x16x22xf32> to vector<2x16x16xf32>
    %263 = vector.broadcast %261 : f32 to vector<2x16x16xf32>
    %264 = arith.mulf %263, %262 : vector<2x16x16xf32>
    %265 = arith.addf %255, %264 : vector<2x16x16xf32>
    %c46 = arith.constant 46 : index
    %266 = memref.load %arg1[%c46] : memref<98xf32, #tpu.memory_space<smem>>
    %267 = vector.extract_strided_slice %245 {offsets = [0, 0, 4], sizes = [2, 16, 16], strides = [1, 1, 1]} : vector<2x16x22xf32> to vector<2x16x16xf32>
    %268 = vector.broadcast %266 : f32 to vector<2x16x16xf32>
    %269 = arith.mulf %268, %267 : vector<2x16x16xf32>
    %270 = arith.addf %260, %269 : vector<2x16x16xf32>
    %c47 = arith.constant 47 : index
    %271 = memref.load %arg1[%c47] : memref<98xf32, #tpu.memory_space<smem>>
    %272 = vector.extract_strided_slice %245 {offsets = [0, 0, 5], sizes = [2, 16, 16], strides = [1, 1, 1]} : vector<2x16x22xf32> to vector<2x16x16xf32>
    %273 = vector.broadcast %271 : f32 to vector<2x16x16xf32>
    %274 = arith.mulf %273, %272 : vector<2x16x16xf32>
    %275 = arith.addf %265, %274 : vector<2x16x16xf32>
    %c48 = arith.constant 48 : index
    %276 = memref.load %arg1[%c48] : memref<98xf32, #tpu.memory_space<smem>>
    %277 = vector.extract_strided_slice %245 {offsets = [0, 0, 6], sizes = [2, 16, 16], strides = [1, 1, 1]} : vector<2x16x22xf32> to vector<2x16x16xf32>
    %278 = vector.broadcast %276 : f32 to vector<2x16x16xf32>
    %279 = arith.mulf %278, %277 : vector<2x16x16xf32>
    %280 = arith.addf %270, %279 : vector<2x16x16xf32>
    %281 = arith.addf %280, %275 : vector<2x16x16xf32>
    %cst_56 = arith.constant 0.000000e+00 : f32
    %282 = vector.broadcast %cst_56 : f32 to vector<2x16x16xf32>
    %cst_57 = arith.constant 0.000000e+00 : f32
    %283 = vector.broadcast %cst_57 : f32 to vector<2x16x16xf32>
    %c1_58 = arith.constant 1 : index
    %c0_59 = arith.constant 0 : index
    %c0_60 = arith.constant 0 : index
    %c0_61 = arith.constant 0 : index
    %284 = vector.load %arg6[%c1_58, %c0_59, %c0_60, %c0_61] : memref<2x2x22x22xf32, #tpu.memory_space<vmem>>, vector<1x2x16x22xf32>
    %285 = vector.shape_cast %284 : vector<1x2x16x22xf32> to vector<2x16x22xf32>
    %c49 = arith.constant 49 : index
    %286 = memref.load %arg1[%c49] : memref<98xf32, #tpu.memory_space<smem>>
    %287 = vector.extract_strided_slice %285 {offsets = [0, 0, 0], sizes = [2, 16, 16], strides = [1, 1, 1]} : vector<2x16x22xf32> to vector<2x16x16xf32>
    %288 = vector.broadcast %286 : f32 to vector<2x16x16xf32>
    %289 = arith.mulf %288, %287 : vector<2x16x16xf32>
    %290 = arith.addf %282, %289 : vector<2x16x16xf32>
    %c50 = arith.constant 50 : index
    %291 = memref.load %arg1[%c50] : memref<98xf32, #tpu.memory_space<smem>>
    %292 = vector.extract_strided_slice %285 {offsets = [0, 0, 1], sizes = [2, 16, 16], strides = [1, 1, 1]} : vector<2x16x22xf32> to vector<2x16x16xf32>
    %293 = vector.broadcast %291 : f32 to vector<2x16x16xf32>
    %294 = arith.mulf %293, %292 : vector<2x16x16xf32>
    %295 = arith.addf %283, %294 : vector<2x16x16xf32>
    %c51 = arith.constant 51 : index
    %296 = memref.load %arg1[%c51] : memref<98xf32, #tpu.memory_space<smem>>
    %297 = vector.extract_strided_slice %285 {offsets = [0, 0, 2], sizes = [2, 16, 16], strides = [1, 1, 1]} : vector<2x16x22xf32> to vector<2x16x16xf32>
    %298 = vector.broadcast %296 : f32 to vector<2x16x16xf32>
    %299 = arith.mulf %298, %297 : vector<2x16x16xf32>
    %300 = arith.addf %290, %299 : vector<2x16x16xf32>
    %c52 = arith.constant 52 : index
    %301 = memref.load %arg1[%c52] : memref<98xf32, #tpu.memory_space<smem>>
    %302 = vector.extract_strided_slice %285 {offsets = [0, 0, 3], sizes = [2, 16, 16], strides = [1, 1, 1]} : vector<2x16x22xf32> to vector<2x16x16xf32>
    %303 = vector.broadcast %301 : f32 to vector<2x16x16xf32>
    %304 = arith.mulf %303, %302 : vector<2x16x16xf32>
    %305 = arith.addf %295, %304 : vector<2x16x16xf32>
    %c53 = arith.constant 53 : index
    %306 = memref.load %arg1[%c53] : memref<98xf32, #tpu.memory_space<smem>>
    %307 = vector.extract_strided_slice %285 {offsets = [0, 0, 4], sizes = [2, 16, 16], strides = [1, 1, 1]} : vector<2x16x22xf32> to vector<2x16x16xf32>
    %308 = vector.broadcast %306 : f32 to vector<2x16x16xf32>
    %309 = arith.mulf %308, %307 : vector<2x16x16xf32>
    %310 = arith.addf %300, %309 : vector<2x16x16xf32>
    %c54 = arith.constant 54 : index
    %311 = memref.load %arg1[%c54] : memref<98xf32, #tpu.memory_space<smem>>
    %312 = vector.extract_strided_slice %285 {offsets = [0, 0, 5], sizes = [2, 16, 16], strides = [1, 1, 1]} : vector<2x16x22xf32> to vector<2x16x16xf32>
    %313 = vector.broadcast %311 : f32 to vector<2x16x16xf32>
    %314 = arith.mulf %313, %312 : vector<2x16x16xf32>
    %315 = arith.addf %305, %314 : vector<2x16x16xf32>
    %c55 = arith.constant 55 : index
    %316 = memref.load %arg1[%c55] : memref<98xf32, #tpu.memory_space<smem>>
    %317 = vector.extract_strided_slice %285 {offsets = [0, 0, 6], sizes = [2, 16, 16], strides = [1, 1, 1]} : vector<2x16x22xf32> to vector<2x16x16xf32>
    %318 = vector.broadcast %316 : f32 to vector<2x16x16xf32>
    %319 = arith.mulf %318, %317 : vector<2x16x16xf32>
    %320 = arith.addf %310, %319 : vector<2x16x16xf32>
    %c1_62 = arith.constant 1 : index
    %c0_63 = arith.constant 0 : index
    %c1_64 = arith.constant 1 : index
    %c0_65 = arith.constant 0 : index
    %321 = vector.load %arg6[%c1_62, %c0_63, %c1_64, %c0_65] : memref<2x2x22x22xf32, #tpu.memory_space<vmem>>, vector<1x2x16x22xf32>
    %322 = vector.shape_cast %321 : vector<1x2x16x22xf32> to vector<2x16x22xf32>
    %c56 = arith.constant 56 : index
    %323 = memref.load %arg1[%c56] : memref<98xf32, #tpu.memory_space<smem>>
    %324 = vector.extract_strided_slice %322 {offsets = [0, 0, 0], sizes = [2, 16, 16], strides = [1, 1, 1]} : vector<2x16x22xf32> to vector<2x16x16xf32>
    %325 = vector.broadcast %323 : f32 to vector<2x16x16xf32>
    %326 = arith.mulf %325, %324 : vector<2x16x16xf32>
    %327 = arith.addf %320, %326 : vector<2x16x16xf32>
    %c57 = arith.constant 57 : index
    %328 = memref.load %arg1[%c57] : memref<98xf32, #tpu.memory_space<smem>>
    %329 = vector.extract_strided_slice %322 {offsets = [0, 0, 1], sizes = [2, 16, 16], strides = [1, 1, 1]} : vector<2x16x22xf32> to vector<2x16x16xf32>
    %330 = vector.broadcast %328 : f32 to vector<2x16x16xf32>
    %331 = arith.mulf %330, %329 : vector<2x16x16xf32>
    %332 = arith.addf %315, %331 : vector<2x16x16xf32>
    %c58 = arith.constant 58 : index
    %333 = memref.load %arg1[%c58] : memref<98xf32, #tpu.memory_space<smem>>
    %334 = vector.extract_strided_slice %322 {offsets = [0, 0, 2], sizes = [2, 16, 16], strides = [1, 1, 1]} : vector<2x16x22xf32> to vector<2x16x16xf32>
    %335 = vector.broadcast %333 : f32 to vector<2x16x16xf32>
    %336 = arith.mulf %335, %334 : vector<2x16x16xf32>
    %337 = arith.addf %327, %336 : vector<2x16x16xf32>
    %c59 = arith.constant 59 : index
    %338 = memref.load %arg1[%c59] : memref<98xf32, #tpu.memory_space<smem>>
    %339 = vector.extract_strided_slice %322 {offsets = [0, 0, 3], sizes = [2, 16, 16], strides = [1, 1, 1]} : vector<2x16x22xf32> to vector<2x16x16xf32>
    %340 = vector.broadcast %338 : f32 to vector<2x16x16xf32>
    %341 = arith.mulf %340, %339 : vector<2x16x16xf32>
    %342 = arith.addf %332, %341 : vector<2x16x16xf32>
    %c60 = arith.constant 60 : index
    %343 = memref.load %arg1[%c60] : memref<98xf32, #tpu.memory_space<smem>>
    %344 = vector.extract_strided_slice %322 {offsets = [0, 0, 4], sizes = [2, 16, 16], strides = [1, 1, 1]} : vector<2x16x22xf32> to vector<2x16x16xf32>
    %345 = vector.broadcast %343 : f32 to vector<2x16x16xf32>
    %346 = arith.mulf %345, %344 : vector<2x16x16xf32>
    %347 = arith.addf %337, %346 : vector<2x16x16xf32>
    %c61 = arith.constant 61 : index
    %348 = memref.load %arg1[%c61] : memref<98xf32, #tpu.memory_space<smem>>
    %349 = vector.extract_strided_slice %322 {offsets = [0, 0, 5], sizes = [2, 16, 16], strides = [1, 1, 1]} : vector<2x16x22xf32> to vector<2x16x16xf32>
    %350 = vector.broadcast %348 : f32 to vector<2x16x16xf32>
    %351 = arith.mulf %350, %349 : vector<2x16x16xf32>
    %352 = arith.addf %342, %351 : vector<2x16x16xf32>
    %c62 = arith.constant 62 : index
    %353 = memref.load %arg1[%c62] : memref<98xf32, #tpu.memory_space<smem>>
    %354 = vector.extract_strided_slice %322 {offsets = [0, 0, 6], sizes = [2, 16, 16], strides = [1, 1, 1]} : vector<2x16x22xf32> to vector<2x16x16xf32>
    %355 = vector.broadcast %353 : f32 to vector<2x16x16xf32>
    %356 = arith.mulf %355, %354 : vector<2x16x16xf32>
    %357 = arith.addf %347, %356 : vector<2x16x16xf32>
    %c1_66 = arith.constant 1 : index
    %c0_67 = arith.constant 0 : index
    %c2_68 = arith.constant 2 : index
    %c0_69 = arith.constant 0 : index
    %358 = vector.load %arg6[%c1_66, %c0_67, %c2_68, %c0_69] : memref<2x2x22x22xf32, #tpu.memory_space<vmem>>, vector<1x2x16x22xf32>
    %359 = vector.shape_cast %358 : vector<1x2x16x22xf32> to vector<2x16x22xf32>
    %c63 = arith.constant 63 : index
    %360 = memref.load %arg1[%c63] : memref<98xf32, #tpu.memory_space<smem>>
    %361 = vector.extract_strided_slice %359 {offsets = [0, 0, 0], sizes = [2, 16, 16], strides = [1, 1, 1]} : vector<2x16x22xf32> to vector<2x16x16xf32>
    %362 = vector.broadcast %360 : f32 to vector<2x16x16xf32>
    %363 = arith.mulf %362, %361 : vector<2x16x16xf32>
    %364 = arith.addf %357, %363 : vector<2x16x16xf32>
    %c64 = arith.constant 64 : index
    %365 = memref.load %arg1[%c64] : memref<98xf32, #tpu.memory_space<smem>>
    %366 = vector.extract_strided_slice %359 {offsets = [0, 0, 1], sizes = [2, 16, 16], strides = [1, 1, 1]} : vector<2x16x22xf32> to vector<2x16x16xf32>
    %367 = vector.broadcast %365 : f32 to vector<2x16x16xf32>
    %368 = arith.mulf %367, %366 : vector<2x16x16xf32>
    %369 = arith.addf %352, %368 : vector<2x16x16xf32>
    %c65 = arith.constant 65 : index
    %370 = memref.load %arg1[%c65] : memref<98xf32, #tpu.memory_space<smem>>
    %371 = vector.extract_strided_slice %359 {offsets = [0, 0, 2], sizes = [2, 16, 16], strides = [1, 1, 1]} : vector<2x16x22xf32> to vector<2x16x16xf32>
    %372 = vector.broadcast %370 : f32 to vector<2x16x16xf32>
    %373 = arith.mulf %372, %371 : vector<2x16x16xf32>
    %374 = arith.addf %364, %373 : vector<2x16x16xf32>
    %c66 = arith.constant 66 : index
    %375 = memref.load %arg1[%c66] : memref<98xf32, #tpu.memory_space<smem>>
    %376 = vector.extract_strided_slice %359 {offsets = [0, 0, 3], sizes = [2, 16, 16], strides = [1, 1, 1]} : vector<2x16x22xf32> to vector<2x16x16xf32>
    %377 = vector.broadcast %375 : f32 to vector<2x16x16xf32>
    %378 = arith.mulf %377, %376 : vector<2x16x16xf32>
    %379 = arith.addf %369, %378 : vector<2x16x16xf32>
    %c67 = arith.constant 67 : index
    %380 = memref.load %arg1[%c67] : memref<98xf32, #tpu.memory_space<smem>>
    %381 = vector.extract_strided_slice %359 {offsets = [0, 0, 4], sizes = [2, 16, 16], strides = [1, 1, 1]} : vector<2x16x22xf32> to vector<2x16x16xf32>
    %382 = vector.broadcast %380 : f32 to vector<2x16x16xf32>
    %383 = arith.mulf %382, %381 : vector<2x16x16xf32>
    %384 = arith.addf %374, %383 : vector<2x16x16xf32>
    %c68 = arith.constant 68 : index
    %385 = memref.load %arg1[%c68] : memref<98xf32, #tpu.memory_space<smem>>
    %386 = vector.extract_strided_slice %359 {offsets = [0, 0, 5], sizes = [2, 16, 16], strides = [1, 1, 1]} : vector<2x16x22xf32> to vector<2x16x16xf32>
    %387 = vector.broadcast %385 : f32 to vector<2x16x16xf32>
    %388 = arith.mulf %387, %386 : vector<2x16x16xf32>
    %389 = arith.addf %379, %388 : vector<2x16x16xf32>
    %c69 = arith.constant 69 : index
    %390 = memref.load %arg1[%c69] : memref<98xf32, #tpu.memory_space<smem>>
    %391 = vector.extract_strided_slice %359 {offsets = [0, 0, 6], sizes = [2, 16, 16], strides = [1, 1, 1]} : vector<2x16x22xf32> to vector<2x16x16xf32>
    %392 = vector.broadcast %390 : f32 to vector<2x16x16xf32>
    %393 = arith.mulf %392, %391 : vector<2x16x16xf32>
    %394 = arith.addf %384, %393 : vector<2x16x16xf32>
    %c1_70 = arith.constant 1 : index
    %c0_71 = arith.constant 0 : index
    %c3_72 = arith.constant 3 : index
    %c0_73 = arith.constant 0 : index
    %395 = vector.load %arg6[%c1_70, %c0_71, %c3_72, %c0_73] : memref<2x2x22x22xf32, #tpu.memory_space<vmem>>, vector<1x2x16x22xf32>
    %396 = vector.shape_cast %395 : vector<1x2x16x22xf32> to vector<2x16x22xf32>
    %c70 = arith.constant 70 : index
    %397 = memref.load %arg1[%c70] : memref<98xf32, #tpu.memory_space<smem>>
    %398 = vector.extract_strided_slice %396 {offsets = [0, 0, 0], sizes = [2, 16, 16], strides = [1, 1, 1]} : vector<2x16x22xf32> to vector<2x16x16xf32>
    %399 = vector.broadcast %397 : f32 to vector<2x16x16xf32>
    %400 = arith.mulf %399, %398 : vector<2x16x16xf32>
    %401 = arith.addf %394, %400 : vector<2x16x16xf32>
    %c71 = arith.constant 71 : index
    %402 = memref.load %arg1[%c71] : memref<98xf32, #tpu.memory_space<smem>>
    %403 = vector.extract_strided_slice %396 {offsets = [0, 0, 1], sizes = [2, 16, 16], strides = [1, 1, 1]} : vector<2x16x22xf32> to vector<2x16x16xf32>
    %404 = vector.broadcast %402 : f32 to vector<2x16x16xf32>
    %405 = arith.mulf %404, %403 : vector<2x16x16xf32>
    %406 = arith.addf %389, %405 : vector<2x16x16xf32>
    %c72 = arith.constant 72 : index
    %407 = memref.load %arg1[%c72] : memref<98xf32, #tpu.memory_space<smem>>
    %408 = vector.extract_strided_slice %396 {offsets = [0, 0, 2], sizes = [2, 16, 16], strides = [1, 1, 1]} : vector<2x16x22xf32> to vector<2x16x16xf32>
    %409 = vector.broadcast %407 : f32 to vector<2x16x16xf32>
    %410 = arith.mulf %409, %408 : vector<2x16x16xf32>
    %411 = arith.addf %401, %410 : vector<2x16x16xf32>
    %c73 = arith.constant 73 : index
    %412 = memref.load %arg1[%c73] : memref<98xf32, #tpu.memory_space<smem>>
    %413 = vector.extract_strided_slice %396 {offsets = [0, 0, 3], sizes = [2, 16, 16], strides = [1, 1, 1]} : vector<2x16x22xf32> to vector<2x16x16xf32>
    %414 = vector.broadcast %412 : f32 to vector<2x16x16xf32>
    %415 = arith.mulf %414, %413 : vector<2x16x16xf32>
    %416 = arith.addf %406, %415 : vector<2x16x16xf32>
    %c74 = arith.constant 74 : index
    %417 = memref.load %arg1[%c74] : memref<98xf32, #tpu.memory_space<smem>>
    %418 = vector.extract_strided_slice %396 {offsets = [0, 0, 4], sizes = [2, 16, 16], strides = [1, 1, 1]} : vector<2x16x22xf32> to vector<2x16x16xf32>
    %419 = vector.broadcast %417 : f32 to vector<2x16x16xf32>
    %420 = arith.mulf %419, %418 : vector<2x16x16xf32>
    %421 = arith.addf %411, %420 : vector<2x16x16xf32>
    %c75 = arith.constant 75 : index
    %422 = memref.load %arg1[%c75] : memref<98xf32, #tpu.memory_space<smem>>
    %423 = vector.extract_strided_slice %396 {offsets = [0, 0, 5], sizes = [2, 16, 16], strides = [1, 1, 1]} : vector<2x16x22xf32> to vector<2x16x16xf32>
    %424 = vector.broadcast %422 : f32 to vector<2x16x16xf32>
    %425 = arith.mulf %424, %423 : vector<2x16x16xf32>
    %426 = arith.addf %416, %425 : vector<2x16x16xf32>
    %c76 = arith.constant 76 : index
    %427 = memref.load %arg1[%c76] : memref<98xf32, #tpu.memory_space<smem>>
    %428 = vector.extract_strided_slice %396 {offsets = [0, 0, 6], sizes = [2, 16, 16], strides = [1, 1, 1]} : vector<2x16x22xf32> to vector<2x16x16xf32>
    %429 = vector.broadcast %427 : f32 to vector<2x16x16xf32>
    %430 = arith.mulf %429, %428 : vector<2x16x16xf32>
    %431 = arith.addf %421, %430 : vector<2x16x16xf32>
    %c1_74 = arith.constant 1 : index
    %c0_75 = arith.constant 0 : index
    %c4_76 = arith.constant 4 : index
    %c0_77 = arith.constant 0 : index
    %432 = vector.load %arg6[%c1_74, %c0_75, %c4_76, %c0_77] : memref<2x2x22x22xf32, #tpu.memory_space<vmem>>, vector<1x2x16x22xf32>
    %433 = vector.shape_cast %432 : vector<1x2x16x22xf32> to vector<2x16x22xf32>
    %c77 = arith.constant 77 : index
    %434 = memref.load %arg1[%c77] : memref<98xf32, #tpu.memory_space<smem>>
    %435 = vector.extract_strided_slice %433 {offsets = [0, 0, 0], sizes = [2, 16, 16], strides = [1, 1, 1]} : vector<2x16x22xf32> to vector<2x16x16xf32>
    %436 = vector.broadcast %434 : f32 to vector<2x16x16xf32>
    %437 = arith.mulf %436, %435 : vector<2x16x16xf32>
    %438 = arith.addf %431, %437 : vector<2x16x16xf32>
    %c78 = arith.constant 78 : index
    %439 = memref.load %arg1[%c78] : memref<98xf32, #tpu.memory_space<smem>>
    %440 = vector.extract_strided_slice %433 {offsets = [0, 0, 1], sizes = [2, 16, 16], strides = [1, 1, 1]} : vector<2x16x22xf32> to vector<2x16x16xf32>
    %441 = vector.broadcast %439 : f32 to vector<2x16x16xf32>
    %442 = arith.mulf %441, %440 : vector<2x16x16xf32>
    %443 = arith.addf %426, %442 : vector<2x16x16xf32>
    %c79 = arith.constant 79 : index
    %444 = memref.load %arg1[%c79] : memref<98xf32, #tpu.memory_space<smem>>
    %445 = vector.extract_strided_slice %433 {offsets = [0, 0, 2], sizes = [2, 16, 16], strides = [1, 1, 1]} : vector<2x16x22xf32> to vector<2x16x16xf32>
    %446 = vector.broadcast %444 : f32 to vector<2x16x16xf32>
    %447 = arith.mulf %446, %445 : vector<2x16x16xf32>
    %448 = arith.addf %438, %447 : vector<2x16x16xf32>
    %c80 = arith.constant 80 : index
    %449 = memref.load %arg1[%c80] : memref<98xf32, #tpu.memory_space<smem>>
    %450 = vector.extract_strided_slice %433 {offsets = [0, 0, 3], sizes = [2, 16, 16], strides = [1, 1, 1]} : vector<2x16x22xf32> to vector<2x16x16xf32>
    %451 = vector.broadcast %449 : f32 to vector<2x16x16xf32>
    %452 = arith.mulf %451, %450 : vector<2x16x16xf32>
    %453 = arith.addf %443, %452 : vector<2x16x16xf32>
    %c81 = arith.constant 81 : index
    %454 = memref.load %arg1[%c81] : memref<98xf32, #tpu.memory_space<smem>>
    %455 = vector.extract_strided_slice %433 {offsets = [0, 0, 4], sizes = [2, 16, 16], strides = [1, 1, 1]} : vector<2x16x22xf32> to vector<2x16x16xf32>
    %456 = vector.broadcast %454 : f32 to vector<2x16x16xf32>
    %457 = arith.mulf %456, %455 : vector<2x16x16xf32>
    %458 = arith.addf %448, %457 : vector<2x16x16xf32>
    %c82 = arith.constant 82 : index
    %459 = memref.load %arg1[%c82] : memref<98xf32, #tpu.memory_space<smem>>
    %460 = vector.extract_strided_slice %433 {offsets = [0, 0, 5], sizes = [2, 16, 16], strides = [1, 1, 1]} : vector<2x16x22xf32> to vector<2x16x16xf32>
    %461 = vector.broadcast %459 : f32 to vector<2x16x16xf32>
    %462 = arith.mulf %461, %460 : vector<2x16x16xf32>
    %463 = arith.addf %453, %462 : vector<2x16x16xf32>
    %c83 = arith.constant 83 : index
    %464 = memref.load %arg1[%c83] : memref<98xf32, #tpu.memory_space<smem>>
    %465 = vector.extract_strided_slice %433 {offsets = [0, 0, 6], sizes = [2, 16, 16], strides = [1, 1, 1]} : vector<2x16x22xf32> to vector<2x16x16xf32>
    %466 = vector.broadcast %464 : f32 to vector<2x16x16xf32>
    %467 = arith.mulf %466, %465 : vector<2x16x16xf32>
    %468 = arith.addf %458, %467 : vector<2x16x16xf32>
    %c1_78 = arith.constant 1 : index
    %c0_79 = arith.constant 0 : index
    %c5_80 = arith.constant 5 : index
    %c0_81 = arith.constant 0 : index
    %469 = vector.load %arg6[%c1_78, %c0_79, %c5_80, %c0_81] : memref<2x2x22x22xf32, #tpu.memory_space<vmem>>, vector<1x2x16x22xf32>
    %470 = vector.shape_cast %469 : vector<1x2x16x22xf32> to vector<2x16x22xf32>
    %c84 = arith.constant 84 : index
    %471 = memref.load %arg1[%c84] : memref<98xf32, #tpu.memory_space<smem>>
    %472 = vector.extract_strided_slice %470 {offsets = [0, 0, 0], sizes = [2, 16, 16], strides = [1, 1, 1]} : vector<2x16x22xf32> to vector<2x16x16xf32>
    %473 = vector.broadcast %471 : f32 to vector<2x16x16xf32>
    %474 = arith.mulf %473, %472 : vector<2x16x16xf32>
    %475 = arith.addf %468, %474 : vector<2x16x16xf32>
    %c85 = arith.constant 85 : index
    %476 = memref.load %arg1[%c85] : memref<98xf32, #tpu.memory_space<smem>>
    %477 = vector.extract_strided_slice %470 {offsets = [0, 0, 1], sizes = [2, 16, 16], strides = [1, 1, 1]} : vector<2x16x22xf32> to vector<2x16x16xf32>
    %478 = vector.broadcast %476 : f32 to vector<2x16x16xf32>
    %479 = arith.mulf %478, %477 : vector<2x16x16xf32>
    %480 = arith.addf %463, %479 : vector<2x16x16xf32>
    %c86 = arith.constant 86 : index
    %481 = memref.load %arg1[%c86] : memref<98xf32, #tpu.memory_space<smem>>
    %482 = vector.extract_strided_slice %470 {offsets = [0, 0, 2], sizes = [2, 16, 16], strides = [1, 1, 1]} : vector<2x16x22xf32> to vector<2x16x16xf32>
    %483 = vector.broadcast %481 : f32 to vector<2x16x16xf32>
    %484 = arith.mulf %483, %482 : vector<2x16x16xf32>
    %485 = arith.addf %475, %484 : vector<2x16x16xf32>
    %c87 = arith.constant 87 : index
    %486 = memref.load %arg1[%c87] : memref<98xf32, #tpu.memory_space<smem>>
    %487 = vector.extract_strided_slice %470 {offsets = [0, 0, 3], sizes = [2, 16, 16], strides = [1, 1, 1]} : vector<2x16x22xf32> to vector<2x16x16xf32>
    %488 = vector.broadcast %486 : f32 to vector<2x16x16xf32>
    %489 = arith.mulf %488, %487 : vector<2x16x16xf32>
    %490 = arith.addf %480, %489 : vector<2x16x16xf32>
    %c88 = arith.constant 88 : index
    %491 = memref.load %arg1[%c88] : memref<98xf32, #tpu.memory_space<smem>>
    %492 = vector.extract_strided_slice %470 {offsets = [0, 0, 4], sizes = [2, 16, 16], strides = [1, 1, 1]} : vector<2x16x22xf32> to vector<2x16x16xf32>
    %493 = vector.broadcast %491 : f32 to vector<2x16x16xf32>
    %494 = arith.mulf %493, %492 : vector<2x16x16xf32>
    %495 = arith.addf %485, %494 : vector<2x16x16xf32>
    %c89 = arith.constant 89 : index
    %496 = memref.load %arg1[%c89] : memref<98xf32, #tpu.memory_space<smem>>
    %497 = vector.extract_strided_slice %470 {offsets = [0, 0, 5], sizes = [2, 16, 16], strides = [1, 1, 1]} : vector<2x16x22xf32> to vector<2x16x16xf32>
    %498 = vector.broadcast %496 : f32 to vector<2x16x16xf32>
    %499 = arith.mulf %498, %497 : vector<2x16x16xf32>
    %500 = arith.addf %490, %499 : vector<2x16x16xf32>
    %c90 = arith.constant 90 : index
    %501 = memref.load %arg1[%c90] : memref<98xf32, #tpu.memory_space<smem>>
    %502 = vector.extract_strided_slice %470 {offsets = [0, 0, 6], sizes = [2, 16, 16], strides = [1, 1, 1]} : vector<2x16x22xf32> to vector<2x16x16xf32>
    %503 = vector.broadcast %501 : f32 to vector<2x16x16xf32>
    %504 = arith.mulf %503, %502 : vector<2x16x16xf32>
    %505 = arith.addf %495, %504 : vector<2x16x16xf32>
    %c1_82 = arith.constant 1 : index
    %c0_83 = arith.constant 0 : index
    %c6_84 = arith.constant 6 : index
    %c0_85 = arith.constant 0 : index
    %506 = vector.load %arg6[%c1_82, %c0_83, %c6_84, %c0_85] : memref<2x2x22x22xf32, #tpu.memory_space<vmem>>, vector<1x2x16x22xf32>
    %507 = vector.shape_cast %506 : vector<1x2x16x22xf32> to vector<2x16x22xf32>
    %c91 = arith.constant 91 : index
    %508 = memref.load %arg1[%c91] : memref<98xf32, #tpu.memory_space<smem>>
    %509 = vector.extract_strided_slice %507 {offsets = [0, 0, 0], sizes = [2, 16, 16], strides = [1, 1, 1]} : vector<2x16x22xf32> to vector<2x16x16xf32>
    %510 = vector.broadcast %508 : f32 to vector<2x16x16xf32>
    %511 = arith.mulf %510, %509 : vector<2x16x16xf32>
    %512 = arith.addf %505, %511 : vector<2x16x16xf32>
    %c92 = arith.constant 92 : index
    %513 = memref.load %arg1[%c92] : memref<98xf32, #tpu.memory_space<smem>>
    %514 = vector.extract_strided_slice %507 {offsets = [0, 0, 1], sizes = [2, 16, 16], strides = [1, 1, 1]} : vector<2x16x22xf32> to vector<2x16x16xf32>
    %515 = vector.broadcast %513 : f32 to vector<2x16x16xf32>
    %516 = arith.mulf %515, %514 : vector<2x16x16xf32>
    %517 = arith.addf %500, %516 : vector<2x16x16xf32>
    %c93 = arith.constant 93 : index
    %518 = memref.load %arg1[%c93] : memref<98xf32, #tpu.memory_space<smem>>
    %519 = vector.extract_strided_slice %507 {offsets = [0, 0, 2], sizes = [2, 16, 16], strides = [1, 1, 1]} : vector<2x16x22xf32> to vector<2x16x16xf32>
    %520 = vector.broadcast %518 : f32 to vector<2x16x16xf32>
    %521 = arith.mulf %520, %519 : vector<2x16x16xf32>
    %522 = arith.addf %512, %521 : vector<2x16x16xf32>
    %c94 = arith.constant 94 : index
    %523 = memref.load %arg1[%c94] : memref<98xf32, #tpu.memory_space<smem>>
    %524 = vector.extract_strided_slice %507 {offsets = [0, 0, 3], sizes = [2, 16, 16], strides = [1, 1, 1]} : vector<2x16x22xf32> to vector<2x16x16xf32>
    %525 = vector.broadcast %523 : f32 to vector<2x16x16xf32>
    %526 = arith.mulf %525, %524 : vector<2x16x16xf32>
    %527 = arith.addf %517, %526 : vector<2x16x16xf32>
    %c95 = arith.constant 95 : index
    %528 = memref.load %arg1[%c95] : memref<98xf32, #tpu.memory_space<smem>>
    %529 = vector.extract_strided_slice %507 {offsets = [0, 0, 4], sizes = [2, 16, 16], strides = [1, 1, 1]} : vector<2x16x22xf32> to vector<2x16x16xf32>
    %530 = vector.broadcast %528 : f32 to vector<2x16x16xf32>
    %531 = arith.mulf %530, %529 : vector<2x16x16xf32>
    %532 = arith.addf %522, %531 : vector<2x16x16xf32>
    %c96 = arith.constant 96 : index
    %533 = memref.load %arg1[%c96] : memref<98xf32, #tpu.memory_space<smem>>
    %534 = vector.extract_strided_slice %507 {offsets = [0, 0, 5], sizes = [2, 16, 16], strides = [1, 1, 1]} : vector<2x16x22xf32> to vector<2x16x16xf32>
    %535 = vector.broadcast %533 : f32 to vector<2x16x16xf32>
    %536 = arith.mulf %535, %534 : vector<2x16x16xf32>
    %537 = arith.addf %527, %536 : vector<2x16x16xf32>
    %c97 = arith.constant 97 : index
    %538 = memref.load %arg1[%c97] : memref<98xf32, #tpu.memory_space<smem>>
    %539 = vector.extract_strided_slice %507 {offsets = [0, 0, 6], sizes = [2, 16, 16], strides = [1, 1, 1]} : vector<2x16x22xf32> to vector<2x16x16xf32>
    %540 = vector.broadcast %538 : f32 to vector<2x16x16xf32>
    %541 = arith.mulf %540, %539 : vector<2x16x16xf32>
    %542 = arith.addf %532, %541 : vector<2x16x16xf32>
    %543 = arith.addf %542, %537 : vector<2x16x16xf32>
    %544 = arith.addf %281, %543 : vector<2x16x16xf32>
    %c0_86 = arith.constant 0 : index
    %545 = memref.load %arg2[%c0_86] : memref<1xf32, #tpu.memory_space<smem>>
    %546 = vector.broadcast %545 : f32 to vector<2x16x16xf32>
    %547 = arith.addf %544, %546 : vector<2x16x16xf32>
    %cst_87 = arith.constant 0.000000e+00 : f32
    %548 = vector.broadcast %cst_87 : f32 to vector<2x16x16xf32>
    %549 = arith.subf %548, %547 : vector<2x16x16xf32>
    %550 = math.exp %549 : vector<2x16x16xf32>
    %cst_88 = arith.constant 1.000000e+00 : f32
    %551 = vector.broadcast %cst_88 : f32 to vector<2x16x16xf32>
    %552 = arith.addf %551, %550 : vector<2x16x16xf32>
    %553 = tpu.reciprocal %552 : vector<2x16x16xf32> -> vector<2x16x16xf32>
    %c0_89 = arith.constant 0 : index
    %c0_90 = arith.constant 0 : index
    %c0_91 = arith.constant 0 : index
    %c0_92 = arith.constant 0 : index
    %554 = vector.load %arg5[%c0_89, %c0_90, %c0_91, %c0_92] : memref<2x1x16x16xf32, #tpu.memory_space<vmem>>, vector<2x1x16x16xf32>
    %555 = vector.shape_cast %554 : vector<2x1x16x16xf32> to vector<2x16x16xf32>
    %556 = vector.shape_cast %553 : vector<2x16x16xf32> to vector<2x1x16x16xf32>
    tpu.vector_store %arg5[%c0_89, %c0_90, %c0_91, %c0_92], %556 {strides = array<i32>} : memref<2x1x16x16xf32, #tpu.memory_space<vmem>>, vector<2x1x16x16xf32>,
    return
  }
  func.func @transform_0(%arg0: i32) -> i32 {
    %c0_i32 = arith.constant 0 : i32
    %c0_i32_0 = arith.constant 0 : i32
    return %c0_i32 : i32
  }
  func.func @transform_1(%arg0: i32) -> i32 {
    %c0_i32 = arith.constant 0 : i32
    %c0_i32_0 = arith.constant 0 : i32
    return %c0_i32 : i32
  }
  func.func @transform_2(%arg0: i32) -> (i32, i32, i32, i32) {
    %c0_i32 = arith.constant 0 : i32
    %c0_i32_0 = arith.constant 0 : i32
    %c0_i32_1 = arith.constant 0 : i32
    %c0_i32_2 = arith.constant 0 : i32
    return %arg0, %c0_i32, %c0_i32_0, %c0_i32_1 : i32, i32, i32, i32
  }
  func.func @transform_3(%arg0: i32) -> (i32, i32, i32, i32) {
    %c0_i32 = arith.constant 0 : i32
    %c0_i32_0 = arith.constant 0 : i32
    %c0_i32_1 = arith.constant 0 : i32
    %c0_i32_2 = arith.constant 0 : i32
    return %arg0, %c0_i32, %c0_i32_0, %c0_i32_1 : i32, i32, i32, i32
  }
  func.func @transform_4(%arg0: i32) -> (i32, i32, i32, i32) {
    %c0_i32 = arith.constant 0 : i32
    %c0_i32_0 = arith.constant 0 : i32
    %c0_i32_1 = arith.constant 0 : i32
    %c0_i32_2 = arith.constant 0 : i32
    return %arg0, %c0_i32, %c0_i32_0, %c0_i32_1 : i32, i32, i32, i32
  }
}

</mosaic_0001>

<bundles_post_ra>
// kernel: tpu_custom_call.1
= control target key start
LH: loop header
LB: loop body
LE: loop exit
PB: predicated region body
PF: predicated region fallthrough
CT: control target
= control target key end

     0   :  { %10 = vsyncpa [#allocation7], 0  ;;  %s4247_s0 = inlined_call_operand.vmem [shape: f32[98], index: 0, kind: input, shape index: {}]   ;;  %s4248_s1 = inlined_call_operand.<no memory space> [shape: f32[1], index: 1, kind: input, shape index: {}]   ;;  %s4249_s2 = inlined_call_operand.hbm [shape: f32[2,4,16,16], index: 2, kind: input, shape index: {}]   ;;  %s4250_s3 = inlined_call_operand.hbm [shape: f32[2,4,16,16], index: 3, kind: input, shape index: {}]   ;;  %s4251_s4 = inlined_call_operand.hbm [shape: f32[2,1,16,16], index: 4, kind: output, shape index: {}]  }
   0x1   :  { %11 = vsyncpa [#allocation5], 0 }
   0x2   :  { %12 = vsyncpa [#allocation10], 0 }
   0x3   :  { %13 = vsyncpa [#allocation6], 0  ;;  %s20_s17 = sshll.u32 %s4247_s0, 4  ;;  %s21_s17 = int_to_ptr.vmem [resolvable:$true] %s20_s17 }
   0x4   :  { %s2655_s18 = scalar_lea.vmem %s21_s17, 16  ;;  %p2660_p1 = scmp.lt.s32.totalorder %s21_s17, %s21_s17 }
   0x5   :  { %p2656_p0 = scmp.ne.s32.totalorder %s21_s17, %s2655_s18  ;;  %p2661_p2 = scmp.lt.s32.totalorder %s2655_s18, %s2655_s18 }
   0x7   :  { %p2662_p3 = por %p2661_p2, %p2660_p1 }
   0x9   :  { %p2663_p4 = pnand %p2662_p3, %p2656_p0 }
   0xb   :  { %2666 = shalt.err (!%p2663_p4)
}
   0xc   :  { %s2741_s19 = smov [#allocation4]   ;;  %s2742_s20 = smov [#allocation8]  }
   0xd   :  { %23 = dma.vmem_to_smem %s21_s17, 16, %s2741_s19, [#allocation7]  }
   0xe   :  { %s31_s21 = sshll.u32 %s2742_s20, 4  ;;  %s2667_s24 = scalar_lea.hbm %s4249_s2, 2048  ;;  %s32_s21 = int_to_ptr.vmem [resolvable:$true] %s31_s21 }
   0xf   :  { %p2668_p5 = scmp.ne.s32.totalorder %s4249_s2, %s2667_s24  ;;  %p2671_p6 = scmp.lt.u32.totalorder %s2667_s24, %s4249_s2 }
  0x11   :  { %p2673_p7 = pnand %p2671_p6, %p2668_p5 }
  0x13   :  { %2676 = shalt.err (!%p2673_p7)
}
  0x14   :  { %s2677_s28 = scalar_lea.vmem %s32_s21, 2048  ;;  %p2682_p9 = scmp.lt.s32.totalorder %s32_s21, %s32_s21 }
  0x15   :  { %p2678_p8 = scmp.ne.s32.totalorder %s32_s21, %s2677_s28  ;;  %p2683_p10 = scmp.lt.s32.totalorder %s2677_s28, %s2677_s28 }
  0x17   :  { %p2684_p11 = por %p2683_p10, %p2682_p9 }
  0x19   :  { %p2685_p12 = pnand %p2684_p11, %p2678_p8 }
  0x1b   :  { %2688 = shalt.err (!%p2685_p12)
}
  0x1c   :  { %s2743_s29 = smov 128   ;;  %s2744_s30 = smov 8  }
  0x1d   :  { %37 = dma.hbm_to_vmem [thread:$0]  %s4249_s2, 2048, %s32_s21, [#allocation5], %s2743_s29, %s2743_s29, %s2744_s30  }
  0x1e   :  { %s2745_s7 = smov [#allocation9]   ;;  %s2689_s11 = scalar_lea.hbm %s4250_s3, 2048 }
  0x1f   :  { %s43_s8 = sshll.u32 %s2745_s7, 4  ;;  %p2690_p13 = scmp.ne.s32.totalorder %s4250_s3, %s2689_s11  ;;  %s44_s8 = int_to_ptr.vmem [resolvable:$true] %s43_s8 }
  0x20   :  { %p2693_p0 = scmp.lt.u32.totalorder %s2689_s11, %s4250_s3 }
  0x22   :  { %p2695_p1 = pnand %p2693_p0, %p2690_p13 }
  0x24   :  { %2698 = shalt.err (!%p2695_p1)
}
  0x25   :  { %s2699_s16 = scalar_lea.vmem %s44_s8, 2048  ;;  %p2704_p3 = scmp.lt.s32.totalorder %s44_s8, %s44_s8 }
  0x26   :  { %p2700_p2 = scmp.ne.s32.totalorder %s44_s8, %s2699_s16  ;;  %p2705_p4 = scmp.lt.s32.totalorder %s2699_s16, %s2699_s16 }
  0x28   :  { %p2706_p5 = por %p2705_p4, %p2704_p3 }
  0x2a   :  { %p2707_p6 = pnand %p2706_p5, %p2700_p2 }
  0x2c   :  { %2710 = shalt.err (!%p2707_p6)
}
  0x2d   :  { %49 = dma.hbm_to_vmem [thread:$0]  %s4250_s3, 2048, %s44_s8, [#allocation10], %s2743_s29, %s2743_s29, %s2744_s30  }
  0x2e   :  { %2733 = dma.done.wait [#allocation7], 16  }
  0x2f   :  { %2734 = vsyncadd [#allocation7], 4294967280 }
  0x30   :  { %2735 = dma.done.wait [#allocation5], 2048  }
  0x31   :  { %2736 = vsyncadd [#allocation5], 4294965248 }
  0x32   :  { %2737 = dma.done.wait [#allocation10], 2048  }
  0x33   :  { %2738 = vsyncadd [#allocation10], 4294965248 }
  0x34   :  { %59 = sfence }
  0x35   :  { %v61_v0 = vld [vmem:[#allocation8 + $0x8] sm:$0xff]  ;;  %v63_v1 = vld [vmem:[#allocation8 + $0x18] sm:$0xff]  ;;  %vm92_vm0 = vcmask 130048   ;;  %v60_v23 = vld [vmem:[#allocation8] sm:$0xff]  ;;  %s2746_s3 = smov 3   ;;  %vm222_vm1 = vcmask 179200  }
  0x36   :  { %v65_v2 = vld [vmem:[#allocation8 + $0x28] sm:$0xff]  ;;  %v67_v3 = vld [vmem:[#allocation8 + $0x38] sm:$0xff]  ;;  %v2812_v6 = vsel %vm92_vm0, %v63_v1, 0.0  ;;  %v169_v8 = vsel %vm92_vm0, %v61_v0, -inf  ;;  %v170_v14 = vsel %vm92_vm0, %v63_v1, -inf  ;;  %v62_v24 = vld [vmem:[#allocation8 + $0x10] sm:$0xff] }
  0x37   :  { %v77_v4 = vld [vmem:[#allocation9 + $0x8] sm:$0xff]  ;;  %v79_v5 = vld [vmem:[#allocation9 + $0x18] sm:$0xff]  ;;  %v2815_v7 = vsel %vm92_vm0, %v65_v2, 0.0  ;;  %v2819_v11 = vsel %vm92_vm0, %v67_v3, 0.0  ;;  %v171_v17 = vmax.f32 %v169_v8, %v170_v14  ;;  %v172_v18 = vsel %vm92_vm0, %v65_v2, -inf  ;;  %v64_v29 = vld [vmem:[#allocation8 + $0x20] sm:$0xff] }
  0x38   :  { %v81_v9 = vld [vmem:[#allocation9 + $0x28] sm:$0xff]  ;;  %v83_v10 = vld [vmem:[#allocation9 + $0x38] sm:$0xff]  ;;  %v2822_v12 = vsel %vm92_vm0, %v77_v4, 0.0  ;;  %v2825_v13 = vsel %vm92_vm0, %v79_v5, 0.0  ;;  %v174_v19 = vsel %vm92_vm0, %v67_v3, -inf  ;;  %v197_v20 = vsel %vm92_vm0, %v77_v4, -inf }
  0x39   :  { %v2829_v15 = vsel %vm92_vm0, %v81_v9, 0.0  ;;  %v2832_v16 = vsel %vm92_vm0, %v83_v10, 0.0  ;;  %v198_v21 = vsel %vm92_vm0, %v79_v5, -inf  ;;  %v200_v22 = vsel %vm92_vm0, %v81_v9, -inf  ;;  %v66_v30 = vld [vmem:[#allocation8 + $0x30] sm:$0xff]  ;;  %v76_v31 = vld [vmem:[#allocation9] sm:$0xff] }
  0x3a   :  { %v173_v25 = vmax.f32 %v171_v17, %v172_v18  ;;  %v199_v26 = vmax.f32 %v197_v20, %v198_v21  ;;  %v202_v27 = vsel %vm92_vm0, %v83_v10, -inf  ;;  %v2841_v28 = vsel %vm92_vm0, %v61_v0, 0.0  ;;  %v78_v32 = vld [vmem:[#allocation9 + $0x10] sm:$0xff]  ;;  %v80_v33 = vld [vmem:[#allocation9 + $0x20] sm:$0xff]  ;;  %v2867_v47 = vld [vmem:[#allocation8 + $0x48] sm:$0xff]  ;;  %s2528_s18 = sld [smem:[#allocation4 + $0x2]] }
  0x3b   :  { %v2844_v34 = vsel %vm92_vm0, %v62_v24, 0.0  ;;  %v2847_v35 = vsel %vm92_vm0, %v64_v29, 0.0  ;;  %v2850_v36 = vsel %vm92_vm0, %v66_v30, 0.0  ;;  %v2853_v37 = vsel %vm92_vm0, %v76_v31, 0.0  ;;  %v82_v40 = vld [vmem:[#allocation9 + $0x30] sm:$0xff]  ;;  %v2869_v48 = vld [vmem:[#allocation8 + $0x58] sm:$0xff] }
  0x3c   :  { %v175_v38 = vmax.f32 %v173_v25, %v174_v19  ;;  %v201_v39 = vmax.f32 %v199_v26, %v200_v22  ;;  %v2856_v41 = vsel %vm92_vm0, %v78_v32, 0.0  ;;  %v2859_v42 = vsel %vm92_vm0, %v80_v33, 0.0  ;;  %v2873_v53 = vld [vmem:[#allocation8 + $0x68] sm:$0xff]  ;;  %v2875_v54 = vld [vmem:[#allocation8 + $0x78] sm:$0xff]  ;;  %v68_v3 = vld [vmem:[#allocation8 + $0x40] sm:$0xff]  ;;  %s2529_s19 = sld [smem:[#allocation4 + $0x3]] }
  0x3d   :  { %v2862_v43 = vsel %vm92_vm0, %v82_v40, 0.0  ;;  %v162_v44 = vsel %vm92_vm0, %v60_v23, -inf  ;;  %v163_v45 = vsel %vm92_vm0, %v62_v24, -inf  ;;  %v165_v46 = vsel %vm92_vm0, %v64_v29, -inf  ;;  %v2877_v55 = vld [vmem:[#allocation9 + $0x48] sm:$0xff]  ;;  %v2885_v60 = vld [vmem:[#allocation9 + $0x58] sm:$0xff] }
  0x3e   :  { %v203_v49 = vmax.f32 %v201_v39, %v202_v27  ;;  %v164_v50 = vmax.f32 %v162_v44, %v163_v45  ;;  %v167_v51 = vsel %vm92_vm0, %v66_v30, -inf  ;;  %v190_v52 = vsel %vm92_vm0, %v76_v31, -inf  ;;  %v2887_v0 = vld [vmem:[#allocation9 + $0x68] sm:$0xff]  ;;  %v2889_v1 = vld [vmem:[#allocation9 + $0x78] sm:$0xff]  ;;  %v70_v10 = vld [vmem:[#allocation8 + $0x50] sm:$0xff]  ;;  %s2748_s20 = smov 126  }
  0x3f   :  { %v191_v56 = vsel %vm92_vm0, %v78_v32, -inf  ;;  %v193_v57 = vsel %vm92_vm0, %v80_v33, -inf  ;;  %v195_v58 = vsel %vm92_vm0, %v82_v40, -inf  ;;  %v2883_v59 = vsel %vm92_vm0, %v60_v23, 0.0  ;;  %v72_v14 = vld [vmem:[#allocation8 + $0x60] sm:$0xff]  ;;  %v74_v21 = vld [vmem:[#allocation8 + $0x70] sm:$0xff] }
  0x40   :  { %v219_v61 = vadd.f32 %v203_v49, %v175_v38  ;;  %v166_v62 = vmax.f32 %v164_v50, %v165_v46  ;;  %v192_v63 = vmax.f32 %v190_v52, %v191_v56  ;;  %v183_v2 = vsel %vm92_vm0, %v2867_v47, -inf  ;;  %v84_v22 = vld [vmem:[#allocation9 + $0x40] sm:$0xff]  ;;  %v86_v26 = vld [vmem:[#allocation9 + $0x50] sm:$0xff]  ;;  %s2530_s21 = sld [smem:[#allocation4 + $0x4]]  ;;  %s2531_s22 = sld [smem:[#allocation4 + $0x5]] }
  0x41   :  { %v184_v4 = vsel %vm92_vm0, %v2869_v48, -inf  ;;  %v186_v5 = vsel %vm92_vm0, %v2873_v53, -inf  ;;  %v188_v8 = vsel %vm92_vm0, %v2875_v54, -inf  ;;  %v211_v9 = vsel %vm92_vm0, %v2877_v55, -inf  ;;  %v88_v27 = vld [vmem:[#allocation9 + $0x60] sm:$0xff]  ;;  %v90_v32 = vld [vmem:[#allocation9 + $0x70] sm:$0xff] }
  0x42   :  { %263 = vrot.lane.b32.xlu1 %v219_v61, %s2746_s3  ;;  %v168_v17 = vmax.f32 %v166_v62, %v167_v51  ;;  %v194_v18 = vmax.f32 %v192_v63, %v193_v57  ;;  %v185_v19 = vmax.f32 %v183_v2, %v184_v4  ;;  %v212_v20 = vsel %vm92_vm0, %v2885_v60, -inf  ;;  %s2749_s23 = smov 124   ;;  %s2532_s24 = sld [smem:[#allocation4 + $0x6]] }
  0x43   :  { %v213_v23 = vmax.f32 %v211_v9, %v212_v20  ;;  %v214_v24 = vsel %vm92_vm0, %v2887_v0, -inf  ;;  %v216_v25 = vsel %vm92_vm0, %v2889_v1, -inf  ;;  %v176_v29 = vsel %vm92_vm0, %v68_v3, -inf  ;;  %s2535_s25 = sld [smem:[#allocation4 + $0x9]]  ;;  %s2750_s26 = smov 122  }
  0x44   :  { %v196_v30 = vmax.f32 %v194_v18, %v195_v58  ;;  %v187_v31 = vmax.f32 %v185_v19, %v186_v5  ;;  %v177_v33 = vsel %vm92_vm0, %v70_v10, -inf  ;;  %v179_v38 = vsel %vm92_vm0, %v72_v14, -inf  ;;  %s2536_s0 = sld [smem:[#allocation4 + $0xa]]  ;;  %s2537_s27 = sld [smem:[#allocation4 + $0xb]] }
  0x45   :  { %v215_v39 = vmax.f32 %v213_v23, %v214_v24  ;;  %v178_v40 = vmax.f32 %v176_v29, %v177_v33  ;;  %v181_v44 = vsel %vm92_vm0, %v74_v21, -inf  ;;  %v204_v45 = vsel %vm92_vm0, %v84_v22, -inf  ;;  %s2538_s28 = sld [smem:[#allocation4 + $0xc]]  ;;  %s2539_s5 = sld [smem:[#allocation4 + $0xd]] }
  0x46   :  { %v218_v46 = vadd.f32 %v196_v30, %v168_v17  ;;  %v189_v49 = vmax.f32 %v187_v31, %v188_v8  ;;  %v205_v50 = vsel %vm92_vm0, %v86_v26, -inf  ;;  %v207_v51 = vsel %vm92_vm0, %v88_v27, -inf  ;;  %s2542_s6 = sld [smem:[#allocation4 + $0x10]]  ;;  %s2543_s7 = sld [smem:[#allocation4 + $0x11]] }
  0x47   :  { %v217_v52 = vmax.f32 %v215_v39, %v216_v25  ;;  %v180_v56 = vmax.f32 %v178_v40, %v179_v38  ;;  %v206_v57 = vmax.f32 %v204_v45, %v205_v50  ;;  %v209_v58 = vsel %vm92_vm0, %v90_v32, -inf  ;;  %s2544_s8 = sld [smem:[#allocation4 + $0x12]]  ;;  %s2545_s9 = sld [smem:[#allocation4 + $0x13]] }
  0x48   :  { %261 = vrot.lane.b32.xlu0 %v218_v46, %s2746_s3  ;;  %v107_v61 = vsel %vm92_vm0, %v68_v3, 0.0  ;;  %v108_v62 = vsel %vm92_vm0, %v70_v10, 0.0  ;;  %v110_v63 = vsel %vm92_vm0, %v72_v14, 0.0  ;;  %v112_v2 = vsel %vm92_vm0, %v74_v21, 0.0  ;;  %s2546_s10 = sld [smem:[#allocation4 + $0x14]]  ;;  %s2549_s11 = sld [smem:[#allocation4 + $0x17]] }
  0x49   :  { %v221_v4 = vadd.f32 %v217_v52, %v189_v49  ;;  %v182_v5 = vmax.f32 %v180_v56, %v181_v44  ;;  %v208_v8 = vmax.f32 %v206_v57, %v207_v51  ;;  %v109_v9 = vadd.f32 %v108_v62, %v107_v61  ;;  %s2550_s12 = sld [smem:[#allocation4 + $0x18]]  ;;  %s2551_s13 = sld [smem:[#allocation4 + $0x19]] }
  0x4a   :  { %v140_v17 = vsel %vm92_vm0, %v84_v22, 0.0  ;;  %v141_v18 = vsel %vm92_vm0, %v86_v26, 0.0  ;;  %v143_v19 = vsel %vm92_vm0, %v88_v27, 0.0  ;;  %v145_v20 = vsel %vm92_vm0, %v90_v32, 0.0  ;;  %s2527_s14 = sld [smem:[#allocation4 + $0x1]]  ;;  %s2534_s15 = sld [smem:[#allocation4 + $0x8]] }
  0x4b   :  { %267 = vrot.lane.b32.xlu1 %v221_v4, %s2746_s3  ;;  %v210_v3 = vmax.f32 %v208_v8, %v209_v58  ;;  %v111_v10 = vadd.f32 %v110_v63, %v109_v9  ;;  %v142_v14 = vadd.f32 %v141_v18, %v140_v17  ;;  %v95_v21 = vadd.f32 %v2844_v34, %v2883_v59  ;;  %s282_s16 = sld [smem:[#allocation4]]  ;;  %s2552_s2 = sld [smem:[#allocation4 + $0x1a]] }
  0x4c   :  { %v128_v23 = vadd.f32 %v2856_v41, %v2853_v37  ;;  %v114_v22 = vsel %vm92_vm0, %v2867_v47, 0.0  ;;  %v115_v24 = vsel %vm92_vm0, %v2869_v48, 0.0  ;;  %v117_v25 = vsel %vm92_vm0, %v2873_v53, 0.0  ;;  %s2533_s17 = sld [smem:[#allocation4 + $0x7]] }
  0x4d   :  { %v220_v26 = vadd.f32 %v210_v3, %v182_v5  ;;  %v113_v27 = vadd.f32 %v112_v2, %v111_v10  ;;  %v144_v29 = vadd.f32 %v143_v19, %v142_v14  ;;  %v97_v30 = vadd.f32 %v2847_v35, %v95_v21 }
  0x4e   :  { %v130_v31 = vadd.f32 %v2859_v42, %v128_v23  ;;  %v116_v34 = vadd.f32 %v115_v24, %v114_v22  ;;  %v119_v37 = vsel %vm92_vm0, %v2875_v54, 0.0  ;;  %v147_v41 = vsel %vm92_vm0, %v2877_v55, 0.0 }
  0x4f   :  { %265 = vrot.lane.b32.xlu0 %v220_v26, %s2746_s3  ;;  %v124_v47 = vmul.f32 0.25, %v113_v27  ;;  %v146_v48 = vadd.f32 %v145_v20, %v144_v29  ;;  %v99_v53 = vadd.f32 %v2850_v36, %v97_v30  ;;  %v148_v59 = vsel %vm92_vm0, %v2885_v60, 0.0 }
  0x50   :  { %v132_v35 = vadd.f32 %v2862_v43, %v130_v31  ;;  %v118_v32 = vadd.f32 %v117_v25, %v116_v34  ;;  %v149_v42 = vadd.f32 %v148_v59, %v147_v41  ;;  %v150_v33 = vsel %vm92_vm0, %v2887_v0, 0.0 }
  0x51   :  { %v156_v54 = vmul.f32 0.25, %v146_v48  ;;  %v122_v38 = vmul.f32 0.25, %v99_v53  ;;  %v152_v55 = vsel %vm92_vm0, %v2889_v1, 0.0  ;;  %v102_v39 = vadd.f32 %v2812_v6, %v2841_v28 }
  0x52   :  { %v154_v40 = vmul.f32 0.25, %v132_v35  ;;  %v120_v36 = vadd.f32 %v119_v37, %v118_v32  ;;  %v151_v44 = vadd.f32 %v150_v33, %v149_v42  ;;  %v135_v60 = vadd.f32 %v2825_v13, %v2822_v12 }
  0x53   :  { %v160_v43 = vadd.f32 %v156_v54, %v124_v47  ;;  %v104_v45 = vadd.f32 %v2815_v7, %v102_v39  ;;  %vm225_vm2 = vcmask 177152   ;;  %v2747_v51 = vmov 0.0  }
  0x54   :  { %v158_v46 = vadd.f32 %v154_v40, %v122_v38  ;;  %v125_v0 = vmul.f32 0.25, %v120_v36  ;;  %v153_v49 = vadd.f32 %v152_v55, %v151_v44  ;;  %v137_v50 = vadd.f32 %v2829_v15, %v135_v60  ;;  %231 = vst.msk [vmem:[#allocation2 + $0x38] sm:$0xff] %vm222_vm1, %v2747_v51  ;;  %223 = vst.msk [vmem:[#allocation2] sm:$0xff] %vm222_vm1, %v2747_v51 }
  0x55   :  { %232 = vst.msk [vmem:[#allocation2 + $0x40] sm:$0x3f] %vm225_vm2, %v2747_v51  ;;  %226 = vst.msk [vmem:[#allocation2 + $0x10] sm:$0x3f] %vm225_vm2, %v2747_v51  ;;  %244 = vrot.lane.b32.xlu1 %v160_v43, %s2746_s3  ;;  %v106_v6 = vadd.f32 %v2819_v11, %v104_v45  ;;  %vm252_vm3 = vcmask 154648   ;;  %v303_v63 = vstv %s2528_s18  ;;  %v329_v17 = vstv %s2529_s19  ;;  %s3190_s18 = sld [smem:[#allocation4 + $0x1e]] }
  0x56   :  { %224 = vst.msk [vmem:[#allocation2 + $0x8] sm:$0xff] %vm222_vm1, %v2747_v51  ;;  %227 = vst.msk [vmem:[#allocation2 + $0x18] sm:$0xff] %vm222_vm1, %v2747_v51  ;;  %240 = vrot.lane.b32.xlu0 %v158_v46, %s2746_s3  ;;  %v157_v7 = vmul.f32 0.25, %v153_v49  ;;  %v139_v12 = vadd.f32 %v2832_v16, %v137_v50  ;;  %v355_v14 = vstv %s2530_s21  ;;  %v381_v25 = vstv %s2531_s22  ;;  %s2557_s19 = sld [smem:[#allocation4 + $0x1f]]  ;;  %s2558_s21 = sld [smem:[#allocation4 + $0x20]] }
  0x57   :  { %228 = vst.msk [vmem:[#allocation2 + $0x20] sm:$0xff] %vm222_vm1, %v2747_v51  ;;  %230 = vst.msk [vmem:[#allocation2 + $0x30] sm:$0xff] %vm222_vm1, %v2747_v51  ;;  %v123_v13 = vmul.f32 0.25, %v106_v6  ;;  %v407_v31 = vstv %s2532_s24  ;;  %v457_v53 = vstv %s2535_s25  ;;  %v483_v38 = vstv %s2536_s0  ;;  %s2541_s22 = sld [smem:[#allocation4 + $0xf]]  ;;  %s2559_s24 = sld [smem:[#allocation4 + $0x21]] }
  0x58   :  { %229 = vst.msk [vmem:[#allocation2 + $0x28] sm:$0x3f] %vm225_vm2, %v2747_v51  ;;  %235 = vst.msk [vmem:[#allocation2 + $0x58] sm:$0x3f] %vm225_vm2, %v2747_v51  ;;  %v161_v15 = vadd.f32 %v157_v7, %v125_v0  ;;  %v155_v28 = vmul.f32 0.25, %v139_v12  ;;  %v509_v60 = vstv %s2537_s27  ;;  %v535_v49 = vstv %s2538_s28  ;;  %s2540_s25 = sld [smem:[#allocation4 + $0xe]] }
  0x59   :  { %233 = vst.msk [vmem:[#allocation2 + $0x48] sm:$0xff] %vm222_vm1, %v2747_v51  ;;  %234 = vst.msk [vmem:[#allocation2 + $0x50] sm:$0xff] %vm222_vm1, %v2747_v51  ;;  %v561_v12 = vstv %s2539_s5  ;;  %s2560_s0 = sld [smem:[#allocation4 + $0x22]]  ;;  %s2563_s27 = sld [smem:[#allocation4 + $0x25]] }
  0x5a   :  { %246 = vrot.lane.b32.xlu1 %v161_v15, %s2746_s3  ;;  %v159_v1 = vadd.f32 %v155_v28, %v123_v13  ;;  %s2564_s28 = sld [smem:[#allocation4 + $0x26]]  ;;  %s2565_s5 = sld [smem:[#allocation4 + $0x27]] }
  0x5c   :  { %242 = vrot.lane.b32.xlu0 %v159_v1, %s2746_s3  ;;  %s3163_s3 = sld [smem:[#allocation4 + $0x1b]] }
  0xb4   :  { %v264_v52 = vpop.permute.xlu1 %263 }
  0xb5   :  { %275 = vst.msk [vmem:[#allocation2 + $0x3b] sm:$0xff] %vm252_vm3, %v264_v52 }
  0xba   :  { %v262_v56 = vpop.permute.xlu0 %261 }
  0xbb   :  { %274 = vst.msk [vmem:[#allocation2 + $0x33] sm:$0xff] %vm252_vm3, %v262_v56  ;;  %v611_v56 = vstv %s2542_s6  ;;  %s2548_s6 = sld [smem:[#allocation4 + $0x16]] }
  0xbd   :  { %v268_v11 = vpop.permute.xlu1 %267 }
  0xbe   :  { %277 = vst.msk [vmem:[#allocation2 + $0x53] sm:$0xff] %vm252_vm3, %v268_v11 }
  0xc1   :  { %v266_v57 = vpop.permute.xlu0 %265 }
  0xc2   :  { %276 = vst.msk [vmem:[#allocation2 + $0x4b] sm:$0xff] %vm252_vm3, %v266_v57 }
  0xc7   :  { %v245_v16 = vpop.permute.xlu1 %244 }
  0xc8   :  { %255 = vst.msk [vmem:[#allocation2 + $0x1b] sm:$0xff] %vm252_vm3, %v245_v16  ;;  %v241_v58 = vpop.permute.xlu0 %240 }
  0xc9   :  { %253 = vst.msk [vmem:[#allocation2 + $0x3] sm:$0xff] %vm252_vm3, %v241_v58 }
  0xcc   :  { %v247_v61 = vpop.permute.xlu1 %246 }
  0xcd   :  { %256 = vst.msk [vmem:[#allocation2 + $0x23] sm:$0xff] %vm252_vm3, %v247_v61 }
  0xce   :  { %v243_v62 = vpop.permute.xlu0 %242 }
  0xcf   :  { %254 = vst.msk [vmem:[#allocation2 + $0xb] sm:$0xff] %vm252_vm3, %v243_v62  ;;  %v2985_v4 = vld [vmem:[#allocation2 + $0x18] sm:$0xff] }
  0xd0   :  { %v2983_v2 = vld [vmem:[#allocation2] sm:$0xff]  ;;  %v306_v8 = vmul.f32 %v303_v63, %v2985_v4  ;;  %v332_v10 = vmul.f32 %v329_v17, %v2985_v4  ;;  %v358_v24 = vmul.f32 %v355_v14, %v2985_v4  ;;  %v384_v30 = vmul.f32 %v381_v25, %v2985_v4 }
  0xd1   :  { %v304_v5 = vmul.f32 %v303_v63, %v2983_v2  ;;  %v330_v20 = vmul.f32 %v329_v17, %v2983_v2  ;;  %v356_v23 = vmul.f32 %v355_v14, %v2983_v2  ;;  %v382_v27 = vmul.f32 %v381_v25, %v2983_v2  ;;  %v3026_v48 = vld [vmem:[#allocation2 + $0x1] sm:$0xff]  ;;  %v3032_v32 = vld [vmem:[#allocation2 + $0x19] sm:$0xff] }
  0xd2   :  { %v408_v37 = vmul.f32 %v407_v31, %v2983_v2  ;;  %v410_v47 = vmul.f32 %v407_v31, %v2985_v4  ;;  %v458_v35 = vmul.f32 %v457_v53, %v3026_v48  ;;  %v460_v54 = vmul.f32 %v457_v53, %v3032_v32  ;;  %v3074_v52 = vld [vmem:[#allocation2 + $0x2] sm:$0xff]  ;;  %v3080_v16 = vld [vmem:[#allocation2 + $0x1a] sm:$0xff] }
  0xd3   :  { %312 = vrot.lane.b32.xlu0 %v304_v5, %s2748_s20  ;;  %v484_v40 = vmul.f32 %v483_v38, %v3026_v48  ;;  %v486_v44 = vmul.f32 %v483_v38, %v3032_v32  ;;  %v510_v45 = vmul.f32 %v509_v60, %v3026_v48  ;;  %v512_v0 = vmul.f32 %v509_v60, %v3032_v32 }
  0xd4   :  { %v2994_v19 = vld [vmem:[#allocation2 + $0x20] sm:$0xff]  ;;  %v536_v51 = vmul.f32 %v535_v49, %v3026_v48  ;;  %v538_v7 = vmul.f32 %v535_v49, %v3032_v32  ;;  %v562_v15 = vmul.f32 %v561_v12, %v3026_v48  ;;  %v564_v1 = vmul.f32 %v561_v12, %v3032_v32 }
  0xd5   :  { %v307_v3 = vmul.f32 %v303_v63, %v2994_v19  ;;  %v333_v22 = vmul.f32 %v329_v17, %v2994_v19  ;;  %v359_v29 = vmul.f32 %v355_v14, %v2994_v19  ;;  %v385_v41 = vmul.f32 %v381_v25, %v2994_v19  ;;  %v3042_v39 = vld [vmem:[#allocation2 + $0x21] sm:$0xff] }
  0xd6   :  { %v2990_v9 = vld [vmem:[#allocation2 + $0x8] sm:$0xff]  ;;  %v411_v42 = vmul.f32 %v407_v31, %v2994_v19  ;;  %v461_v36 = vmul.f32 %v457_v53, %v3042_v39  ;;  %v487_v46 = vmul.f32 %v483_v38, %v3042_v39  ;;  %v513_v6 = vmul.f32 %v509_v60, %v3042_v39 }
  0xd7   :  { %316 = vrot.lane.b32.xlu0 %v306_v8, %s2748_s20  ;;  %v305_v18 = vmul.f32 %v303_v63, %v2990_v9  ;;  %v331_v21 = vmul.f32 %v329_v17, %v2990_v9  ;;  %v357_v26 = vmul.f32 %v355_v14, %v2990_v9  ;;  %v383_v34 = vmul.f32 %v381_v25, %v2990_v9  ;;  %v3036_v33 = vld [vmem:[#allocation2 + $0x9] sm:$0xff] }
  0xd8   :  { %v409_v59 = vmul.f32 %v407_v31, %v2990_v9  ;;  %v459_v55 = vmul.f32 %v457_v53, %v3036_v33  ;;  %v485_v43 = vmul.f32 %v483_v38, %v3036_v33  ;;  %v511_v50 = vmul.f32 %v509_v60, %v3036_v33  ;;  %v3084_v61 = vld [vmem:[#allocation2 + $0xa] sm:$0xff]  ;;  %v3090_v8 = vld [vmem:[#allocation2 + $0x22] sm:$0xff] }
  0xd9   :  { %314 = vrot.lane.b32.xlu1 %v305_v18, %s2748_s20  ;;  %v537_v13 = vmul.f32 %v535_v49, %v3036_v33  ;;  %v539_v28 = vmul.f32 %v535_v49, %v3042_v39  ;;  %v563_v11 = vmul.f32 %v561_v12, %v3036_v33  ;;  %v612_v57 = vmul.f32 %v611_v56, %v3074_v52 }
  0xda   :  { %v565_v58 = vmul.f32 %v561_v12, %v3042_v39  ;;  %v614_v62 = vmul.f32 %v611_v56, %v3080_v16  ;;  %v637_v63 = vstv %s2543_s7  ;;  %v613_v5 = vmul.f32 %v611_v56, %v3084_v61  ;;  %s2566_s7 = sld [smem:[#allocation4 + $0x28]] }
  0xdb   :  { %338 = vrot.lane.b32.xlu0 %v330_v20, %s2748_s20  ;;  %v638_v17 = vmul.f32 %v637_v63, %v3074_v52  ;;  %v615_v18 = vmul.f32 %v611_v56, %v3090_v8  ;;  %v640_v20 = vmul.f32 %v637_v63, %v3080_v16  ;;  %v765_v53 = vstv %s2549_s11  ;;  %s2571_s11 = sld [smem:[#allocation4 + $0x2d]] }
  0xdc   :  { %v791_v60 = vstv %s2550_s12  ;;  %v817_v12 = vstv %s2551_s13  ;;  %s2572_s12 = sld [smem:[#allocation4 + $0x2e]]  ;;  %s2555_s13 = sld [smem:[#allocation4 + $0x1d]] }
  0xdd   :  { %318 = vrot.lane.b32.xlu1 %v307_v3, %s2748_s20  ;;  %v663_v3 = vstv %s2544_s8  ;;  %s2547_s8 = sld [smem:[#allocation4 + $0x15]] }
  0xde   :  { %v664_v14 = vmul.f32 %v663_v3, %v3074_v52 }
  0xdf   :  { %342 = vrot.lane.b32.xlu0 %v332_v10, %s2748_s20  ;;  %v639_v10 = vmul.f32 %v637_v63, %v3084_v61 }
  0xe1   :  { %340 = vrot.lane.b32.xlu1 %v331_v21, %s2748_s20  ;;  %v641_v21 = vmul.f32 %v637_v63, %v3090_v8 }
  0xe3   :  { %364 = vrot.lane.b32.xlu0 %v356_v23, %s2749_s23  ;;  %v666_v23 = vmul.f32 %v663_v3, %v3080_v16 }
  0xe5   :  { %344 = vrot.lane.b32.xlu1 %v333_v22, %s2748_s20  ;;  %v689_v22 = vstv %s2545_s9  ;;  %s2567_s9 = sld [smem:[#allocation4 + $0x29]] }
  0xe6   :  { %v690_v25 = vmul.f32 %v689_v22, %v3074_v52 }
  0xe7   :  { %368 = vrot.lane.b32.xlu0 %v358_v24, %s2749_s23  ;;  %v665_v24 = vmul.f32 %v663_v3, %v3084_v61 }
  0xe9   :  { %366 = vrot.lane.b32.xlu1 %v357_v26, %s2749_s23  ;;  %v667_v26 = vmul.f32 %v663_v3, %v3090_v8 }
  0xeb   :  { %390 = vrot.lane.b32.xlu0 %v382_v27, %s2749_s23  ;;  %v692_v27 = vmul.f32 %v689_v22, %v3080_v16 }
  0xed   :  { %370 = vrot.lane.b32.xlu1 %v359_v29, %s2749_s23  ;;  %v715_v29 = vstv %s2546_s10  ;;  %s2570_s10 = sld [smem:[#allocation4 + $0x2c]] }
  0xee   :  { %v716_v31 = vmul.f32 %v715_v29, %v3074_v52 }
  0xef   :  { %394 = vrot.lane.b32.xlu0 %v384_v30, %s2749_s23  ;;  %v691_v30 = vmul.f32 %v689_v22, %v3084_v61 }
  0xf1   :  { %392 = vrot.lane.b32.xlu1 %v383_v34, %s2749_s23  ;;  %v693_v34 = vmul.f32 %v689_v22, %v3090_v8 }
  0xf3   :  { %416 = vrot.lane.b32.xlu0 %v408_v37, %s2750_s26 }
  0xf5   :  { %396 = vrot.lane.b32.xlu1 %v385_v41, %s2749_s23  ;;  %v718_v41 = vmul.f32 %v715_v29, %v3080_v16 }
  0xf7   :  { %420 = vrot.lane.b32.xlu0 %v410_v47, %s2750_s26  ;;  %v3124_v47 = vld [vmem:[#allocation2 + $0x3] sm:$0xff] }
  0xf8   :  { %v792_v49 = vmul.f32 %v791_v60, %v3124_v47  ;;  %v818_v56 = vmul.f32 %v817_v12, %v3124_v47 }
  0xf9   :  { %418 = vrot.lane.b32.xlu1 %v409_v59, %s2750_s26  ;;  %v717_v59 = vmul.f32 %v715_v29, %v3084_v61 }
  0xfb   :  { %466 = vrot.lane.b32.xlu0 %v458_v35, %s2748_s20 }
  0xfd   :  { %422 = vrot.lane.b32.xlu1 %v411_v42, %s2750_s26  ;;  %v766_v42 = vmul.f32 %v765_v53, %v3124_v47 }
  0xff   :  { %470 = vrot.lane.b32.xlu0 %v460_v54, %s2748_s20  ;;  %v3132_v54 = vld [vmem:[#allocation2 + $0x1b] sm:$0xff] }
 0x101   :  { %468 = vrot.lane.b32.xlu1 %v459_v55, %s2748_s20  ;;  %v719_v55 = vmul.f32 %v715_v29, %v3090_v8 }
 0x103   :  { %492 = vrot.lane.b32.xlu0 %v484_v40, %s2748_s20  ;;  %v3138_v40 = vld [vmem:[#allocation2 + $0xb] sm:$0xff] }
 0x105   :  { %472 = vrot.lane.b32.xlu1 %v461_v36, %s2748_s20 }
 0x107   :  { %496 = vrot.lane.b32.xlu0 %v486_v44, %s2748_s20  ;;  %v768_v44 = vmul.f32 %v765_v53, %v3132_v54 }
 0x109   :  { %494 = vrot.lane.b32.xlu1 %v485_v43, %s2748_s20 }
 0x10b   :  { %518 = vrot.lane.b32.xlu0 %v510_v45, %s2749_s23  ;;  %v767_v45 = vmul.f32 %v765_v53, %v3138_v40 }
 0x10d   :  { %498 = vrot.lane.b32.xlu1 %v487_v46, %s2748_s20  ;;  %v3146_v46 = vld [vmem:[#allocation2 + $0x23] sm:$0xff] }
 0x10f   :  { %522 = vrot.lane.b32.xlu0 %v512_v0, %s2749_s23 }
 0x111   :  { %520 = vrot.lane.b32.xlu1 %v511_v50, %s2749_s23 }
 0x113   :  { %544 = vrot.lane.b32.xlu0 %v536_v51, %s2749_s23  ;;  %v769_v51 = vmul.f32 %v765_v53, %v3146_v46 }
 0x115   :  { %524 = vrot.lane.b32.xlu1 %v513_v6, %s2749_s23 }
 0x117   :  { %548 = vrot.lane.b32.xlu0 %v538_v7, %s2749_s23  ;;  %v794_v7 = vmul.f32 %v791_v60, %v3132_v54 }
 0x119   :  { %546 = vrot.lane.b32.xlu1 %v537_v13, %s2749_s23  ;;  %v293_v13 = vstv %s2527_s14  ;;  %s2573_s14 = sld [smem:[#allocation4 + $0x2f]] }
 0x11b   :  { %570 = vrot.lane.b32.xlu0 %v562_v15, %s2750_s26 }
 0x11d   :  { %550 = vrot.lane.b32.xlu1 %v539_v28, %s2749_s23  ;;  %v793_v28 = vmul.f32 %v791_v60, %v3138_v40 }
 0x11f   :  { %574 = vrot.lane.b32.xlu0 %v564_v1, %s2750_s26 }
 0x121   :  { %572 = vrot.lane.b32.xlu1 %v563_v11, %s2750_s26  ;;  %v294_v11 = vmul.f32 %v293_v13, %v2983_v2 }
 0x123   :  { %620 = vrot.lane.b32.xlu0 %v612_v57, %s2748_s20 }
 0x125   :  { %576 = vrot.lane.b32.xlu1 %v565_v58, %s2750_s26  ;;  %v795_v58 = vmul.f32 %v791_v60, %v3146_v46 }
 0x127   :  { %624 = vrot.lane.b32.xlu0 %v614_v62, %s2748_s20  ;;  %v447_v62 = vstv %s2534_s15  ;;  %s2554_s15 = sld [smem:[#allocation4 + $0x1c]] }
 0x128   :  { %v450_v53 = vmul.f32 %v447_v62, %v3032_v32  ;;  %v449_v60 = vmul.f32 %v447_v62, %v3036_v33 }
 0x129   :  { %622 = vrot.lane.b32.xlu1 %v613_v5, %s2748_s20  ;;  %v283_v5 = vstv %s282_s16  ;;  %s2574_s16 = sld [smem:[#allocation4 + $0x30]] }
 0x12a   :  { %v284_v22 = vmul.f32 %v283_v5, %v2983_v2  ;;  %v286_v2 = vmul.f32 %v283_v5, %v2985_v4 }
 0x12b   :  { %646 = vrot.lane.b32.xlu0 %v638_v17, %s2748_s20 }
 0x12d   :  { %626 = vrot.lane.b32.xlu1 %v615_v18, %s2748_s20  ;;  %v820_v18 = vmul.f32 %v817_v12, %v3132_v54 }
 0x12f   :  { %650 = vrot.lane.b32.xlu0 %v640_v20, %s2748_s20  ;;  %v296_v20 = vmul.f32 %v293_v13, %v2985_v4 }
 0x131   :  { %648 = vrot.lane.b32.xlu1 %v639_v10, %s2748_s20  ;;  %v843_v10 = vstv %s2552_s2  ;;  %s2562_s2 = sld [smem:[#allocation4 + $0x24]] }
 0x132   :  { %v844_v29 = vmul.f32 %v843_v10, %v3124_v47  ;;  %v846_v4 = vmul.f32 %v843_v10, %v3132_v54 }
 0x133   :  { %672 = vrot.lane.b32.xlu0 %v664_v14, %s2749_s23  ;;  %v448_v14 = vmul.f32 %v447_v62, %v3026_v48 }
 0x135   :  { %652 = vrot.lane.b32.xlu1 %v641_v21, %s2748_s20 }
 0x137   :  { %676 = vrot.lane.b32.xlu0 %v666_v23, %s2749_s23  ;;  %v819_v23 = vmul.f32 %v817_v12, %v3138_v40 }
 0x139   :  { %674 = vrot.lane.b32.xlu1 %v665_v24, %s2749_s23  ;;  %v295_v24 = vmul.f32 %v293_v13, %v2990_v9 }
 0x13b   :  { %698 = vrot.lane.b32.xlu0 %v690_v25, %s2749_s23 }
 0x13d   :  { %678 = vrot.lane.b32.xlu1 %v667_v26, %s2749_s23 }
 0x13f   :  { %702 = vrot.lane.b32.xlu0 %v692_v27, %s2749_s23 }
 0x141   :  { %700 = vrot.lane.b32.xlu1 %v691_v30, %s2749_s23  ;;  %v437_v30 = vstv %s2533_s17  ;;  %s2561_s17 = sld [smem:[#allocation4 + $0x23]] }
 0x143   :  { %724 = vrot.lane.b32.xlu0 %v716_v31, %s2750_s26 }
 0x145   :  { %704 = vrot.lane.b32.xlu1 %v693_v34, %s2749_s23  ;;  %v3121_v37 = vpop.permute.xlu0 %312 }
 0x146   :  { %v324_v31 = vadd.f32 %v3121_v37, %v284_v22  ;;  %v285_v37 = vmul.f32 %v283_v5, %v2990_v9  ;;  %v845_v9 = vmul.f32 %v843_v10, %v3138_v40 }
 0x147   :  { %728 = vrot.lane.b32.xlu0 %v718_v41, %s2750_s26 }
 0x149   :  { %726 = vrot.lane.b32.xlu1 %v717_v59, %s2750_s26  ;;  %v3129_v35 = vpop.permute.xlu0 %316  ;;  %v297_v59 = vmul.f32 %v293_v13, %v2994_v19 }
 0x14b   :  { %v3134_v38 = vpop.permute.xlu1 %314  ;;  %774 = vrot.lane.b32.xlu0 %v766_v42, %s2748_s20 }
 0x14d   :  { %730 = vrot.lane.b32.xlu1 %v719_v55, %s2750_s26  ;;  %v339_v36 = vpop.permute.xlu0 %338  ;;  %v821_v55 = vmul.f32 %v817_v12, %v3146_v46 }
 0x14e   :  { %v350_v63 = vadd.f32 %v339_v36, %v294_v11 }
 0x14f   :  { %v3142_v43 = vpop.permute.xlu1 %318  ;;  %778 = vrot.lane.b32.xlu0 %v768_v44, %s2748_s20 }
 0x151   :  { %776 = vrot.lane.b32.xlu1 %v767_v45, %s2748_s20  ;;  %v343_v0 = vpop.permute.xlu0 %342 }
 0x152   :  { %v352_v25 = vadd.f32 %v343_v0, %v296_v20  ;;  %v440_v20 = vmul.f32 %v437_v30, %v3032_v32 }
 0x153   :  { %v341_v50 = vpop.permute.xlu1 %340  ;;  %800 = vrot.lane.b32.xlu0 %v792_v49, %s2748_s20  ;;  %v869_v49 = vstv %s3163_s3  ;;  %s2569_s3 = sld [smem:[#allocation4 + $0x2b]] }
 0x154   :  { %v351_v34 = vadd.f32 %v341_v50, %v295_v24  ;;  %v438_v50 = vmul.f32 %v437_v30, %v3026_v48  ;;  %v872_v32 = vmul.f32 %v869_v49, %v3132_v54  ;;  %v3218_v24 = vld [vmem:[#allocation2 + $0x4] sm:$0xff] }
 0x155   :  { %780 = vrot.lane.b32.xlu1 %v769_v51, %s2748_s20  ;;  %v365_v6 = vpop.permute.xlu0 %364  ;;  %v326_v51 = vadd.f32 %v3129_v35, %v286_v2  ;;  %v287_v35 = vmul.f32 %v283_v5, %v2994_v19  ;;  %v439_v5 = vmul.f32 %v437_v30, %v3036_v33  ;;  %v871_v33 = vmul.f32 %v869_v49, %v3138_v40  ;;  %v3236_v2 = vld [vmem:[#allocation2 + $0xc] sm:$0xff] }
 0x156   :  { %v376_v36 = vadd.f32 %v365_v6, %v324_v31 }
 0x157   :  { %v345_v15 = vpop.permute.xlu1 %344  ;;  %804 = vrot.lane.b32.xlu0 %v794_v7, %s2748_s20 }
 0x158   :  { %v353_v7 = vadd.f32 %v345_v15, %v297_v59  ;;  %v945_v59 = vstv %s2557_s19  ;;  %s2577_s19 = sld [smem:[#allocation4 + $0x33]] }
 0x159   :  { %802 = vrot.lane.b32.xlu1 %v793_v28, %s2748_s20  ;;  %v369_v1 = vpop.permute.xlu0 %368  ;;  %v451_v28 = vmul.f32 %v447_v62, %v3042_v39 }
 0x15a   :  { %v378_v11 = vadd.f32 %v369_v1, %v326_v51  ;;  %v327_v1 = vadd.f32 %v3142_v43, %v287_v35 }
 0x15b   :  { %v367_v57 = vpop.permute.xlu1 %366  ;;  %826 = vrot.lane.b32.xlu0 %v818_v56, %s2749_s23  ;;  %v325_v56 = vadd.f32 %v3134_v38, %v285_v37  ;;  %v847_v38 = vmul.f32 %v843_v10, %v3146_v46 }
 0x15d   :  { %806 = vrot.lane.b32.xlu1 %v795_v58, %s2748_s20  ;;  %v391_v17 = vpop.permute.xlu0 %390 }
 0x15e   :  { %v402_v3 = vadd.f32 %v391_v17, %v350_v63  ;;  %v870_v63 = vmul.f32 %v869_v49, %v3124_v47  ;;  %v377_v17 = vadd.f32 %v367_v57, %v325_v56  ;;  %v601_v56 = vstv %s2541_s22  ;;  %s2578_s22 = sld [smem:[#allocation4 + $0x34]] }
 0x15f   :  { %v371_v21 = vpop.permute.xlu1 %370  ;;  %830 = vrot.lane.b32.xlu0 %v820_v18, %s2749_s23 }
 0x160   :  { %v3171_v26 = vadd.f32 %v448_v14, %v402_v3 }
 0x161   :  { %828 = vrot.lane.b32.xlu1 %v819_v23, %s2749_s23  ;;  %v395_v27 = vpop.permute.xlu0 %394  ;;  %v379_v23 = vadd.f32 %v371_v21, %v327_v1 }
 0x162   :  { %v404_v41 = vadd.f32 %v395_v27, %v352_v25  ;;  %v919_v25 = vstv %s3190_s18  ;;  %v441_v27 = vmul.f32 %v437_v30, %v3042_v39  ;;  %s2568_s18 = sld [smem:[#allocation4 + $0x2a]] }
 0x163   :  { %v393_v42 = vpop.permute.xlu1 %392  ;;  %852 = vrot.lane.b32.xlu0 %v844_v29, %s2749_s23  ;;  %v920_v21 = vmul.f32 %v919_v25, %v3218_v24 }
 0x164   :  { %v403_v44 = vadd.f32 %v393_v42, %v351_v34  ;;  %v3182_v45 = vadd.f32 %v450_v53, %v404_v41  ;;  %v3230_v34 = vld [vmem:[#allocation2 + $0x1c] sm:$0xff]  ;;  %v873_v53 = vmul.f32 %v869_v49, %v3146_v46 }
 0x165   :  { %832 = vrot.lane.b32.xlu1 %v821_v55, %s2749_s23  ;;  %v417_v0 = vpop.permute.xlu0 %416  ;;  %v922_v30 = vmul.f32 %v919_v25, %v3230_v34  ;;  %v921_v55 = vmul.f32 %v919_v25, %v3236_v2  ;;  %v948_v49 = vmul.f32 %v945_v59, %v3230_v34 }
 0x166   :  { %v428_v12 = vadd.f32 %v417_v0, %v376_v36  ;;  %v3192_v6 = vadd.f32 %v449_v60, %v403_v44  ;;  %v3244_v36 = vld [vmem:[#allocation2 + $0x24] sm:$0xff]  ;;  %v946_v60 = vmul.f32 %v945_v59, %v3218_v24 }
 0x167   :  { %v397_v13 = vpop.permute.xlu1 %396  ;;  %856 = vrot.lane.b32.xlu0 %v846_v4, %s2749_s23  ;;  %v923_v0 = vmul.f32 %v919_v25, %v3244_v36  ;;  %v604_v25 = vmul.f32 %v601_v56, %v3080_v16 }
 0x168   :  { %v405_v58 = vadd.f32 %v397_v13, %v353_v7  ;;  %v3198_v48 = vadd.f32 %v438_v50, %v428_v12  ;;  %v971_v50 = vstv %s2558_s21  ;;  %v947_v7 = vmul.f32 %v945_v59, %v3236_v2  ;;  %s2751_s21 = smov 127  }
 0x169   :  { %854 = vrot.lane.b32.xlu1 %v845_v9, %s2749_s23  ;;  %v421_v15 = vpop.permute.xlu0 %420  ;;  %v972_v13 = vmul.f32 %v971_v50, %v3218_v24  ;;  %v974_v35 = vmul.f32 %v971_v50, %v3230_v34 }
 0x16a   :  { %v430_v18 = vadd.f32 %v421_v15, %v378_v11  ;;  %v3204_v3 = vadd.f32 %v451_v28, %v405_v58  ;;  %v949_v28 = vmul.f32 %v945_v59, %v3244_v36 }
 0x16b   :  { %v419_v62 = vpop.permute.xlu1 %418  ;;  %878 = vrot.lane.b32.xlu0 %v870_v63, %s2750_s26  ;;  %v997_v63 = vstv %s2559_s24  ;;  %s2579_s24 = sld [smem:[#allocation4 + $0x35]] }
 0x16c   :  { %v429_v19 = vadd.f32 %v419_v62, %v377_v17  ;;  %v3210_v14 = vadd.f32 %v440_v20, %v430_v18  ;;  %v602_v17 = vmul.f32 %v601_v56, %v3074_v52  ;;  %v973_v20 = vmul.f32 %v971_v50, %v3236_v2 }
 0x16d   :  { %858 = vrot.lane.b32.xlu1 %v847_v38, %s2749_s23  ;;  %v3213_v57 = vpop.permute.xlu0 %466  ;;  %v998_v1 = vmul.f32 %v997_v63, %v3218_v24 }
 0x16e   :  { %v3216_v22 = vadd.f32 %v439_v5, %v429_v19  ;;  %v591_v19 = vstv %s2540_s25  ;;  %v478_v5 = vadd.f32 %v3213_v57, %v3198_v48  ;;  %v1000_v48 = vmul.f32 %v997_v63, %v3230_v34  ;;  %s2580_s25 = sld [smem:[#allocation4 + $0x36]] }
 0x16f   :  { %v423_v10 = vpop.permute.xlu1 %422  ;;  %882 = vrot.lane.b32.xlu0 %v872_v32, %s2750_s26  ;;  %v592_v57 = vmul.f32 %v591_v19, %v3074_v52 }
 0x170   :  { %v431_v43 = vadd.f32 %v423_v10, %v379_v23 }
 0x171   :  { %880 = vrot.lane.b32.xlu1 %v871_v33, %s2750_s26  ;;  %v3225_v29 = vpop.permute.xlu0 %470 }
 0x172   :  { %v3228_v31 = vadd.f32 %v441_v27, %v431_v43  ;;  %v603_v27 = vmul.f32 %v601_v56, %v3084_v61 }
 0x173   :  { %v3232_v41 = vpop.permute.xlu1 %468  ;;  %928 = vrot.lane.b32.xlu0 %v920_v21, %s2748_s20 }
 0x175   :  { %884 = vrot.lane.b32.xlu1 %v873_v53, %s2750_s26  ;;  %v493_v39 = vpop.permute.xlu0 %492 }
 0x176   :  { %v504_v11 = vadd.f32 %v493_v39, %v3171_v26  ;;  %v480_v39 = vadd.f32 %v3225_v29, %v3210_v14 }
 0x177   :  { %v3240_v42 = vpop.permute.xlu1 %472  ;;  %932 = vrot.lane.b32.xlu0 %v922_v30, %s2748_s20 }
 0x179   :  { %930 = vrot.lane.b32.xlu1 %v921_v55, %s2748_s20  ;;  %v497_v44 = vpop.permute.xlu0 %496 }
 0x17a   :  { %v506_v62 = vadd.f32 %v497_v44, %v3182_v45  ;;  %v975_v45 = vmul.f32 %v971_v50, %v3244_v36 }
 0x17b   :  { %v495_v37 = vpop.permute.xlu1 %494  ;;  %954 = vrot.lane.b32.xlu0 %v946_v60, %s2748_s20  ;;  %v999_v60 = vmul.f32 %v997_v63, %v3236_v2 }
 0x17c   :  { %v505_v32 = vadd.f32 %v495_v37, %v3192_v6  ;;  %v1023_v6 = vstv %s2560_s0  ;;  %v605_v37 = vmul.f32 %v601_v56, %v3090_v8  ;;  %s2581_s0 = sld [smem:[#allocation4 + $0x37]] }
 0x17d   :  { %934 = vrot.lane.b32.xlu1 %v923_v0, %s2748_s20  ;;  %v519_v4 = vpop.permute.xlu0 %518  ;;  %v479_v0 = vadd.f32 %v3232_v41, %v3216_v22  ;;  %v1024_v14 = vmul.f32 %v1023_v6, %v3218_v24  ;;  %v1001_v22 = vmul.f32 %v997_v63, %v3244_v36  ;;  %v481_v41 = vadd.f32 %v3240_v42, %v3228_v31 }
 0x17e   :  { %v530_v33 = vadd.f32 %v519_v4, %v478_v5  ;;  %v1025_v31 = vmul.f32 %v1023_v6, %v3236_v2  ;;  %v595_v42 = vmul.f32 %v591_v19, %v3090_v8  ;;  %v3328_v5 = vld [vmem:[#allocation2 + $0xd] sm:$0xff] }
 0x17f   :  { %v499_v51 = vpop.permute.xlu1 %498  ;;  %958 = vrot.lane.b32.xlu0 %v948_v49, %s2748_s20 }
 0x180   :  { %v507_v30 = vadd.f32 %v499_v51, %v3204_v3  ;;  %v594_v51 = vmul.f32 %v591_v19, %v3080_v16  ;;  %v1026_v16 = vmul.f32 %v1023_v6, %v3230_v34 }
 0x181   :  { %956 = vrot.lane.b32.xlu1 %v947_v7, %s2748_s20  ;;  %v523_v12 = vpop.permute.xlu0 %522 }
 0x182   :  { %v532_v52 = vadd.f32 %v523_v12, %v480_v39 }
 0x183   :  { %v521_v9 = vpop.permute.xlu1 %520  ;;  %980 = vrot.lane.b32.xlu0 %v972_v13, %s2749_s23 }
 0x184   :  { %v531_v29 = vadd.f32 %v521_v9, %v479_v0 }
 0x185   :  { %960 = vrot.lane.b32.xlu1 %v949_v28, %s2748_s20  ;;  %v545_v58 = vpop.permute.xlu0 %544  ;;  %v593_v28 = vmul.f32 %v591_v19, %v3084_v61 }
 0x186   :  { %v556_v15 = vadd.f32 %v545_v58, %v504_v11 }
 0x187   :  { %v525_v18 = vpop.permute.xlu1 %524  ;;  %984 = vrot.lane.b32.xlu0 %v974_v35, %s2749_s23  ;;  %v3311_v35 = vld [vmem:[#allocation2 + $0x5] sm:$0xff] }
 0x188   :  { %v3265_v38 = vadd.f32 %v602_v17, %v556_v15  ;;  %v533_v11 = vadd.f32 %v525_v18, %v481_v41  ;;  %v1073_v15 = vstv %s2563_s27  ;;  %s2584_s27 = sld [smem:[#allocation4 + $0x3a]] }
 0x189   :  { %982 = vrot.lane.b32.xlu1 %v973_v20, %s2749_s23  ;;  %v549_v26 = vpop.permute.xlu0 %548  ;;  %v1074_v18 = vmul.f32 %v1073_v15, %v3311_v35 }
 0x18a   :  { %v558_v23 = vadd.f32 %v549_v26, %v506_v62  ;;  %v3322_v62 = vld [vmem:[#allocation2 + $0x1d] sm:$0xff] }
 0x18b   :  { %v547_v10 = vpop.permute.xlu1 %546  ;;  %1006 = vrot.lane.b32.xlu0 %v998_v1, %s2749_s23  ;;  %v1027_v1 = vmul.f32 %v1023_v6, %v3244_v36  ;;  %v1076_v19 = vmul.f32 %v1073_v15, %v3322_v62  ;;  %v1125_v6 = vstv %s2565_s5  ;;  %s2586_s5 = sld [smem:[#allocation4 + $0x3c]] }
 0x18c   :  { %v557_v43 = vadd.f32 %v547_v10, %v505_v32  ;;  %v3276_v21 = vadd.f32 %v604_v25, %v558_v23  ;;  %v1099_v32 = vstv %s2564_s28  ;;  %v1075_v25 = vmul.f32 %v1073_v15, %v3328_v5  ;;  %v3336_v10 = vld [vmem:[#allocation2 + $0x25] sm:$0xff]  ;;  %s2585_s28 = sld [smem:[#allocation4 + $0x3b]] }
 0x18d   :  { %986 = vrot.lane.b32.xlu1 %v975_v45, %s2749_s23  ;;  %v571_v53 = vpop.permute.xlu0 %570  ;;  %v1101_v39 = vmul.f32 %v1099_v32, %v3328_v5 }
 0x18e   :  { %v582_v59 = vadd.f32 %v571_v53, %v530_v33  ;;  %v3284_v55 = vadd.f32 %v603_v27, %v557_v43  ;;  %v1100_v33 = vmul.f32 %v1099_v32, %v3311_v35  ;;  %v1077_v27 = vmul.f32 %v1073_v15, %v3336_v10 }
 0x18f   :  { %v551_v44 = vpop.permute.xlu1 %550  ;;  %1010 = vrot.lane.b32.xlu0 %v1000_v48, %s2749_s23  ;;  %v1102_v48 = vmul.f32 %v1099_v32, %v3322_v62 }
 0x190   :  { %v559_v4 = vadd.f32 %v551_v44, %v507_v30  ;;  %v3291_v49 = vadd.f32 %v592_v57, %v582_v59  ;;  %v1126_v59 = vmul.f32 %v1125_v6, %v3311_v35 }
 0x191   :  { %1008 = vrot.lane.b32.xlu1 %v999_v60, %s2749_s23  ;;  %v575_v3 = vpop.permute.xlu0 %574  ;;  %v1103_v60 = vmul.f32 %v1099_v32, %v3336_v10 }
 0x192   :  { %v584_v50 = vadd.f32 %v575_v3, %v532_v52  ;;  %v3296_v7 = vadd.f32 %v605_v37, %v559_v4  ;;  %v755_v37 = vstv %s2548_s6  ;;  %v1128_v4 = vmul.f32 %v1125_v6, %v3322_v62  ;;  %s2587_s6 = sld [smem:[#allocation4 + $0x3d]] }
 0x193   :  { %v573_v13 = vpop.permute.xlu1 %572  ;;  %1032 = vrot.lane.b32.xlu0 %v1024_v14, %s2750_s26  ;;  %v1151_v14 = vstv %s2566_s7  ;;  %v758_v15 = vmul.f32 %v755_v37, %v3132_v54  ;;  %s2588_s7 = sld [smem:[#allocation4 + $0x3e]] }
 0x194   :  { %v583_v12 = vadd.f32 %v573_v13, %v531_v29  ;;  %v3303_v56 = vadd.f32 %v594_v51, %v584_v50  ;;  %v756_v29 = vmul.f32 %v755_v37, %v3124_v47  ;;  %v1127_v51 = vmul.f32 %v1125_v6, %v3328_v5 }
 0x195   :  { %1012 = vrot.lane.b32.xlu1 %v1001_v22, %s2749_s23  ;;  %v3306_v9 = vpop.permute.xlu0 %620  ;;  %v1152_v41 = vmul.f32 %v1151_v14, %v3311_v35 }
 0x196   :  { %v3309_v58 = vadd.f32 %v593_v28, %v583_v12  ;;  %v745_v12 = vstv %s2547_s8  ;;  %v632_v28 = vadd.f32 %v3306_v9, %v3291_v49  ;;  %v1154_v49 = vmul.f32 %v1151_v14, %v3322_v62  ;;  %s2591_s8 = sld [smem:[#allocation4 + $0x41]] }
 0x197   :  { %v577_v63 = vpop.permute.xlu1 %576  ;;  %1036 = vrot.lane.b32.xlu0 %v1026_v16, %s2750_s26  ;;  %v746_v9 = vmul.f32 %v745_v12, %v3124_v47 }
 0x198   :  { %v585_v61 = vadd.f32 %v577_v63, %v533_v11 }
 0x199   :  { %1034 = vrot.lane.b32.xlu1 %v1025_v31, %s2750_s26  ;;  %v3317_v17 = vpop.permute.xlu0 %624  ;;  %v1129_v31 = vmul.f32 %v1125_v6, %v3336_v10 }
 0x19a   :  { %v3320_v20 = vadd.f32 %v595_v42, %v585_v61  ;;  %v757_v42 = vmul.f32 %v755_v37, %v3138_v40 }
 0x19b   :  { %v3324_v26 = vpop.permute.xlu1 %622  ;;  %1082 = vrot.lane.b32.xlu0 %v1074_v18, %s2748_s20 }
 0x19d   :  { %1038 = vrot.lane.b32.xlu1 %v1027_v1, %s2750_s26  ;;  %v647_v8 = vpop.permute.xlu0 %646 }
 0x19e   :  { %v658_v0 = vadd.f32 %v647_v8, %v3265_v38  ;;  %v634_v8 = vadd.f32 %v3317_v17, %v3303_v56 }
 0x19f   :  { %v3332_v23 = vpop.permute.xlu1 %626  ;;  %1086 = vrot.lane.b32.xlu0 %v1076_v19, %s2748_s20 }
 0x1a1   :  { %1084 = vrot.lane.b32.xlu1 %v1075_v25, %s2748_s20  ;;  %v651_v45 = vpop.permute.xlu0 %650 }
 0x1a2   :  { %v660_v13 = vadd.f32 %v651_v45, %v3276_v21 }
 0x1a3   :  { %v649_v43 = vpop.permute.xlu1 %648  ;;  %1108 = vrot.lane.b32.xlu0 %v1100_v33, %s2748_s20  ;;  %v1153_v33 = vmul.f32 %v1151_v14, %v3328_v5 }
 0x1a4   :  { %v659_v16 = vadd.f32 %v649_v43, %v3284_v55  ;;  %v1177_v55 = vstv %s2567_s9  ;;  %v759_v43 = vmul.f32 %v755_v37, %v3146_v46  ;;  %s2592_s9 = sld [smem:[#allocation4 + $0x42]] }
 0x1a5   :  { %1088 = vrot.lane.b32.xlu1 %v1077_v27, %s2748_s20  ;;  %v673_v53 = vpop.permute.xlu0 %672  ;;  %v633_v27 = vadd.f32 %v3324_v26, %v3309_v58  ;;  %v1178_v56 = vmul.f32 %v1177_v55, %v3311_v35  ;;  %v635_v58 = vadd.f32 %v3332_v23, %v3320_v20  ;;  %v1179_v20 = vmul.f32 %v1177_v55, %v3328_v5 }
 0x1a6   :  { %v684_v21 = vadd.f32 %v673_v53, %v632_v28  ;;  %v749_v23 = vmul.f32 %v745_v12, %v3146_v46  ;;  %v3420_v28 = vld [vmem:[#allocation2 + $0xe] sm:$0xff] }
 0x1a7   :  { %v653_v57 = vpop.permute.xlu1 %652  ;;  %1112 = vrot.lane.b32.xlu0 %v1102_v48, %s2748_s20 }
 0x1a8   :  { %v661_v19 = vadd.f32 %v653_v57, %v3296_v7  ;;  %v748_v57 = vmul.f32 %v745_v12, %v3132_v54  ;;  %v1180_v54 = vmul.f32 %v1177_v55, %v3322_v62 }
 0x1a9   :  { %1110 = vrot.lane.b32.xlu1 %v1101_v39, %s2748_s20  ;;  %v677_v30 = vpop.permute.xlu0 %676 }
 0x1aa   :  { %v686_v47 = vadd.f32 %v677_v30, %v634_v8  ;;  %v747_v30 = vmul.f32 %v745_v12, %v3138_v40 }
 0x1ab   :  { %v675_v44 = vpop.permute.xlu1 %674  ;;  %1134 = vrot.lane.b32.xlu0 %v1126_v59, %s2749_s23 }
 0x1ac   :  { %v685_v17 = vadd.f32 %v675_v44, %v633_v27 }
 0x1ad   :  { %1114 = vrot.lane.b32.xlu1 %v1103_v60, %s2748_s20  ;;  %v699_v52 = vpop.permute.xlu0 %698  ;;  %v1155_v60 = vmul.f32 %v1151_v14, %v3336_v10 }
 0x1ae   :  { %v710_v3 = vadd.f32 %v699_v52, %v658_v0 }
 0x1af   :  { %v679_v50 = vpop.permute.xlu1 %678  ;;  %1138 = vrot.lane.b32.xlu0 %v1128_v4, %s2749_s23  ;;  %v3403_v4 = vld [vmem:[#allocation2 + $0x6] sm:$0xff] }
 0x1b0   :  { %v3357_v22 = vadd.f32 %v756_v29, %v710_v3  ;;  %v687_v0 = vadd.f32 %v679_v50, %v635_v58  ;;  %v1227_v3 = vstv %s2570_s10  ;;  %s2593_s10 = sld [smem:[#allocation4 + $0x43]] }
 0x1b1   :  { %1136 = vrot.lane.b32.xlu1 %v1127_v51, %s2749_s23  ;;  %v703_v38 = vpop.permute.xlu0 %702  ;;  %v1228_v50 = vmul.f32 %v1227_v3, %v3403_v4 }
 0x1b2   :  { %v712_v11 = vadd.f32 %v703_v38, %v660_v13  ;;  %v3414_v13 = vld [vmem:[#allocation2 + $0x1e] sm:$0xff] }
 0x1b3   :  { %v701_v63 = vpop.permute.xlu1 %700  ;;  %1160 = vrot.lane.b32.xlu0 %v1152_v41, %s2749_s23  ;;  %v1181_v41 = vmul.f32 %v1177_v55, %v3336_v10  ;;  %v1230_v12 = vmul.f32 %v1227_v3, %v3414_v13  ;;  %v1279_v55 = vstv %s2572_s12  ;;  %s2595_s12 = sld [smem:[#allocation4 + $0x45]] }
 0x1b4   :  { %v711_v61 = vadd.f32 %v701_v63, %v659_v16  ;;  %v3368_v18 = vadd.f32 %v758_v15, %v712_v11  ;;  %v1253_v16 = vstv %s2571_s11  ;;  %v1229_v15 = vmul.f32 %v1227_v3, %v3420_v28  ;;  %v3428_v63 = vld [vmem:[#allocation2 + $0x26] sm:$0xff]  ;;  %s2594_s11 = sld [smem:[#allocation4 + $0x44]] }
 0x1b5   :  { %1140 = vrot.lane.b32.xlu1 %v1129_v31, %s2749_s23  ;;  %v725_v1 = vpop.permute.xlu0 %724  ;;  %v1255_v8 = vmul.f32 %v1253_v16, %v3420_v28 }
 0x1b6   :  { %v736_v32 = vadd.f32 %v725_v1, %v684_v21  ;;  %v3376_v25 = vadd.f32 %v757_v42, %v711_v61  ;;  %v1254_v21 = vmul.f32 %v1253_v16, %v3403_v4  ;;  %v1231_v42 = vmul.f32 %v1227_v3, %v3428_v63 }
 0x1b7   :  { %v705_v45 = vpop.permute.xlu1 %704  ;;  %1164 = vrot.lane.b32.xlu0 %v1154_v49, %s2749_s23  ;;  %v1256_v49 = vmul.f32 %v1253_v16, %v3414_v13 }
 0x1b8   :  { %v713_v53 = vadd.f32 %v705_v45, %v661_v19  ;;  %v3383_v48 = vadd.f32 %v746_v9, %v736_v32  ;;  %v1280_v32 = vmul.f32 %v1279_v55, %v3403_v4 }
 0x1b9   :  { %1162 = vrot.lane.b32.xlu1 %v1153_v33, %s2749_s23  ;;  %v729_v7 = vpop.permute.xlu0 %728  ;;  %v1257_v33 = vmul.f32 %v1253_v16, %v3428_v63 }
 0x1ba   :  { %v738_v6 = vadd.f32 %v729_v7, %v686_v47  ;;  %v3388_v39 = vadd.f32 %v759_v43, %v713_v53  ;;  %v909_v43 = vstv %s2555_s13  ;;  %v1282_v53 = vmul.f32 %v1279_v55, %v3414_v13  ;;  %s2599_s13 = sld [smem:[#allocation4 + $0x49]] }
 0x1bb   :  { %v727_v59 = vpop.permute.xlu1 %726  ;;  %1186 = vrot.lane.b32.xlu0 %v1178_v56, %s2750_s26  ;;  %v1305_v56 = vstv %s2573_s14  ;;  %v912_v3 = vmul.f32 %v909_v43, %v3230_v34  ;;  %s2601_s14 = sld [smem:[#allocation4 + $0x4b]] }
 0x1bc   :  { %v737_v26 = vadd.f32 %v727_v59, %v685_v17  ;;  %v3395_v37 = vadd.f32 %v748_v57, %v738_v6  ;;  %v910_v17 = vmul.f32 %v909_v43, %v3218_v24  ;;  %v1281_v57 = vmul.f32 %v1279_v55, %v3420_v28 }
 0x1bd   :  { %1166 = vrot.lane.b32.xlu1 %v1155_v60, %s2749_s23  ;;  %v3398_v44 = vpop.permute.xlu0 %774  ;;  %v1306_v58 = vmul.f32 %v1305_v56, %v3403_v4 }
 0x1be   :  { %v3401_v52 = vadd.f32 %v747_v30, %v737_v26  ;;  %v899_v26 = vstv %s2554_s15  ;;  %v786_v30 = vadd.f32 %v3398_v44, %v3383_v48  ;;  %v1308_v48 = vmul.f32 %v1305_v56, %v3414_v13  ;;  %s2606_s15 = sld [smem:[#allocation4 + $0x50]] }
 0x1bf   :  { %v731_v14 = vpop.permute.xlu1 %730  ;;  %1190 = vrot.lane.b32.xlu0 %v1180_v54, %s2750_s26  ;;  %v900_v44 = vmul.f32 %v899_v26, %v3218_v24 }
 0x1c0   :  { %v739_v40 = vadd.f32 %v731_v14, %v687_v0 }
 0x1c1   :  { %1188 = vrot.lane.b32.xlu1 %v1179_v20, %s2750_s26  ;;  %v3409_v29 = vpop.permute.xlu0 %778  ;;  %v1283_v20 = vmul.f32 %v1279_v55, %v3428_v63 }
 0x1c2   :  { %v3412_v51 = vadd.f32 %v749_v23, %v739_v40  ;;  %v911_v23 = vmul.f32 %v909_v43, %v3236_v2 }
 0x1c3   :  { %v3416_v38 = vpop.permute.xlu1 %776  ;;  %1236 = vrot.lane.b32.xlu0 %v1228_v50, %s2748_s20 }
 0x1c5   :  { %1192 = vrot.lane.b32.xlu1 %v1181_v41, %s2750_s26  ;;  %v801_v46 = vpop.permute.xlu0 %800 }
 0x1c6   :  { %v812_v27 = vadd.f32 %v801_v46, %v3357_v22  ;;  %v788_v46 = vadd.f32 %v3409_v29, %v3395_v37 }
 0x1c7   :  { %v3424_v11 = vpop.permute.xlu1 %780  ;;  %1240 = vrot.lane.b32.xlu0 %v1230_v12, %s2748_s20 }
 0x1c9   :  { %1238 = vrot.lane.b32.xlu1 %v1229_v15, %s2748_s20  ;;  %v805_v31 = vpop.permute.xlu0 %804 }
 0x1ca   :  { %v814_v59 = vadd.f32 %v805_v31, %v3368_v18 }
 0x1cb   :  { %v803_v61 = vpop.permute.xlu1 %802  ;;  %1262 = vrot.lane.b32.xlu0 %v1254_v21, %s2748_s20  ;;  %v1307_v21 = vmul.f32 %v1305_v56, %v3420_v28 }
 0x1cc   :  { %v813_v54 = vadd.f32 %v803_v61, %v3376_v25  ;;  %v1331_v25 = vstv %s2574_s16  ;;  %v913_v61 = vmul.f32 %v909_v43, %v3244_v36  ;;  %s2608_s16 = sld [smem:[#allocation4 + $0x52]] }
 0x1cd   :  { %1242 = vrot.lane.b32.xlu1 %v1231_v42, %s2748_s20  ;;  %v827_v1 = vpop.permute.xlu0 %826  ;;  %v787_v42 = vadd.f32 %v3416_v38, %v3401_v52  ;;  %v789_v52 = vadd.f32 %v3424_v11, %v3412_v51 }
 0x1ce   :  { %v838_v18 = vadd.f32 %v827_v1, %v786_v30 }
 0x1cf   :  { %v807_v9 = vpop.permute.xlu1 %806  ;;  %1266 = vrot.lane.b32.xlu0 %v1256_v49, %s2748_s20 }
 0x1d0   :  { %v815_v12 = vadd.f32 %v807_v9, %v3388_v39  ;;  %v1332_v39 = vmul.f32 %v1331_v25, %v3403_v4  ;;  %v902_v9 = vmul.f32 %v899_v26, %v3230_v34 }
 0x1d1   :  { %1264 = vrot.lane.b32.xlu1 %v1255_v8, %s2748_s20  ;;  %v831_v19 = vpop.permute.xlu0 %830 }
 0x1d2   :  { %v840_v1 = vadd.f32 %v831_v19, %v788_v46  ;;  %v901_v19 = vmul.f32 %v899_v26, %v3236_v2 }
 0x1d3   :  { %v829_v45 = vpop.permute.xlu1 %828  ;;  %1288 = vrot.lane.b32.xlu0 %v1280_v32, %s2749_s23 }
 0x1d4   :  { %v839_v29 = vadd.f32 %v829_v45, %v787_v42  ;;  %v1334_v45 = vmul.f32 %v1331_v25, %v3414_v13 }
 0x1d5   :  { %1268 = vrot.lane.b32.xlu1 %v1257_v33, %s2748_s20  ;;  %v853_v47 = vpop.permute.xlu0 %852  ;;  %v1309_v33 = vmul.f32 %v1305_v56, %v3428_v63 }
 0x1d6   :  { %v864_v7 = vadd.f32 %v853_v47, %v812_v27 }
 0x1d7   :  { %v833_v6 = vpop.permute.xlu1 %832  ;;  %1292 = vrot.lane.b32.xlu0 %v1282_v53, %s2749_s23 }
 0x1d8   :  { %v3449_v60 = vadd.f32 %v910_v17, %v864_v7  ;;  %v841_v47 = vadd.f32 %v833_v6, %v789_v52  ;;  %v1333_v7 = vmul.f32 %v1331_v25, %v3420_v28  ;;  %v903_v17 = vmul.f32 %v899_v26, %v3244_v36 }
 0x1d9   :  { %1290 = vrot.lane.b32.xlu1 %v1281_v57, %s2749_s23  ;;  %v857_v22 = vpop.permute.xlu0 %856  ;;  %v1335_v57 = vmul.f32 %v1331_v25, %v3428_v63  ;;  %v1063_v36 = vstv %s2562_s2  ;;  %v1053_v25 = vstv %s2561_s17  ;;  %s2576_s2 = sld [smem:[#allocation4 + $0x32]]  ;;  %s2583_s17 = sld [smem:[#allocation4 + $0x39]] }
 0x1da   :  { %v866_v0 = vadd.f32 %v857_v22, %v814_v59 }
 0x1db   :  { %v855_v14 = vpop.permute.xlu1 %854  ;;  %1314 = vrot.lane.b32.xlu0 %v1306_v58, %s2749_s23 }
 0x1dc   :  { %v865_v40 = vadd.f32 %v855_v14, %v813_v54  ;;  %v3460_v50 = vadd.f32 %v912_v3, %v866_v0 }
 0x1dd   :  { %1294 = vrot.lane.b32.xlu1 %v1283_v20, %s2749_s23  ;;  %v879_v41 = vpop.permute.xlu0 %878 }
 0x1de   :  { %v890_v16 = vadd.f32 %v879_v41, %v838_v18  ;;  %v915_v15 = vadd.f32 %v911_v23, %v865_v40  ;;  %v1064_v18 = vmul.f32 %v1063_v36, %v3311_v35 }
 0x1df   :  { %v859_v31 = vpop.permute.xlu1 %858  ;;  %1318 = vrot.lane.b32.xlu0 %v1308_v48, %s2749_s23 }
 0x1e0   :  { %v867_v49 = vadd.f32 %v859_v31, %v815_v12  ;;  %v904_v24 = vadd.f32 %v900_v44, %v890_v16  ;;  %v1066_v16 = vmul.f32 %v1063_v36, %v3322_v62 }
 0x1e1   :  { %1316 = vrot.lane.b32.xlu1 %v1307_v21, %s2749_s23  ;;  %v883_v37 = vpop.permute.xlu0 %882 }
 0x1e2   :  { %v892_v55 = vadd.f32 %v883_v37, %v840_v1  ;;  %v917_v8 = vadd.f32 %v913_v61, %v867_v49  ;;  %v1054_v49 = vmul.f32 %v1053_v25, %v3311_v35 }
 0x1e3   :  { %v881_v32 = vpop.permute.xlu1 %880  ;;  %1340 = vrot.lane.b32.xlu0 %v1332_v39, %s2750_s26 }
 0x1e4   :  { %v891_v38 = vadd.f32 %v881_v32, %v839_v29  ;;  %v906_v43 = vadd.f32 %v902_v9, %v892_v55 }
 0x1e5   :  { %1320 = vrot.lane.b32.xlu1 %v1309_v33, %s2749_s23  ;;  %v929_v27 = vpop.permute.xlu0 %928 }
 0x1e6   :  { %v905_v34 = vadd.f32 %v901_v19, %v891_v38  ;;  %v940_v44 = vadd.f32 %v929_v27, %v904_v24  ;;  %v1067_v24 = vmul.f32 %v1063_v36, %v3336_v10  ;;  %v1056_v27 = vmul.f32 %v1053_v25, %v3322_v62 }
 0x1e7   :  { %v885_v53 = vpop.permute.xlu1 %884  ;;  %1344 = vrot.lane.b32.xlu0 %v1334_v45, %s2750_s26 }
 0x1e8   :  { %v893_v56 = vadd.f32 %v885_v53, %v841_v47 }
 0x1e9   :  { %1342 = vrot.lane.b32.xlu1 %v1333_v7, %s2750_s26  ;;  %v933_v51 = vpop.permute.xlu0 %932 }
 0x1ea   :  { %v907_v2 = vadd.f32 %v903_v17, %v893_v56  ;;  %v942_v37 = vadd.f32 %v933_v51, %v906_v43 }
 0x1eb   :  { %v931_v11 = vpop.permute.xlu1 %930 }
 0x1ed   :  { %1346 = vrot.lane.b32.xlu1 %v1335_v57, %s2750_s26  ;;  %v955_v59 = vpop.permute.xlu0 %954 }
 0x1ee   :  { %v966_v26 = vadd.f32 %v955_v59, %v3449_v60  ;;  %v1065_v60 = vmul.f32 %v1063_v36, %v3328_v5 }
 0x1ef   :  { %v935_v6 = vpop.permute.xlu1 %934 }
 0x1f0   :  { %v943_v53 = vadd.f32 %v935_v6, %v907_v2 }
 0x1f1   :  { %v959_v22 = vpop.permute.xlu0 %958 }
 0x1f2   :  { %v968_v23 = vadd.f32 %v959_v22, %v3460_v50 }
 0x1f3   :  { %v957_v58 = vpop.permute.xlu1 %956 }
 0x1f4   :  { %v967_v46 = vadd.f32 %v957_v58, %v915_v15  ;;  %v941_v15 = vadd.f32 %v931_v11, %v905_v34  ;;  %v1057_v11 = vmul.f32 %v1053_v25, %v3336_v10 }
 0x1f5   :  { %v981_v30 = vpop.permute.xlu0 %980 }
 0x1f6   :  { %v992_v21 = vadd.f32 %v981_v30, %v940_v44 }
 0x1f7   :  { %v961_v54 = vpop.permute.xlu1 %960 }
 0x1f8   :  { %v969_v39 = vadd.f32 %v961_v54, %v917_v8  ;;  %v1055_v8 = vmul.f32 %v1053_v25, %v3328_v5 }
 0x1f9   :  { %v985_v0 = vpop.permute.xlu0 %984 }
 0x1fa   :  { %v994_v9 = vadd.f32 %v985_v0, %v942_v37 }
 0x1fb   :  { %v983_v3 = vpop.permute.xlu1 %982 }
 0x1fc   :  { %v993_v38 = vadd.f32 %v983_v3, %v941_v15  ;;  %v1217_v3 = vstv %s2569_s3  ;;  %s2613_s3 = sld [smem:[#allocation4 + $0x57]] }
 0x1fd   :  { %v1007_v14 = vpop.permute.xlu0 %1006 }
 0x1fe   :  { %v1018_v20 = vadd.f32 %v1007_v14, %v966_v26 }
 0x1ff   :  { %v987_v40 = vpop.permute.xlu1 %986 }
 0x200   :  { %v1068_v41 = vadd.f32 %v1064_v18, %v1018_v20  ;;  %v995_v56 = vadd.f32 %v987_v40, %v943_v53  ;;  %v1218_v20 = vmul.f32 %v1217_v3, %v3403_v4 }
 0x201   :  { %v1011_v48 = vpop.permute.xlu0 %1010 }
 0x202   :  { %v1020_v12 = vadd.f32 %v1011_v48, %v968_v23  ;;  %v1207_v48 = vstv %s2568_s18  ;;  %s2575_s18 = sld [smem:[#allocation4 + $0x31]] }
 0x203   :  { %v1009_v31 = vpop.permute.xlu1 %1008 }
 0x204   :  { %v1019_v61 = vadd.f32 %v1009_v31, %v967_v46  ;;  %v1070_v42 = vadd.f32 %v1066_v16, %v1020_v12  ;;  %v1220_v12 = vmul.f32 %v1217_v3, %v3414_v13 }
 0x205   :  { %v1033_v1 = vpop.permute.xlu0 %1032 }
 0x206   :  { %v1044_v50 = vadd.f32 %v1033_v1, %v992_v21  ;;  %v1069_v29 = vadd.f32 %v1065_v60, %v1019_v61  ;;  %v1219_v61 = vmul.f32 %v1217_v3, %v3420_v28  ;;  %v1208_v1 = vmul.f32 %v1207_v48, %v3403_v4 }
 0x207   :  { %v1013_v55 = vpop.permute.xlu1 %1012 }
 0x208   :  { %v1021_v32 = vadd.f32 %v1013_v55, %v969_v39  ;;  %v1058_v33 = vadd.f32 %v1054_v49, %v1044_v50  ;;  %v1221_v55 = vmul.f32 %v1217_v3, %v3428_v63 }
 0x209   :  { %v1037_v52 = vpop.permute.xlu0 %1036 }
 0x20a   :  { %v1046_v19 = vadd.f32 %v1037_v52, %v994_v9  ;;  %v1071_v45 = vadd.f32 %v1067_v24, %v1021_v32 }
 0x20b   :  { %v1035_v47 = vpop.permute.xlu1 %1034 }
 0x20c   :  { %v1045_v35 = vadd.f32 %v1035_v47, %v993_v38  ;;  %v1060_v43 = vadd.f32 %v1056_v27, %v1046_v19  ;;  %v1210_v38 = vmul.f32 %v1207_v48, %v3414_v13 }
 0x20d   :  { %v1083_v7 = vpop.permute.xlu0 %1082 }
 0x20e   :  { %v1059_v17 = vadd.f32 %v1055_v8, %v1045_v35  ;;  %v1094_v25 = vadd.f32 %v1083_v7, %v1058_v33 }
 0x20f   :  { %v1039_v51 = vpop.permute.xlu1 %1038 }
 0x210   :  { %v1047_v34 = vadd.f32 %v1039_v51, %v995_v56 }
 0x211   :  { %v1087_v57 = vpop.permute.xlu0 %1086 }
 0x212   :  { %v1061_v59 = vadd.f32 %v1057_v11, %v1047_v34  ;;  %v1096_v49 = vadd.f32 %v1087_v57, %v1060_v43 }
 0x213   :  { %v1085_v22 = vpop.permute.xlu1 %1084 }
 0x215   :  { %v1109_v58 = vpop.permute.xlu0 %1108 }
 0x216   :  { %v1120_v36 = vadd.f32 %v1109_v58, %v1068_v41 }
 0x217   :  { %v1089_v30 = vpop.permute.xlu1 %1088 }
 0x218   :  { %v1097_v4 = vadd.f32 %v1089_v30, %v1061_v59 }
 0x219   :  { %v1113_v62 = vpop.permute.xlu0 %1112 }
 0x21a   :  { %v1122_v18 = vadd.f32 %v1113_v62, %v1070_v42 }
 0x21b   :  { %v1111_v54 = vpop.permute.xlu1 %1110 }
 0x21c   :  { %v1121_v44 = vadd.f32 %v1111_v54, %v1069_v29  ;;  %v1095_v29 = vadd.f32 %v1085_v22, %v1059_v17  ;;  %v1211_v17 = vmul.f32 %v1207_v48, %v3428_v63 }
 0x21d   :  { %v1135_v2 = vpop.permute.xlu0 %1134 }
 0x21e   :  { %v1146_v31 = vadd.f32 %v1135_v2, %v1094_v25 }
 0x21f   :  { %v1115_v6 = vpop.permute.xlu1 %1114 }
 0x220   :  { %v1123_v37 = vadd.f32 %v1115_v6, %v1071_v45  ;;  %v1209_v45 = vmul.f32 %v1207_v48, %v3420_v28  ;;  %v3537_v48 = vld [vmem:[#allocation2 + $0x48] sm:$0xff] }
 0x221   :  { %v1139_v0 = vpop.permute.xlu0 %1138 }
 0x222   :  { %v1148_v24 = vadd.f32 %v1139_v0, %v1096_v49 }
 0x223   :  { %v1137_v5 = vpop.permute.xlu1 %1136 }
 0x224   :  { %v1147_v33 = vadd.f32 %v1137_v5, %v1095_v29 }
 0x225   :  { %v1161_v26 = vpop.permute.xlu0 %1160 }
 0x226   :  { %v1172_v14 = vadd.f32 %v1161_v26, %v1120_v36 }
 0x227   :  { %v1141_v10 = vpop.permute.xlu1 %1140 }
 0x228   :  { %v1222_v40 = vadd.f32 %v1218_v20, %v1172_v14  ;;  %v1149_v8 = vadd.f32 %v1141_v10, %v1097_v4  ;;  %v3532_v14 = vld [vmem:[#allocation2 + $0x30] sm:$0xff]  ;;  %v1401_v20 = vstv %s2577_s19  ;;  %s2582_s19 = sld [smem:[#allocation4 + $0x38]] }
 0x229   :  { %v1165_v23 = vpop.permute.xlu0 %1164 }
 0x22a   :  { %v1174_v46 = vadd.f32 %v1165_v23, %v1122_v18 }
 0x22b   :  { %v1163_v16 = vpop.permute.xlu1 %1162 }
 0x22c   :  { %v1173_v21 = vadd.f32 %v1163_v16, %v1121_v44  ;;  %v1224_v41 = vadd.f32 %v1220_v12, %v1174_v46  ;;  %v3540_v44 = vld [vmem:[#allocation2 + $0x38] sm:$0xff]  ;;  %v1404_v46 = vmul.f32 %v1401_v20, %v3537_v48  ;;  %v1427_v12 = vstv %s2578_s22  ;;  %s2615_s22 = sld [smem:[#allocation4 + $0x59]] }
 0x22d   :  { %v1187_v60 = vpop.permute.xlu0 %1186  ;;  %v1403_v16 = vmul.f32 %v1401_v20, %v3540_v44 }
 0x22e   :  { %v1198_v42 = vadd.f32 %v1187_v60, %v1146_v31  ;;  %v1223_v39 = vadd.f32 %v1219_v61, %v1173_v21  ;;  %v3546_v31 = vld [vmem:[#allocation2 + $0x50] sm:$0xff]  ;;  %v1428_v21 = vmul.f32 %v1427_v12, %v3532_v14  ;;  %v1453_v60 = vstv %s2579_s24  ;;  %s2620_s24 = sld [smem:[#allocation4 + $0x5e]] }
 0x22f   :  { %v1167_v50 = vpop.permute.xlu1 %1166  ;;  %v1405_v61 = vmul.f32 %v1401_v20, %v3546_v31  ;;  %v1454_v49 = vmul.f32 %v1453_v60, %v3532_v14  ;;  %v1457_v29 = vmul.f32 %v1453_v60, %v3546_v31 }
 0x230   :  { %v1175_v15 = vadd.f32 %v1167_v50, %v1123_v37  ;;  %v3504_v9 = vadd.f32 %v1208_v1, %v1198_v42  ;;  %v1429_v1 = vmul.f32 %v1427_v12, %v3540_v44  ;;  %v1431_v37 = vmul.f32 %v1427_v12, %v3546_v31 }
 0x231   :  { %v1191_v32 = vpop.permute.xlu0 %1190  ;;  %v1456_v42 = vmul.f32 %v1453_v60, %v3537_v48  ;;  %v1455_v50 = vmul.f32 %v1453_v60, %v3540_v44  ;;  %v3632_v60 = vld [vmem:[#allocation2 + $0x4a] sm:$0xff] }
 0x232   :  { %4270 = vst [vmem:[#allocation16_spill] sm:$0xff] %v3504_v9  ;;  %v1200_v52 = vadd.f32 %v1191_v32, %v1148_v24  ;;  %v1225_v19 = vadd.f32 %v1221_v55, %v1175_v15  ;;  %v1505_v15 = vstv %s2581_s0  ;;  %s2598_s0 = sld [smem:[#allocation4 + $0x48]] }
 0x233   :  { %v1189_v27 = vpop.permute.xlu1 %1188  ;;  %v1507_v4 = vmul.f32 %v1505_v15, %v3540_v44 }
 0x234   :  { %v1199_v47 = vadd.f32 %v1189_v27, %v1147_v33  ;;  %v3508_v53 = vadd.f32 %v1210_v38, %v1200_v52  ;;  %v1506_v33 = vmul.f32 %v1505_v15, %v3532_v14  ;;  %v1508_v38 = vmul.f32 %v1505_v15, %v3537_v48 }
 0x235   :  { %v3510_v35 = vpop.permute.xlu0 %1236  ;;  %v1555_v27 = vstv %s2584_s27  ;;  %s2600_s27 = sld [smem:[#allocation4 + $0x4a]] }
 0x236   :  { %4271 = vst [vmem:[#allocation17_spill] sm:$0xff] %v3508_v53  ;;  %4272 = vst [vmem:[#allocation18_spill] sm:$0xff] %v3510_v35  ;;  %v3512_v43 = vadd.f32 %v1209_v45, %v1199_v47  ;;  %v3584_v45 = vld [vmem:[#allocation2 + $0x49] sm:$0xff] }
 0x237   :  { %v1193_v7 = vpop.permute.xlu1 %1192 }
 0x238   :  { %4273 = vst [vmem:[#allocation19_spill] sm:$0xff] %v3512_v43  ;;  %v1201_v56 = vadd.f32 %v1193_v7, %v1149_v8  ;;  %v1509_v8 = vmul.f32 %v1505_v15, %v3546_v31  ;;  %v3588_v7 = vld [vmem:[#allocation2 + $0x39] sm:$0xff]  ;;  %v1761_v15 = vstv %s2593_s10  ;;  %s3964_s10 = sld [smem:[#allocation4 + $0x47]] }
 0x239   :  { %v3515_v51 = vpop.permute.xlu0 %1240 }
 0x23a   :  { %4274 = vst [vmem:[#allocation20_spill] sm:$0xff] %v3515_v51  ;;  %v3517_v13 = vadd.f32 %v1211_v17, %v1201_v56  ;;  %v1558_v56 = vmul.f32 %v1555_v27, %v3584_v45  ;;  %v1581_v17 = vstv %s2585_s28  ;;  %s2602_s28 = sld [smem:[#allocation4 + $0x4c]] }
 0x23b   :  { %v3519_v34 = vpop.permute.xlu1 %1238 }
 0x23c   :  { %4275 = vst [vmem:[#allocation21_spill] sm:$0xff] %v3517_v13  ;;  %4276 = vst [vmem:[#allocation22_spill] sm:$0xff] %v3519_v34  ;;  %v3783_v13 = vld [vmem:[#allocation2 + $0x4d] sm:$0xff]  ;;  %v3850_v34 = vld [vmem:[#allocation2 + $0x56] sm:$0xff] }
 0x23d   :  { %v1263_v11 = vpop.permute.xlu0 %1262  ;;  %4294 = vst [vmem:[#allocation40_spill] sm:$0xff] %v3783_v13  ;;  %4301 = vst [vmem:[#allocation47_spill] sm:$0xff] %v3850_v34 }
 0x23e   :  { %v1274_v63 = vadd.f32 %v1263_v11, %v1222_v40  ;;  %v1402_v40 = vmul.f32 %v1401_v20, %v3532_v14  ;;  %v1557_v11 = vmul.f32 %v1555_v27, %v3588_v7 }
 0x23f   :  { %v3521_v57 = vpop.permute.xlu1 %1242 }
 0x240   :  { %4277 = vst [vmem:[#allocation23_spill] sm:$0xff] %v3521_v57 }
 0x241   :  { %v1267_v28 = vpop.permute.xlu0 %1266 }
 0x242   :  { %v1276_v0 = vadd.f32 %v1267_v28, %v1224_v41  ;;  %v1430_v41 = vmul.f32 %v1427_v12, %v3537_v48  ;;  %v3594_v28 = vld [vmem:[#allocation2 + $0x51] sm:$0xff] }
 0x243   :  { %v1265_v59 = vpop.permute.xlu1 %1264 }
 0x244   :  { %v1275_v3 = vadd.f32 %v1265_v59, %v1223_v39  ;;  %v1479_v39 = vstv %s2580_s25  ;;  %s2622_s25 = sld [smem:[#allocation4 + $0x60]] }
 0x245   :  { %v3523_v22 = vpop.permute.xlu0 %1288  ;;  %v1480_v55 = vmul.f32 %v1479_v39, %v3532_v14  ;;  %v1482_v24 = vmul.f32 %v1479_v39, %v3537_v48  ;;  %v1481_v32 = vmul.f32 %v1479_v39, %v3540_v44  ;;  %v1483_v52 = vmul.f32 %v1479_v39, %v3546_v31 }
 0x246   :  { %4278 = vst [vmem:[#allocation24_spill] sm:$0xff] %v3523_v22  ;;  %v1863_v22 = vstv %s2598_s0 }
 0x247   :  { %v1269_v58 = vpop.permute.xlu1 %1268 }
 0x248   :  { %v1277_v18 = vadd.f32 %v1269_v58, %v1225_v19  ;;  %v3578_v19 = vld [vmem:[#allocation2 + $0x31] sm:$0xff]  ;;  %v1559_v58 = vmul.f32 %v1555_v27, %v3594_v28 }
 0x249   :  { %v3525_v30 = vpop.permute.xlu0 %1292  ;;  %v1556_v47 = vmul.f32 %v1555_v27, %v3578_v19  ;;  %v1582_v59 = vmul.f32 %v1581_v17, %v3578_v19  ;;  %v1764_v27 = vmul.f32 %v1761_v15, %v3632_v60 }
 0x24a   :  { %4279 = vst [vmem:[#allocation25_spill] sm:$0xff] %v3525_v30 }
 0x24b   :  { %v3527_v62 = vpop.permute.xlu1 %1290 }
 0x24c   :  { %4280 = vst [vmem:[#allocation26_spill] sm:$0xff] %v3527_v62 }
 0x24d   :  { %v1315_v54 = vpop.permute.xlu0 %1314 }
 0x24e   :  { %v1326_v2 = vadd.f32 %v1315_v54, %v1274_v63  ;;  %v1584_v63 = vmul.f32 %v1581_v17, %v3584_v45  ;;  %v1607_v54 = vstv %s2586_s5  ;;  %s2605_s5 = sld [smem:[#allocation4 + $0x4f]] }
 0x24f   :  { %v3529_v6 = vpop.permute.xlu1 %1294 }
 0x250   :  { %4281 = vst [vmem:[#allocation27_spill] sm:$0xff] %v3529_v6  ;;  %1360 = vrot.lane.b32.xlu0 %v1326_v2, %s2751_s21  ;;  %v1583_v2 = vmul.f32 %v1581_v17, %v3588_v7 }
 0x251   :  { %v1319_v5 = vpop.permute.xlu0 %1318 }
 0x252   :  { %v1328_v36 = vadd.f32 %v1319_v5, %v1276_v0  ;;  %v1608_v0 = vmul.f32 %v1607_v54, %v3578_v19  ;;  %v1585_v5 = vmul.f32 %v1581_v17, %v3594_v28 }
 0x253   :  { %v1317_v26 = vpop.permute.xlu1 %1316 }
 0x254   :  { %v1327_v10 = vadd.f32 %v1317_v26, %v1275_v3  ;;  %1364 = vrot.lane.b32.xlu0 %v1328_v36, %s2751_s21  ;;  %v1610_v3 = vmul.f32 %v1607_v54, %v3584_v45  ;;  %v1633_v36 = vstv %s2587_s6  ;;  %v1609_v26 = vmul.f32 %v1607_v54, %v3588_v7  ;;  %s2589_s6 = sld [smem:[#allocation4 + $0x3f]] }
 0x255   :  { %v1634_v20 = vmul.f32 %v1633_v36, %v3578_v19 }
 0x256   :  { %1362 = vrot.lane.b32.xlu1 %v1327_v10, %s2751_s21  ;;  %v1611_v10 = vmul.f32 %v1607_v54, %v3594_v28 }
 0x257   :  { %v1321_v23 = vpop.permute.xlu1 %1320 }
 0x258   :  { %v1329_v25 = vadd.f32 %v1321_v23, %v1277_v18  ;;  %1410 = vrot.lane.b32.xlu0 %v1402_v40, %s2748_s20  ;;  %v1636_v18 = vmul.f32 %v1633_v36, %v3584_v45  ;;  %v1659_v40 = vstv %s2588_s7  ;;  %v1635_v23 = vmul.f32 %v1633_v36, %v3588_v7  ;;  %s2607_s7 = sld [smem:[#allocation4 + $0x51]] }
 0x259   :  { %v1662_v12 = vmul.f32 %v1659_v40, %v3584_v45 }
 0x25a   :  { %1366 = vrot.lane.b32.xlu1 %v1329_v25, %s2751_s21  ;;  %v1660_v25 = vmul.f32 %v1659_v40, %v3578_v19 }
 0x25c   :  { %1414 = vrot.lane.b32.xlu0 %v1404_v46, %s2748_s20  ;;  %v1637_v46 = vmul.f32 %v1633_v36, %v3594_v28  ;;  %v1889_v36 = vstv %s2599_s13  ;;  %s2614_s13 = sld [smem:[#allocation4 + $0x58]] }
 0x25e   :  { %1412 = vrot.lane.b32.xlu1 %v1403_v16, %s2748_s20  ;;  %v3626_v16 = vld [vmem:[#allocation2 + $0x32] sm:$0xff] }
 0x260   :  { %1436 = vrot.lane.b32.xlu0 %v1428_v21, %s2748_s20  ;;  %v1709_v21 = vstv %s2591_s8  ;;  %s3934_s8 = sld [smem:[#allocation4 + $0x40]] }
 0x262   :  { %1416 = vrot.lane.b32.xlu1 %v1405_v61, %s2748_s20  ;;  %v1661_v61 = vmul.f32 %v1659_v40, %v3588_v7 }
 0x264   :  { %1440 = vrot.lane.b32.xlu0 %v1430_v41, %s2748_s20  ;;  %v1710_v41 = vmul.f32 %v1709_v21, %v3626_v16 }
 0x266   :  { %1438 = vrot.lane.b32.xlu1 %v1429_v1, %s2748_s20  ;;  %v1663_v1 = vmul.f32 %v1659_v40, %v3594_v28  ;;  %v3695_v40 = vld [vmem:[#allocation2 + $0x4b] sm:$0xff] }
 0x268   :  { %1462 = vrot.lane.b32.xlu0 %v1454_v49, %s2749_s23  ;;  %v3636_v49 = vld [vmem:[#allocation2 + $0x3a] sm:$0xff] }
 0x269   :  { %v1711_v39 = vmul.f32 %v1709_v21, %v3636_v49 }
 0x26a   :  { %1442 = vrot.lane.b32.xlu1 %v1431_v37, %s2748_s20  ;;  %v1712_v37 = vmul.f32 %v1709_v21, %v3632_v60 }
 0x26c   :  { %1466 = vrot.lane.b32.xlu0 %v1456_v42, %s2749_s23  ;;  %v1735_v42 = vstv %s2592_s9  ;;  %s3953_s9 = sld [smem:[#allocation4 + $0x53]] }
 0x26e   :  { %1464 = vrot.lane.b32.xlu1 %v1455_v50, %s2749_s23  ;;  %v3642_v50 = vld [vmem:[#allocation2 + $0x52] sm:$0xff] }
 0x270   :  { %1488 = vrot.lane.b32.xlu0 %v1480_v55, %s2749_s23  ;;  %v1736_v55 = vmul.f32 %v1735_v42, %v3626_v16 }
 0x272   :  { %1468 = vrot.lane.b32.xlu1 %v1457_v29, %s2749_s23  ;;  %v1713_v29 = vmul.f32 %v1709_v21, %v3642_v50  ;;  %v1892_v21 = vmul.f32 %v1889_v36, %v3695_v40 }
 0x274   :  { %1492 = vrot.lane.b32.xlu0 %v1482_v24, %s2749_s23  ;;  %v1738_v24 = vmul.f32 %v1735_v42, %v3632_v60 }
 0x276   :  { %1490 = vrot.lane.b32.xlu1 %v1481_v32, %s2749_s23  ;;  %v1737_v32 = vmul.f32 %v1735_v42, %v3636_v49 }
 0x278   :  { %1514 = vrot.lane.b32.xlu0 %v1506_v33, %s2750_s26  ;;  %v1762_v33 = vmul.f32 %v1761_v15, %v3626_v16 }
 0x27a   :  { %1494 = vrot.lane.b32.xlu1 %v1483_v52, %s2749_s23  ;;  %v3654_v52 = vpop.permute.xlu0 %1340 }
 0x27b   :  { %4282 = vst [vmem:[#allocation28_spill] sm:$0xff] %v3654_v52 }
 0x27c   :  { %1518 = vrot.lane.b32.xlu0 %v1508_v38, %s2750_s26  ;;  %v1739_v38 = vmul.f32 %v1735_v42, %v3642_v50 }
 0x27e   :  { %1516 = vrot.lane.b32.xlu1 %v1507_v4, %s2750_s26  ;;  %v1787_v4 = vstv %s2594_s11  ;;  %s3975_s11 = sld [smem:[#allocation4 + $0x46]] }
 0x27f   :  { %v1788_v17 = vmul.f32 %v1787_v4, %v3626_v16 }
 0x280   :  { %1564 = vrot.lane.b32.xlu0 %v1556_v47, %s2748_s20  ;;  %v1763_v47 = vmul.f32 %v1761_v15, %v3636_v49 }
 0x282   :  { %1520 = vrot.lane.b32.xlu1 %v1509_v8, %s2750_s26  ;;  %v3662_v8 = vpop.permute.xlu1 %1342 }
 0x283   :  { %4283 = vst [vmem:[#allocation29_spill] sm:$0xff] %v3662_v8 }
 0x284   :  { %1568 = vrot.lane.b32.xlu0 %v1558_v56, %s2748_s20  ;;  %v3664_v56 = vpop.permute.xlu0 %1344 }
 0x285   :  { %4284 = vst [vmem:[#allocation30_spill] sm:$0xff] %v3664_v56 }
 0x286   :  { %1566 = vrot.lane.b32.xlu1 %v1557_v11, %s2748_s20  ;;  %v1765_v11 = vmul.f32 %v1761_v15, %v3642_v50  ;;  %v3676_v54 = vpop.permute.xlu1 %1346 }
 0x287   :  { %4286 = vst [vmem:[#allocation32_spill] sm:$0xff] %v3676_v54  ;;  %v3762_v54 = vld [vmem:[#allocation2 + $0x35] sm:$0xff] }
 0x288   :  { %1590 = vrot.lane.b32.xlu0 %v1582_v59, %s2748_s20  ;;  %4292 = vst [vmem:[#allocation38_spill] sm:$0xff] %v3762_v54 }
 0x28a   :  { %1570 = vrot.lane.b32.xlu1 %v1559_v58, %s2748_s20  ;;  %v1790_v58 = vmul.f32 %v1787_v4, %v3632_v60 }
 0x28c   :  { %1594 = vrot.lane.b32.xlu0 %v1584_v63, %s2748_s20  ;;  %v3674_v63 = vstv %s2595_s12  ;;  %s4000_s12 = sld [smem:[#allocation4 + $0x56]] }
 0x28d   :  { %v1817_v9 = vmul.f32 %v3674_v63, %v3642_v50 }
 0x28e   :  { %1592 = vrot.lane.b32.xlu1 %v1583_v2, %s2748_s20  ;;  %v1789_v2 = vmul.f32 %v1787_v4, %v3636_v49 }
 0x290   :  { %1616 = vrot.lane.b32.xlu0 %v1608_v0, %s2749_s23 }
 0x292   :  { %1596 = vrot.lane.b32.xlu1 %v1585_v5, %s2748_s20  ;;  %v1814_v5 = vmul.f32 %v3674_v63, %v3626_v16 }
 0x294   :  { %1620 = vrot.lane.b32.xlu0 %v1610_v3, %s2749_s23  ;;  %v3685_v3 = vld [vmem:[#allocation2 + $0x33] sm:$0xff] }
 0x296   :  { %1618 = vrot.lane.b32.xlu1 %v1609_v26, %s2749_s23 }
 0x298   :  { %1642 = vrot.lane.b32.xlu0 %v1634_v20, %s2749_s23  ;;  %v1791_v20 = vmul.f32 %v1787_v4, %v3642_v50 }
 0x29a   :  { %1622 = vrot.lane.b32.xlu1 %v1611_v10, %s2749_s23 }
 0x29c   :  { %1646 = vrot.lane.b32.xlu0 %v1636_v18, %s2749_s23  ;;  %v1890_v18 = vmul.f32 %v1889_v36, %v3685_v3 }
 0x29e   :  { %1644 = vrot.lane.b32.xlu1 %v1635_v23, %s2749_s23 }
 0x2a0   :  { %1668 = vrot.lane.b32.xlu0 %v1660_v25, %s2750_s26  ;;  %v1815_v25 = vmul.f32 %v3674_v63, %v3636_v49 }
 0x2a2   :  { %1648 = vrot.lane.b32.xlu1 %v1637_v46, %s2749_s23  ;;  %v3702_v46 = vld [vmem:[#allocation2 + $0x3b] sm:$0xff] }
 0x2a3   :  { %4290 = vst [vmem:[#allocation36_spill] sm:$0xff] %v3702_v46 }
 0x2a4   :  { %1672 = vrot.lane.b32.xlu0 %v1662_v12, %s2750_s26 }
 0x2a6   :  { %1670 = vrot.lane.b32.xlu1 %v1661_v61, %s2750_s26  ;;  %v1941_v61 = vstv %s2601_s14  ;;  %s2604_s14 = sld [smem:[#allocation4 + $0x4e]] }
 0x2a7   :  { %v1944_v15 = vmul.f32 %v1941_v61, %v3695_v40 }
 0x2a8   :  { %1718 = vrot.lane.b32.xlu0 %v1710_v41, %s2748_s20 }
 0x2aa   :  { %1674 = vrot.lane.b32.xlu1 %v1663_v1, %s2750_s26  ;;  %v1891_v1 = vmul.f32 %v1889_v36, %v3702_v46 }
 0x2ac   :  { %1722 = vrot.lane.b32.xlu0 %v1712_v37, %s2748_s20  ;;  %v3712_v37 = vld [vmem:[#allocation2 + $0x53] sm:$0xff] }
 0x2ae   :  { %1720 = vrot.lane.b32.xlu1 %v1711_v39, %s2748_s20  ;;  %v1942_v39 = vmul.f32 %v1941_v61, %v3685_v3 }
 0x2b0   :  { %1744 = vrot.lane.b32.xlu0 %v1736_v55, %s2748_s20 }
 0x2b2   :  { %1724 = vrot.lane.b32.xlu1 %v1713_v29, %s2748_s20  ;;  %v1893_v29 = vmul.f32 %v1889_v36, %v3712_v37 }
 0x2b4   :  { %1748 = vrot.lane.b32.xlu0 %v1738_v24, %s2748_s20 }
 0x2b6   :  { %1746 = vrot.lane.b32.xlu1 %v1737_v32, %s2748_s20  ;;  %v3724_v32 = vld [vmem:[#allocation2 + $0x34] sm:$0xff] }
 0x2b8   :  { %1770 = vrot.lane.b32.xlu0 %v1762_v33, %s2749_s23  ;;  %v2043_v33 = vstv %s2606_s15  ;;  %s2616_s15 = sld [smem:[#allocation4 + $0x5a]] }
 0x2ba   :  { %1750 = vrot.lane.b32.xlu1 %v1739_v38, %s2748_s20 }
 0x2bc   :  { %1774 = vrot.lane.b32.xlu0 %v1764_v27, %s2749_s23  ;;  %v1943_v27 = vmul.f32 %v1941_v61, %v3702_v46 }
 0x2be   :  { %1772 = vrot.lane.b32.xlu1 %v1763_v47, %s2749_s23  ;;  %v2044_v47 = vmul.f32 %v2043_v33, %v3724_v32 }
 0x2c0   :  { %1796 = vrot.lane.b32.xlu0 %v1788_v17, %s2749_s23  ;;  %v3734_v17 = vld [vmem:[#allocation2 + $0x4c] sm:$0xff] }
 0x2c1   :  { %v2046_v36 = vmul.f32 %v2043_v33, %v3734_v17 }
 0x2c2   :  { %1776 = vrot.lane.b32.xlu1 %v1765_v11, %s2749_s23  ;;  %v3671_v59 = vpop.permute.xlu0 %1360 }
 0x2c3   :  { %4285 = vst [vmem:[#allocation31_spill] sm:$0xff] %v3671_v59 }
 0x2c4   :  { %1800 = vrot.lane.b32.xlu0 %v1790_v58, %s2749_s23  ;;  %v1945_v58 = vmul.f32 %v1941_v61, %v3712_v37  ;;  %v3748_v61 = vstv %s2576_s2  ;;  %s2611_s2 = sld [smem:[#allocation4 + $0x55]] }
 0x2c6   :  { %1798 = vrot.lane.b32.xlu1 %v1789_v2, %s2749_s23  ;;  %v3681_v0 = vpop.permute.xlu0 %1364  ;;  %v3738_v2 = vld [vmem:[#allocation2 + $0x3c] sm:$0xff] }
 0x2c7   :  { %4287 = vst [vmem:[#allocation33_spill] sm:$0xff] %v3681_v0 }
 0x2c8   :  { %v3687_v26 = vpop.permute.xlu1 %1362  ;;  %1822 = vrot.lane.b32.xlu0 %v1814_v5, %s2750_s26 }
 0x2c9   :  { %4288 = vst [vmem:[#allocation34_spill] sm:$0xff] %v3687_v26  ;;  %v2197_v26 = vstv %s2613_s3  ;;  %s2623_s3 = sld [smem:[#allocation4 + $0x61]] }
 0x2ca   :  { %1802 = vrot.lane.b32.xlu1 %v1791_v20, %s2749_s23  ;;  %v3692_v10 = vpop.permute.xlu0 %1410  ;;  %v2095_v20 = vstv %s2608_s16  ;;  %v2198_v0 = vmul.f32 %v2197_v26, %v3762_v54  ;;  %s2619_s16 = sld [smem:[#allocation4 + $0x5d]] }
 0x2cc   :  { %v3697_v23 = vpop.permute.xlu1 %1366  ;;  %1898 = vrot.lane.b32.xlu0 %v1890_v18, %s2748_s20 }
 0x2cd   :  { %4289 = vst [vmem:[#allocation35_spill] sm:$0xff] %v3697_v23 }
 0x2ce   :  { %1824 = vrot.lane.b32.xlu1 %v1815_v25, %s2750_s26  ;;  %v3705_v12 = vpop.permute.xlu0 %1414  ;;  %v2045_v25 = vmul.f32 %v2043_v33, %v3738_v2 }
 0x2d0   :  { %v3708_v41 = vpop.permute.xlu1 %1412  ;;  %1902 = vrot.lane.b32.xlu0 %v1892_v21, %s2748_s20  ;;  %v3746_v21 = vld [vmem:[#allocation2 + $0x54] sm:$0xff] }
 0x2d1   :  { %v2099_v56 = vmul.f32 %v2095_v20, %v3746_v21 }
 0x2d2   :  { %1900 = vrot.lane.b32.xlu1 %v1891_v1, %s2748_s20  ;;  %v3715_v42 = vpop.permute.xlu0 %1436 }
 0x2d4   :  { %v3718_v55 = vpop.permute.xlu1 %1416  ;;  %1950 = vrot.lane.b32.xlu0 %v1942_v39, %s2749_s23  ;;  %v2096_v39 = vmul.f32 %v2095_v20, %v3724_v32 }
 0x2d6   :  { %1904 = vrot.lane.b32.xlu1 %v1893_v29, %s2748_s20  ;;  %v1441_v24 = vpop.permute.xlu0 %1440  ;;  %v1394_v29 = vmul.f32 %v3748_v61, %v3537_v48 }
 0x2d8   :  { %v3726_v38 = vpop.permute.xlu1 %1438  ;;  %1954 = vrot.lane.b32.xlu0 %v1944_v15, %s2749_s23 }
 0x2d9   :  { %4291 = vst [vmem:[#allocation37_spill] sm:$0xff] %v3726_v38 }
 0x2da   :  { %1952 = vrot.lane.b32.xlu1 %v1943_v27, %s2749_s23  ;;  %v3731_v4 = vpop.permute.xlu0 %1462  ;;  %v2047_v27 = vmul.f32 %v2043_v33, %v3746_v21  ;;  %v3766_v33 = vstv %s2575_s18  ;;  %s2618_s18 = sld [smem:[#allocation4 + $0x5c]] }
 0x2db   :  { %v1382_v38 = vmul.f32 %v3766_v33, %v3532_v14 }
 0x2dc   :  { %v1443_v11 = vpop.permute.xlu1 %1442  ;;  %2052 = vrot.lane.b32.xlu0 %v2044_v47, %s2748_s20  ;;  %v1450_v47 = vadd.f32 %v1441_v24, %v1394_v29  ;;  %v2097_v24 = vmul.f32 %v2095_v20, %v3738_v2  ;;  %v1384_v29 = vmul.f32 %v3766_v33, %v3537_v48 }
 0x2de   :  { %1956 = vrot.lane.b32.xlu1 %v1945_v58, %s2749_s23  ;;  %v1467_v5 = vpop.permute.xlu0 %1466  ;;  %v1424_v8 = vadd.f32 %v3705_v12, %v1384_v29  ;;  %v2200_v12 = vmul.f32 %v2197_v26, %v3783_v13  ;;  %v2249_v29 = vstv %s2615_s22 }
 0x2e0   :  { %v3742_v18 = vpop.permute.xlu1 %1464  ;;  %2056 = vrot.lane.b32.xlu0 %v2046_v36, %s2748_s20  ;;  %v2098_v36 = vmul.f32 %v2095_v20, %v3734_v17  ;;  %v1476_v48 = vadd.f32 %v1467_v5, %v1424_v8  ;;  %v1385_v20 = vmul.f32 %v3766_v33, %v3546_v31 }
 0x2e2   :  { %2054 = vrot.lane.b32.xlu1 %v2045_v25, %s2748_s20  ;;  %v3751_v1 = vpop.permute.xlu0 %1488  ;;  %v3760_v25 = vstv %s2583_s17  ;;  %v1425_v5 = vadd.f32 %v3718_v55, %v1385_v20  ;;  %v2252_v20 = vmul.f32 %v2249_v29, %v3783_v13  ;;  %v2017_v13 = vstv %s2605_s5  ;;  %s2621_s17 = sld [smem:[#allocation4 + $0x5f]] }
 0x2e3   :  { %v1548_v6 = vmul.f32 %v3760_v25, %v3584_v45 }
 0x2e4   :  { %v1469_v15 = vpop.permute.xlu1 %1468  ;;  %2104 = vrot.lane.b32.xlu0 %v2096_v39, %s2749_s23 }
 0x2e6   :  { %2058 = vrot.lane.b32.xlu1 %v2047_v27, %s2748_s20  ;;  %v1493_v58 = vpop.permute.xlu0 %1492  ;;  %v1395_v27 = vmul.f32 %v3748_v61, %v3546_v31 }
 0x2e7   :  { %v1502_v23 = vadd.f32 %v1493_v58, %v1450_v47 }
 0x2e8   :  { %v3768_v39 = vpop.permute.xlu1 %1490  ;;  %2108 = vrot.lane.b32.xlu0 %v2098_v36, %s2749_s23  ;;  %v1451_v57 = vadd.f32 %v1443_v11, %v1395_v27  ;;  %v3793_v11 = vstv %s2582_s19 }
 0x2e9   :  { %4293 = vst [vmem:[#allocation39_spill] sm:$0xff] %v3768_v39  ;;  %v3776_v47 = vadd.f32 %v1548_v6, %v1502_v23  ;;  %v3787_v6 = vld [vmem:[#allocation2 + $0x3d] sm:$0xff]  ;;  %v1549_v23 = vmul.f32 %v3760_v25, %v3594_v28  ;;  %v1539_v55 = vmul.f32 %v3793_v11, %v3594_v28 }
 0x2ea   :  { %2106 = vrot.lane.b32.xlu1 %v2097_v24, %s2749_s23  ;;  %v3779_v58 = vpop.permute.xlu0 %1514  ;;  %4295 = vst [vmem:[#allocation41_spill] sm:$0xff] %v3787_v6 }
 0x2ec   :  { %v1495_v36 = vpop.permute.xlu1 %1494  ;;  %2206 = vrot.lane.b32.xlu0 %v2198_v0, %s2748_s20 }
 0x2ed   :  { %v1503_v62 = vadd.f32 %v1495_v36, %v1451_v57  ;;  %v1538_v57 = vmul.f32 %v3793_v11, %v3584_v45  ;;  %v3806_v36 = vld [vmem:[#allocation2 + $0x55] sm:$0xff]  ;;  %v2250_v45 = vmul.f32 %v2249_v29, %v3762_v54 }
 0x2ee   :  { %2110 = vrot.lane.b32.xlu1 %v2099_v56, %s2749_s23  ;;  %v1519_v24 = vpop.permute.xlu0 %1518  ;;  %v2199_v56 = vmul.f32 %v2197_v26, %v3787_v6  ;;  %4296 = vst [vmem:[#allocation42_spill] sm:$0xff] %v3806_v36 }
 0x2ef   :  { %v1528_v27 = vadd.f32 %v1519_v24, %v1476_v48  ;;  %v3799_v8 = vadd.f32 %v1549_v23, %v1503_v62  ;;  %v1477_v62 = vadd.f32 %v1469_v15, %v1425_v5  ;;  %v2201_v23 = vmul.f32 %v2197_v26, %v3806_v36 }
 0x2f0   :  { %v3801_v0 = vpop.permute.xlu1 %1516  ;;  %2210 = vrot.lane.b32.xlu0 %v2200_v12, %s2748_s20  ;;  %v2351_v15 = vstv %s2620_s24  ;;  %v2251_v26 = vmul.f32 %v2249_v29, %v3787_v6 }
 0x2f1   :  { %v3808_v59 = vadd.f32 %v1538_v57, %v1528_v27  ;;  %v3824_v57 = vld [vmem:[#allocation2 + $0x36] sm:$0xff]  ;;  %v2355_v43 = vmul.f32 %v2351_v15, %v3850_v34 }
 0x2f2   :  { %2208 = vrot.lane.b32.xlu1 %v2199_v56, %s2748_s20  ;;  %v3811_v31 = vpop.permute.xlu0 %1564  ;;  %4297 = vst [vmem:[#allocation43_spill] sm:$0xff] %v3824_v57  ;;  %v2352_v5 = vmul.f32 %v2351_v15, %v3824_v57 }
 0x2f4   :  { %v1521_v48 = vpop.permute.xlu1 %1520  ;;  %2258 = vrot.lane.b32.xlu0 %v2250_v45, %s2749_s23  ;;  %v3834_v45 = vld [vmem:[#allocation2 + $0x4e] sm:$0xff] }
 0x2f5   :  { %v1529_v24 = vadd.f32 %v1521_v48, %v1477_v62  ;;  %4298 = vst [vmem:[#allocation44_spill] sm:$0xff] %v3834_v45  ;;  %v2253_v48 = vmul.f32 %v2249_v29, %v3806_v36 }
 0x2f6   :  { %2212 = vrot.lane.b32.xlu1 %v2201_v23, %s2748_s20  ;;  %v3819_v12 = vpop.permute.xlu0 %1568  ;;  %v3840_v23 = vld [vmem:[#allocation2 + $0x3e] sm:$0xff] }
 0x2f7   :  { %v3822_v27 = vadd.f32 %v1539_v55, %v1529_v24  ;;  %4299 = vst [vmem:[#allocation45_spill] sm:$0xff] %v3840_v23  ;;  %v2354_v55 = vmul.f32 %v2351_v15, %v3834_v45  ;;  %v2353_v30 = vmul.f32 %v2351_v15, %v3840_v23  ;;  %v1816_v15 = vmul.f32 %v3674_v63, %v3632_v60 }
 0x2f8   :  { %v3826_v56 = vpop.permute.xlu1 %1566  ;;  %2262 = vrot.lane.b32.xlu0 %v2252_v20, %s2749_s23  ;;  %v2403_v20 = vstv %s2622_s25  ;;  %v1578_v6 = vadd.f32 %v3819_v12, %v3808_v59  ;;  %v2018_v59 = vmul.f32 %v2017_v13, %v3724_v32 }
 0x2fa   :  { %2260 = vrot.lane.b32.xlu1 %v2251_v26, %s2749_s23  ;;  %v3831_v28 = vpop.permute.xlu0 %1590 }
 0x2fc   :  { %v3836_v62 = vpop.permute.xlu1 %1570  ;;  %2360 = vrot.lane.b32.xlu0 %v2352_v5, %s2748_s20  ;;  %v2404_v5 = vmul.f32 %v2403_v20, %v3824_v57 }
 0x2fe   :  { %2264 = vrot.lane.b32.xlu1 %v2253_v48, %s2749_s23  ;;  %v3843_v24 = vpop.permute.xlu0 %1594 }
 0x300   :  { %v3846_v26 = vpop.permute.xlu1 %1592  ;;  %2364 = vrot.lane.b32.xlu0 %v2354_v55, %s2748_s20  ;;  %v2406_v55 = vmul.f32 %v2403_v20, %v3834_v45 }
 0x301   :  { %4300 = vst [vmem:[#allocation46_spill] sm:$0xff] %v3846_v26  ;;  %v1967_v26 = vstv %s2602_s28 }
 0x302   :  { %2362 = vrot.lane.b32.xlu1 %v2353_v30, %s2748_s20  ;;  %v3853_v29 = vpop.permute.xlu0 %1616  ;;  %v2405_v30 = vmul.f32 %v2403_v20, %v3840_v23 }
 0x304   :  { %v3856_v48 = vpop.permute.xlu1 %1596  ;;  %2412 = vrot.lane.b32.xlu0 %v2404_v5, %s2749_s23 }
 0x306   :  { %2366 = vrot.lane.b32.xlu1 %v2355_v43, %s2748_s20  ;;  %v1621_v52 = vpop.permute.xlu0 %1620  ;;  %v2407_v43 = vmul.f32 %v2403_v20, %v3850_v34  ;;  %v1866_v20 = vmul.f32 %v1863_v22, %v3695_v40  ;;  %v1865_v34 = vmul.f32 %v1863_v22, %v3702_v46 }
 0x308   :  { %v3862_v51 = vpop.permute.xlu1 %1618  ;;  %2416 = vrot.lane.b32.xlu0 %v2406_v55, %s2749_s23  ;;  %v1864_v55 = vmul.f32 %v1863_v22, %v3685_v3 }
 0x30a   :  { %2414 = vrot.lane.b32.xlu1 %v2405_v30, %s2749_s23  ;;  %v3867_v53 = vpop.permute.xlu0 %1642 }
 0x30c   :  { %v3871_v5 = vpop.permute.xlu1 %1622  ;;  %1826 = vrot.lane.b32.xlu0 %v1816_v15, %s2750_s26  ;;  %v1915_v15 = vstv %s2600_s27 }
 0x30d   :  { %v1916_v63 = vmul.f32 %v1915_v15, %v3685_v3 }
 0x30e   :  { %2418 = vrot.lane.b32.xlu1 %v2407_v43, %s2749_s23  ;;  %v3876_v35 = vpop.permute.xlu0 %1646 }
 0x310   :  { %v3879_v30 = vpop.permute.xlu1 %1644  ;;  %1872 = vrot.lane.b32.xlu0 %v1864_v55, %s2748_s20 }
 0x311   :  { %4302 = vst [vmem:[#allocation48_spill] sm:$0xff] %v3879_v30  ;;  %v1918_v30 = vmul.f32 %v1915_v15, %v3695_v40 }
 0x312   :  { %1828 = vrot.lane.b32.xlu1 %v1817_v9, %s2750_s26  ;;  %v3885_v23 = vpop.permute.xlu0 %1668  ;;  %v1867_v9 = vmul.f32 %v1863_v22, %v3712_v37  ;;  %v1968_v22 = vmul.f32 %v1967_v26, %v3685_v3 }
 0x314   :  { %v3888_v43 = vpop.permute.xlu1 %1648  ;;  %1876 = vrot.lane.b32.xlu0 %v1866_v20, %s2748_s20 }
 0x316   :  { %1874 = vrot.lane.b32.xlu1 %v1865_v34, %s2748_s20  ;;  %v1673_v45 = vpop.permute.xlu0 %1672  ;;  %v1917_v34 = vmul.f32 %v1915_v15, %v3702_v46 }
 0x318   :  { %v3894_v55 = vpop.permute.xlu1 %1670  ;;  %1924 = vrot.lane.b32.xlu0 %v1916_v63, %s2749_s23 }
 0x31a   :  { %1878 = vrot.lane.b32.xlu1 %v1867_v9, %s2748_s20  ;;  %v3899_v57 = vpop.permute.xlu0 %1718  ;;  %v1919_v9 = vmul.f32 %v1915_v15, %v3712_v37  ;;  %v1969_v15 = vmul.f32 %v1967_v26, %v3702_v46  ;;  %v3932_v46 = vstv %s2589_s6 }
 0x31c   :  { %v1675_v20 = vpop.permute.xlu1 %1674  ;;  %1928 = vrot.lane.b32.xlu0 %v1918_v30, %s2749_s23  ;;  %v1970_v30 = vmul.f32 %v1967_v26, %v3695_v40 }
 0x31e   :  { %1926 = vrot.lane.b32.xlu1 %v1917_v34, %s2749_s23  ;;  %v1723_v39 = vpop.permute.xlu0 %1722  ;;  %v1422_v34 = vadd.f32 %v3692_v10, %v1382_v38 }
 0x320   :  { %v3906_v63 = vpop.permute.xlu1 %1720  ;;  %1976 = vrot.lane.b32.xlu0 %v1968_v22, %s2750_s26  ;;  %v1474_v22 = vadd.f32 %v3731_v4, %v1422_v34 }
 0x321   :  { %4303 = vst [vmem:[#allocation49_spill] sm:$0xff] %v3906_v63 }
 0x322   :  { %1930 = vrot.lane.b32.xlu1 %v1919_v9, %s2749_s23  ;;  %v3913_v36 = vpop.permute.xlu0 %1744  ;;  %v1630_v9 = vadd.f32 %v1621_v52, %v1578_v6  ;;  %v1526_v38 = vadd.f32 %v3779_v58, %v1474_v22  ;;  %v1971_v52 = vmul.f32 %v1967_v26, %v3712_v37  ;;  %v1692_v58 = vmul.f32 %v3932_v46, %v3632_v60 }
 0x323   :  { %4304 = vst [vmem:[#allocation50_spill] sm:$0xff] %v3913_v36  ;;  %v1383_v36 = vmul.f32 %v3766_v33, %v3540_v44  ;;  %v1536_v44 = vmul.f32 %v3793_v11, %v3578_v19  ;;  %v1579_v33 = vadd.f32 %v3836_v62, %v3822_v27  ;;  %v3956_v62 = vstv %s2607_s7 }
 0x324   :  { %v3919_v54 = vpop.permute.xlu1 %1724  ;;  %1980 = vrot.lane.b32.xlu0 %v1970_v30, %s2750_s26  ;;  %v1682_v12 = vadd.f32 %v1673_v45, %v1630_v9  ;;  %v2020_v45 = vmul.f32 %v2017_v13, %v3734_v17 }
 0x325   :  { %v1423_v63 = vadd.f32 %v3708_v41, %v1383_v36  ;;  %v1392_v41 = vmul.f32 %v3748_v61, %v3532_v14  ;;  %v1540_v26 = vadd.f32 %v1536_v44, %v1526_v38  ;;  %v1631_v30 = vadd.f32 %v3871_v5, %v1579_v33 }
 0x326   :  { %1978 = vrot.lane.b32.xlu1 %v1969_v15, %s2750_s26  ;;  %v3927_v10 = vpop.permute.xlu0 %1748  ;;  %v1696_v27 = vadd.f32 %v1692_v58, %v1682_v12  ;;  %v1604_v5 = vadd.f32 %v3843_v24, %v3776_v47  ;;  %v2070_v38 = vmul.f32 %v3956_v62, %v3724_v32  ;;  %v3986_v24 = vstv %s3934_s8 }
 0x327   :  { %v1475_v6 = vadd.f32 %v3742_v18, %v1423_v63  ;;  %v1448_v34 = vadd.f32 %v3715_v42, %v1392_v41  ;;  %v2019_v18 = vmul.f32 %v2017_v13, %v3738_v2  ;;  %v1576_v63 = vadd.f32 %v3811_v31, %v1540_v26 }
 0x328   :  { %v3936_v4 = vpop.permute.xlu1 %1746  ;;  %2026 = vrot.lane.b32.xlu0 %v2018_v59, %s2748_s20  ;;  %v1683_v22 = vadd.f32 %v1675_v20, %v1631_v30  ;;  %v1732_v9 = vadd.f32 %v1723_v39, %v1696_v27  ;;  %v1656_v12 = vadd.f32 %v3876_v35, %v1604_v5  ;;  %v1693_v39 = vmul.f32 %v3932_v46, %v3642_v50 }
 0x329   :  { %v1527_v14 = vadd.f32 %v3801_v0, %v1475_v6  ;;  %v1500_v42 = vadd.f32 %v3751_v1, %v1448_v34  ;;  %v1537_v0 = vmul.f32 %v3793_v11, %v3588_v7  ;;  %v1628_v31 = vadd.f32 %v3853_v29, %v1576_v63 }
 0x32a   :  { %1982 = vrot.lane.b32.xlu1 %v1971_v52, %s2750_s26  ;;  %v3950_v36 = vpop.permute.xlu0 %1770  ;;  %v1546_v11 = vmul.f32 %v3760_v25, %v3578_v19  ;;  %v2021_v52 = vmul.f32 %v2017_v13, %v3746_v21  ;;  %v1697_v29 = vadd.f32 %v1693_v39, %v1683_v22  ;;  %v1702_v44 = vmul.f32 %v3986_v24, %v3632_v60 }
 0x32b   :  { %v1541_v47 = vadd.f32 %v1537_v0, %v1527_v14  ;;  %v1680_v35 = vadd.f32 %v3885_v23, %v1628_v31  ;;  %v2072_v41 = vmul.f32 %v3956_v62, %v3734_v17  ;;  %v2121_v6 = vstv %s3953_s9 }
 0x32c   :  { %v3960_v15 = vpop.permute.xlu1 %1750  ;;  %2030 = vrot.lane.b32.xlu0 %v2020_v45, %s2748_s20  ;;  %v1550_v58 = vadd.f32 %v1546_v11, %v1500_v42  ;;  %v1605_v13 = vadd.f32 %v3856_v48, %v3799_v8  ;;  %v1690_v23 = vmul.f32 %v3932_v46, %v3626_v16  ;;  %v1733_v60 = vadd.f32 %v3919_v54, %v1697_v29 }
 0x32d   :  { %v1577_v33 = vadd.f32 %v3826_v56, %v1541_v47  ;;  %v1706_v56 = vadd.f32 %v1702_v44, %v1656_v12  ;;  %v2071_v27 = vmul.f32 %v3956_v62, %v3738_v2  ;;  %v4013_v34 = vstv %s3964_s10  ;;  %v4306_v44 = vld [vmem:[#allocation50_spill] sm:$0xff] }
 0x32e   :  { %2028 = vrot.lane.b32.xlu1 %v2019_v18, %s2748_s20  ;;  %v1775_v59 = vpop.permute.xlu0 %1774  ;;  %v1602_v45 = vadd.f32 %v3831_v28, %v1550_v58  ;;  %v1657_v8 = vadd.f32 %v3888_v43, %v1605_v13  ;;  %v1694_v48 = vadd.f32 %v1690_v23, %v1680_v35  ;;  %v1703_v28 = vmul.f32 %v3986_v24, %v3642_v50  ;;  %v4305_v35 = vld [vmem:[#allocation49_spill] sm:$0xff]  ;;  %v4307_v13 = vld [vmem:[#allocation38_spill] sm:$0xff] }
 0x32f   :  { %v3981_v1 = vadd.f32 %v1775_v59, %v1732_v9  ;;  %v1629_v26 = vadd.f32 %v3862_v51, %v1577_v33  ;;  %v1758_v14 = vadd.f32 %v3927_v10, %v1706_v56  ;;  %v2122_v18 = vmul.f32 %v2121_v6, %v3724_v32 }
 0x330   :  { %v3988_v20 = vpop.permute.xlu1 %1772  ;;  %2078 = vrot.lane.b32.xlu0 %v2070_v38, %s2749_s23  ;;  %v1856_v63 = vmul.f32 %v4013_v34, %v3695_v40  ;;  %v4026_v5 = vstv %s3975_s11  ;;  %v1654_v43 = vadd.f32 %v3867_v53, %v1602_v45  ;;  %v1730_v22 = vadd.f32 %v3899_v57, %v1694_v48 }
 0x331   :  { %v1681_v10 = vadd.f32 %v3894_v55, %v1629_v26  ;;  %v1691_v50 = vmul.f32 %v3932_v46, %v3636_v49  ;;  %v2073_v0 = vmul.f32 %v3956_v62, %v3746_v21  ;;  %v1700_v59 = vmul.f32 %v3986_v24, %v3626_v16 }
 0x332   :  { %2032 = vrot.lane.b32.xlu1 %v2021_v52, %s2748_s20  ;;  %v1797_v19 = vpop.permute.xlu0 %1796  ;;  %v1707_v38 = vadd.f32 %v1703_v28, %v1657_v8  ;;  %v1782_v53 = vadd.f32 %v3950_v36, %v1730_v22  ;;  %v2124_v31 = vmul.f32 %v2121_v6, %v3734_v17  ;;  %v2171_v46 = vstv %s4000_s12 }
 0x333   :  { %v1844_v12 = vmul.f32 %v4026_v5, %v3685_v3  ;;  %v1695_v39 = vadd.f32 %v1691_v50, %v1681_v10  ;;  %v1704_v62 = vadd.f32 %v1700_v59, %v1654_v43  ;;  %v2123_v52 = vmul.f32 %v2121_v6, %v3738_v2 }
 0x334   :  { %v1777_v30 = vpop.permute.xlu1 %1776  ;;  %2082 = vrot.lane.b32.xlu0 %v2072_v41, %s2749_s23  ;;  %v1759_v47 = vadd.f32 %v3960_v15, %v1707_v38  ;;  %v1857_v36 = vmul.f32 %v4013_v34, %v3712_v37  ;;  %v2172_v23 = vmul.f32 %v2171_v46, %v4307_v13  ;;  %v1854_v8 = vmul.f32 %v4013_v34, %v3685_v3  ;;  %v2652_v38 = vld [vmem:[#allocation2 + $0x38] sm:$0xff] }
 0x335   :  { %v4017_v54 = vadd.f32 %v1777_v30, %v1733_v60  ;;  %v1731_v29 = vadd.f32 %v4305_v35, %v1695_v39  ;;  %v1756_v33 = vadd.f32 %v4306_v44, %v1704_v62  ;;  %v2125_v30 = vmul.f32 %v2121_v6, %v3746_v21  ;;  %v4311_v62 = vld [vmem:[#allocation37_spill] sm:$0xff] }
 0x336   :  { %2080 = vrot.lane.b32.xlu1 %v2071_v27, %s2749_s23  ;;  %v1801_v51 = vpop.permute.xlu0 %1800  ;;  %v4070_v6 = vstv %s2604_s14 }
 0x337   :  { %v1810_v9 = vadd.f32 %v1801_v51, %v1758_v14  ;;  %v1783_v60 = vadd.f32 %v3988_v20, %v1731_v29  ;;  %v1808_v56 = vadd.f32 %v1797_v19, %v1756_v33  ;;  %v4308_v14 = vld [vmem:[#allocation40_spill] sm:$0xff]  ;;  %v4309_v19 = vld [vmem:[#allocation41_spill] sm:$0xff]  ;;  %v1547_v33 = vmul.f32 %v3760_v25, %v3588_v7 }
 0x338   :  { %v4033_v42 = vpop.permute.xlu1 %1798  ;;  %2130 = vrot.lane.b32.xlu0 %v2122_v18, %s2750_s26  ;;  %v2174_v28 = vmul.f32 %v2171_v46, %v4308_v14  ;;  %v2223_v18 = vstv %s2614_s13  ;;  %v2325_v7 = vstv %s2619_s16 }
 0x339   :  { %v1860_v55 = vadd.f32 %v1856_v63, %v1810_v9  ;;  %v1858_v51 = vadd.f32 %v1854_v8, %v1808_v56  ;;  %v2173_v63 = vmul.f32 %v2171_v46, %v4309_v19  ;;  %v2224_v10 = vmul.f32 %v2223_v18, %v4307_v13 }
 0x33a   :  { %2084 = vrot.lane.b32.xlu1 %v2073_v0, %s2749_s23  ;;  %v1823_v57 = vpop.permute.xlu0 %1822  ;;  %v2008_v9 = vmul.f32 %v4070_v6, %v3724_v32  ;;  %v4310_v0 = vld [vmem:[#allocation42_spill] sm:$0xff]  ;;  %v2226_v39 = vmul.f32 %v2223_v18, %v4308_v14 }
 0x33b   :  { %v1834_v11 = vadd.f32 %v1823_v57, %v1782_v53  ;;  %v2175_v59 = vmul.f32 %v2171_v46, %v4310_v0  ;;  %v1393_v53 = vmul.f32 %v2652_v38, %v3748_v61  ;;  %v4312_v61 = vld [vmem:[#allocation39_spill] sm:$0xff] }
 0x33c   :  { %v1803_v16 = vpop.permute.xlu1 %1802  ;;  %2134 = vrot.lane.b32.xlu0 %v2124_v31, %s2750_s26 }
 0x33d   :  { %v1811_v58 = vadd.f32 %v1803_v16, %v1759_v47  ;;  %v4053_v41 = vadd.f32 %v1844_v12, %v1834_v11  ;;  %v1449_v47 = vadd.f32 %v4311_v62, %v1393_v53  ;;  %v2275_v16 = vstv %s2616_s15 }
 0x33e   :  { %2132 = vrot.lane.b32.xlu1 %v2123_v52, %s2750_s26  ;;  %v1899_v15 = vpop.permute.xlu0 %1898  ;;  %v2010_v52 = vmul.f32 %v4070_v6, %v3734_v17  ;;  %v2276_v44 = vmul.f32 %v2275_v16, %v4307_v13  ;;  %v2278_v8 = vmul.f32 %v2275_v16, %v4308_v14 }
 0x33f   :  { %v1861_v45 = vadd.f32 %v1857_v36, %v1811_v58  ;;  %v1910_v43 = vadd.f32 %v1899_v15, %v1858_v51  ;;  %v2225_v36 = vmul.f32 %v2223_v18, %v4309_v19 }
 0x340   :  { %v1825_v26 = vpop.permute.xlu1 %1824  ;;  %2180 = vrot.lane.b32.xlu0 %v2172_v23, %s2748_s20  ;;  %v2227_v23 = vmul.f32 %v2223_v18, %v4310_v0  ;;  %v4104_v18 = vstv %s2611_s2 }
 0x341   :  { %v4060_v27 = vadd.f32 %v1825_v26, %v1783_v60  ;;  %v2011_v26 = vmul.f32 %v4070_v6, %v3746_v21  ;;  %v2162_v38 = vmul.f32 %v4104_v18, %v4307_v13 }
 0x342   :  { %2136 = vrot.lane.b32.xlu1 %v2125_v30, %s2750_s26  ;;  %v1903_v48 = vpop.permute.xlu0 %1902 }
 0x343   :  { %v1912_v57 = vadd.f32 %v1903_v48, %v1860_v55  ;;  %v1501_v55 = vadd.f32 %v4312_v61, %v1449_v47  ;;  %v4313_v48 = vld [vmem:[#allocation46_spill] sm:$0xff]  ;;  %v4316_v47 = vld [vmem:[#allocation44_spill] sm:$0xff] }
 0x344   :  { %v4066_v20 = vpop.permute.xlu1 %1900  ;;  %2184 = vrot.lane.b32.xlu0 %v2174_v28, %s2748_s20 }
 0x345   :  { %v1551_v60 = vadd.f32 %v1547_v33, %v1501_v55  ;;  %v4318_v33 = vld [vmem:[#allocation36_spill] sm:$0xff] }
 0x346   :  { %2182 = vrot.lane.b32.xlu1 %v2173_v63, %s2748_s20  ;;  %v1951_v3 = vpop.permute.xlu0 %1950  ;;  %v4314_v63 = vld [vmem:[#allocation48_spill] sm:$0xff] }
 0x347   :  { %v1962_v22 = vadd.f32 %v1951_v3, %v1910_v43  ;;  %v1603_v28 = vadd.f32 %v4313_v48, %v1551_v60  ;;  %v4319_v60 = vld [vmem:[#allocation47_spill] sm:$0xff] }
 0x348   :  { %v1905_v50 = vpop.permute.xlu1 %1904  ;;  %2232 = vrot.lane.b32.xlu0 %v2224_v10, %s2749_s23 }
 0x349   :  { %v2012_v31 = vadd.f32 %v2008_v9, %v1962_v22  ;;  %v1913_v58 = vadd.f32 %v1905_v50, %v1861_v45  ;;  %v2277_v45 = vmul.f32 %v2275_v16, %v4309_v19  ;;  %v1655_v43 = vadd.f32 %v4314_v63, %v1603_v28  ;;  %v4315_v22 = vld [vmem:[#allocation43_spill] sm:$0xff] }
 0x34a   :  { %2186 = vrot.lane.b32.xlu1 %v2175_v59, %s2748_s20  ;;  %v1955_v12 = vpop.permute.xlu0 %1954  ;;  %v2326_v9 = vmul.f32 %v2325_v7, %v4315_v22  ;;  %v1701_v50 = vmul.f32 %v3986_v24, %v3636_v49  ;;  %v2377_v24 = vstv %s2621_s17 }
 0x34b   :  { %v1964_v11 = vadd.f32 %v1955_v12, %v1912_v57  ;;  %v2279_v57 = vmul.f32 %v2275_v16, %v4310_v0  ;;  %v4317_v16 = vld [vmem:[#allocation45_spill] sm:$0xff]  ;;  %v2380_v48 = vmul.f32 %v2377_v24, %v4316_v47 }
 0x34c   :  { %v4084_v46 = vpop.permute.xlu1 %1952  ;;  %2236 = vrot.lane.b32.xlu0 %v2226_v39, %s2749_s23  ;;  %v1705_v12 = vadd.f32 %v1701_v50, %v1655_v43  ;;  %v2327_v55 = vmul.f32 %v2325_v7, %v4317_v16  ;;  %v2379_v63 = vmul.f32 %v2377_v24, %v4317_v16  ;;  %v2009_v50 = vmul.f32 %v4070_v6, %v3738_v2 }
 0x34d   :  { %v2014_v35 = vadd.f32 %v2010_v52, %v1964_v11  ;;  %v2328_v11 = vmul.f32 %v2325_v7, %v4316_v47 }
 0x34e   :  { %2234 = vrot.lane.b32.xlu1 %v2225_v36, %s2749_s23  ;;  %v2053_v29 = vpop.permute.xlu0 %2052  ;;  %v1757_v52 = vadd.f32 %v3936_v4, %v1705_v12  ;;  %v2164_v36 = vmul.f32 %v4104_v18, %v4308_v14  ;;  %v2378_v4 = vmul.f32 %v2377_v24, %v4315_v22 }
 0x34f   :  { %v2064_v3 = vadd.f32 %v2053_v29, %v2012_v31 }
 0x350   :  { %v1957_v15 = vpop.permute.xlu1 %1956  ;;  %2284 = vrot.lane.b32.xlu0 %v2276_v44, %s2750_s26 }
 0x351   :  { %v1965_v56 = vadd.f32 %v1957_v15, %v1913_v58  ;;  %v1855_v58 = vmul.f32 %v4013_v34, %v4318_v33  ;;  %v2429_v34 = vstv %s2623_s3 }
 0x352   :  { %2238 = vrot.lane.b32.xlu1 %v2227_v23, %s2749_s23  ;;  %v2057_v30 = vpop.permute.xlu0 %2056 }
 0x353   :  { %v2015_v51 = vadd.f32 %v2011_v26, %v1965_v56  ;;  %v2066_v39 = vadd.f32 %v2057_v30, %v2014_v35  ;;  %v1809_v35 = vadd.f32 %v4033_v42, %v1757_v52  ;;  %v2329_v56 = vmul.f32 %v2325_v7, %v4319_v60 }
 0x354   :  { %v4100_v25 = vpop.permute.xlu1 %2054  ;;  %2288 = vrot.lane.b32.xlu0 %v2278_v8, %s2750_s26  ;;  %v2165_v42 = vmul.f32 %v4104_v18, %v4310_v0  ;;  %v2315_v7 = vstv %s2618_s18  ;;  %v2431_v52 = vmul.f32 %v2429_v34, %v4317_v16 }
 0x355   :  { %v1859_v26 = vadd.f32 %v1855_v58, %v1809_v35  ;;  %v2318_v2 = vmul.f32 %v2315_v7, %v4316_v47  ;;  %v2319_v58 = vmul.f32 %v2315_v7, %v4319_v60 }
 0x356   :  { %2286 = vrot.lane.b32.xlu1 %v2277_v45, %s2750_s26  ;;  %v2105_v10 = vpop.permute.xlu0 %2104 }
 0x357   :  { %v2116_v59 = vadd.f32 %v2105_v10, %v2064_v3  ;;  %v1911_v28 = vadd.f32 %v4066_v20, %v1859_v26 }
 0x358   :  { %v2059_v53 = vpop.permute.xlu1 %2058  ;;  %2334 = vrot.lane.b32.xlu0 %v2326_v9, %s2748_s20  ;;  %v2430_v9 = vmul.f32 %v2429_v34, %v4315_v22 }
 0x359   :  { %v2166_v31 = vadd.f32 %v2162_v38, %v2116_v59  ;;  %v2067_v15 = vadd.f32 %v2059_v53, %v2015_v51  ;;  %v1963_v43 = vadd.f32 %v4084_v46, %v1911_v28  ;;  %v2316_v59 = vmul.f32 %v2315_v7, %v4315_v22 }
 0x35a   :  { %2290 = vrot.lane.b32.xlu1 %v2279_v57, %s2750_s26  ;;  %v2109_v62 = vpop.permute.xlu0 %2108  ;;  %v2381_v53 = vmul.f32 %v2377_v24, %v4319_v60 }
 0x35b   :  { %v2118_v49 = vadd.f32 %v2109_v62, %v2066_v39  ;;  %v2013_v57 = vadd.f32 %v2009_v50, %v1963_v43 }
 0x35c   :  { %v2107_v61 = vpop.permute.xlu1 %2106  ;;  %2338 = vrot.lane.b32.xlu0 %v2328_v11, %s2748_s20 }
 0x35d   :  { %v2168_v29 = vadd.f32 %v2164_v36, %v2118_v49  ;;  %v2065_v62 = vadd.f32 %v4100_v25, %v2013_v57  ;;  %v2433_v25 = vmul.f32 %v2429_v34, %v4319_v60 }
 0x35e   :  { %2336 = vrot.lane.b32.xlu1 %v2327_v55, %s2748_s20  ;;  %v2207_v44 = vpop.permute.xlu0 %2206  ;;  %v2163_v55 = vmul.f32 %v4104_v18, %v4309_v19 }
 0x35f   :  { %v2218_v3 = vadd.f32 %v2207_v44, %v2166_v31  ;;  %v2432_v31 = vmul.f32 %v2429_v34, %v4316_v47  ;;  %v2117_v49 = vadd.f32 %v2107_v61, %v2065_v62 }
 0x360   :  { %v2111_v23 = vpop.permute.xlu1 %2110  ;;  %2386 = vrot.lane.b32.xlu0 %v2378_v4, %s2749_s23 }
 0x361   :  { %v2119_v30 = vadd.f32 %v2111_v23, %v2067_v15  ;;  %v2167_v44 = vadd.f32 %v2163_v55, %v2117_v49 }
 0x362   :  { %2340 = vrot.lane.b32.xlu1 %v2329_v56, %s2748_s20  ;;  %v2211_v8 = vpop.permute.xlu0 %2210  ;;  %s2603_s20 = sld [smem:[#allocation4 + $0x4d]] }
 0x363   :  { %v2169_v45 = vadd.f32 %v2165_v42, %v2119_v30  ;;  %v2220_v12 = vadd.f32 %v2211_v8, %v2168_v29  ;;  %v2317_v8 = vmul.f32 %v2315_v7, %v4317_v16  ;;  %v1846_v7 = vmul.f32 %v4026_v5, %v3695_v40 }
 0x364   :  { %v2209_v51 = vpop.permute.xlu1 %2208  ;;  %2390 = vrot.lane.b32.xlu0 %v2380_v48, %s2749_s23 }
 0x365   :  { %v2219_v23 = vadd.f32 %v2209_v51, %v2167_v44 }
 0x366   :  { %2388 = vrot.lane.b32.xlu1 %v2379_v63, %s2749_s23  ;;  %v2259_v10 = vpop.permute.xlu0 %2258 }
 0x367   :  { %v2270_v20 = vadd.f32 %v2259_v10, %v2218_v3 }
 0x368   :  { %v2213_v38 = vpop.permute.xlu1 %2212  ;;  %2438 = vrot.lane.b32.xlu0 %v2430_v9, %s2750_s26 }
 0x369   :  { %v2320_v46 = vadd.f32 %v2316_v59, %v2270_v20  ;;  %v2221_v35 = vadd.f32 %v2213_v38, %v2169_v45 }
 0x36a   :  { %2392 = vrot.lane.b32.xlu1 %v2381_v53, %s2749_s23  ;;  %v2263_v39 = vpop.permute.xlu0 %2262  ;;  %s2610_s23 = sld [smem:[#allocation4 + $0x54]] }
 0x36b   :  { %v2272_v11 = vadd.f32 %v2263_v39, %v2220_v12 }
 0x36c   :  { %v2261_v6 = vpop.permute.xlu1 %2260  ;;  %2442 = vrot.lane.b32.xlu0 %v2432_v31, %s2750_s26 }
 0x36d   :  { %v2322_v24 = vadd.f32 %v2318_v2, %v2272_v11  ;;  %v2271_v26 = vadd.f32 %v2261_v6, %v2219_v23 }
 0x36e   :  { %2440 = vrot.lane.b32.xlu1 %v2431_v52, %s2750_s26  ;;  %v2361_v36 = vpop.permute.xlu0 %2360 }
 0x36f   :  { %v2372_v30 = vadd.f32 %v2361_v36, %v2320_v46  ;;  %v2321_v48 = vadd.f32 %v2317_v8, %v2271_v26  ;;  %v1845_v46 = vmul.f32 %v4026_v5, %v4318_v33 }
 0x370   :  { %v2265_v29 = vpop.permute.xlu1 %2264 }
 0x371   :  { %v2273_v4 = vadd.f32 %v2265_v29, %v2221_v35  ;;  %v1849_v40 = vadd.f32 %v1845_v46, %v4060_v27 }
 0x372   :  { %2444 = vrot.lane.b32.xlu1 %v2433_v25, %s2750_s26  ;;  %v2365_v15 = vpop.permute.xlu0 %2364  ;;  %s2617_s26 = sld [smem:[#allocation4 + $0x5b]] }
 0x373   :  { %v2323_v61 = vadd.f32 %v2319_v58, %v2273_v4  ;;  %v2374_v28 = vadd.f32 %v2365_v15, %v2322_v24  ;;  %v4175_v24 = vstv %s2603_s20 }
 0x374   :  { %v2363_v56 = vpop.permute.xlu1 %2362  ;;  %v2000_v44 = vmul.f32 %v4175_v24, %v3734_v17  ;;  %v2001_v26 = vmul.f32 %v4175_v24, %v3746_v21 }
 0x375   :  { %v2373_v34 = vadd.f32 %v2363_v56, %v2321_v48 }
 0x376   :  { %v2413_v42 = vpop.permute.xlu0 %2412 }
 0x377   :  { %v2424_v19 = vadd.f32 %v2413_v42, %v2372_v30 }
 0x378   :  { %v2367_v18 = vpop.permute.xlu1 %2366 }
 0x379   :  { %2458 = vrot.lane.b32.xlu0 %v2424_v19, %s2751_s21  ;;  %v2375_v10 = vadd.f32 %v2367_v18, %v2323_v61 }
 0x37a   :  { %v2417_v45 = vpop.permute.xlu0 %2416 }
 0x37b   :  { %v2426_v63 = vadd.f32 %v2417_v45, %v2374_v28  ;;  %v4187_v28 = vstv %s2610_s23 }
 0x37c   :  { %v2415_v43 = vpop.permute.xlu1 %2414 }
 0x37d   :  { %v2425_v3 = vadd.f32 %v2415_v43, %v2373_v34  ;;  %2462 = vrot.lane.b32.xlu0 %v2426_v63, %s2751_s21 }
 0x37e   :  { %v1827_v51 = vpop.permute.xlu0 %1826 }
 0x37f   :  { %2460 = vrot.lane.b32.xlu1 %v2425_v3, %s2751_s21  ;;  %v1836_v9 = vadd.f32 %v1827_v51, %v3981_v1  ;;  %v1847_v1 = vmul.f32 %v4026_v5, %v3712_v37  ;;  %v1998_v5 = vmul.f32 %v4175_v24, %v3724_v32  ;;  %v2152_v3 = vmul.f32 %v4187_v28, %v4307_v13 }
 0x380   :  { %v2419_v50 = vpop.permute.xlu1 %2418 }
 0x381   :  { %v2427_v20 = vadd.f32 %v2419_v50, %v2375_v10  ;;  %v1850_v59 = vadd.f32 %v1846_v7, %v1836_v9  ;;  %v2154_v50 = vmul.f32 %v4187_v28, %v4308_v14  ;;  %v2305_v14 = vstv %s2617_s26 }
 0x382   :  { %v1873_v38 = vpop.permute.xlu0 %1872 }
 0x383   :  { %2464 = vrot.lane.b32.xlu1 %v2427_v20, %s2751_s21  ;;  %v1884_v53 = vadd.f32 %v1873_v38, %v4053_v41 }
 0x384   :  { %v1829_v57 = vpop.permute.xlu1 %1828 }
 0x385   :  { %v1837_v12 = vadd.f32 %v1829_v57, %v4017_v54 }
 0x386   :  { %v1877_v39 = vpop.permute.xlu0 %1876 }
 0x387   :  { %v1886_v31 = vadd.f32 %v1877_v39, %v1850_v59  ;;  %v1851_v62 = vadd.f32 %v1847_v1, %v1837_v12  ;;  %v2155_v1 = vmul.f32 %v4187_v28, %v4310_v0 }
 0x388   :  { %v1875_v11 = vpop.permute.xlu1 %1874 }
 0x389   :  { %v4171_v2 = vadd.f32 %v1875_v11, %v1849_v40 }
 0x38a   :  { %v1925_v6 = vpop.permute.xlu0 %1924 }
 0x38b   :  { %v1936_v33 = vadd.f32 %v1925_v6, %v1884_v53 }
 0x38c   :  { %v1879_v41 = vpop.permute.xlu1 %1878 }
 0x38d   :  { %v1887_v52 = vadd.f32 %v1879_v41, %v1851_v62 }
 0x38e   :  { %v1929_v49 = vpop.permute.xlu0 %1928 }
 0x38f   :  { %v1938_v55 = vadd.f32 %v1929_v49, %v1886_v31 }
 0x390   :  { %v4173_v54 = vpop.permute.xlu1 %1926 }
 0x392   :  { %v1977_v36 = vpop.permute.xlu0 %1976 }
 0x393   :  { %v1988_v37 = vadd.f32 %v1977_v36, %v1936_v33 }
 0x394   :  { %v1931_v27 = vpop.permute.xlu1 %1930 }
 0x395   :  { %v2002_v35 = vadd.f32 %v1998_v5, %v1988_v37  ;;  %v1939_v23 = vadd.f32 %v1931_v27, %v1887_v52  ;;  %v2306_v37 = vmul.f32 %v2305_v14, %v4315_v22  ;;  %v1937_v22 = vadd.f32 %v4173_v54, %v4171_v2 }
 0x396   :  { %v1981_v29 = vpop.permute.xlu0 %1980 }
 0x397   :  { %v1990_v25 = vadd.f32 %v1981_v29, %v1938_v55  ;;  %v2308_v29 = vmul.f32 %v2305_v14, %v4316_v47 }
 0x398   :  { %v4181_v4 = vpop.permute.xlu1 %1978 }
 0x399   :  { %v2004_v58 = vadd.f32 %v2000_v44, %v1990_v25 }
 0x39a   :  { %v2027_v15 = vpop.permute.xlu0 %2026 }
 0x39b   :  { %v2038_v48 = vadd.f32 %v2027_v15, %v2002_v35 }
 0x39c   :  { %v1983_v61 = vpop.permute.xlu1 %1982 }
 0x39d   :  { %v1991_v56 = vadd.f32 %v1983_v61, %v1939_v23 }
 0x39e   :  { %v2031_v30 = vpop.permute.xlu0 %2030 }
 0x39f   :  { %v2005_v32 = vadd.f32 %v2001_v26, %v1991_v56  ;;  %v2040_v63 = vadd.f32 %v2031_v30, %v2004_v58  ;;  %v2309_v26 = vmul.f32 %v2305_v14, %v4319_v60 }
 0x3a0   :  { %v4185_v42 = vpop.permute.xlu1 %2028 }
 0x3a2   :  { %v2079_v8 = vpop.permute.xlu0 %2078 }
 0x3a3   :  { %v2090_v45 = vadd.f32 %v2079_v8, %v2038_v48 }
 0x3a4   :  { %v2033_v19 = vpop.permute.xlu1 %2032 }
 0x3a5   :  { %v2041_v59 = vadd.f32 %v2033_v19, %v2005_v32  ;;  %v1989_v19 = vadd.f32 %v4181_v4, %v1937_v22 }
 0x3a6   :  { %v2083_v18 = vpop.permute.xlu0 %2082 }
 0x3a7   :  { %v2092_v51 = vadd.f32 %v2083_v18, %v2040_v63  ;;  %v2653_v18 = vld [vmem:[#allocation2 + $0x3c] sm:$0xff] }
 0x3a8   :  { %v2081_v17 = vpop.permute.xlu1 %2080  ;;  %v1999_v47 = vmul.f32 %v2653_v18, %v4175_v24 }
 0x3aa   :  { %v2131_v34 = vpop.permute.xlu0 %2130 }
 0x3ab   :  { %v2142_v43 = vadd.f32 %v2131_v34, %v2090_v45  ;;  %v2003_v34 = vadd.f32 %v1999_v47, %v1989_v19 }
 0x3ac   :  { %v2085_v21 = vpop.permute.xlu1 %2084 }
 0x3ad   :  { %v2156_v10 = vadd.f32 %v2152_v3, %v2142_v43  ;;  %v2093_v57 = vadd.f32 %v2085_v21, %v2041_v59  ;;  %v2039_v63 = vadd.f32 %v4185_v42, %v2003_v34  ;;  %v4321_v59 = vld [vmem:[#allocation18_spill] sm:$0xff]  ;;  %v4322_v42 = vld [vmem:[#allocation24_spill] sm:$0xff] }
 0x3ae   :  { %v2135_v9 = vpop.permute.xlu0 %2134 }
 0x3af   :  { %v2144_v7 = vadd.f32 %v2135_v9, %v2092_v51  ;;  %v2091_v43 = vadd.f32 %v2081_v17, %v2039_v63  ;;  %v2654_v51 = vld [vmem:[#allocation2 + $0x3d] sm:$0xff] }
 0x3b0   :  { %v2133_v20 = vpop.permute.xlu1 %2132 }
 0x3b1   :  { %v2158_v38 = vadd.f32 %v2154_v50, %v2144_v7  ;;  %v2143_v60 = vadd.f32 %v2133_v20, %v2091_v43  ;;  %v4320_v50 = vld [vmem:[#allocation16_spill] sm:$0xff]  ;;  %v4336_v43 = vld [vmem:[#allocation27_spill] sm:$0xff] }
 0x3b2   :  { %v2181_v53 = vpop.permute.xlu0 %2180  ;;  %v1248_v24 = vadd.f32 %v4321_v59, %v4320_v50 }
 0x3b3   :  { %v2192_v6 = vadd.f32 %v2181_v53, %v2156_v10  ;;  %v2153_v10 = vmul.f32 %v2654_v51, %v4187_v28 }
 0x3b4   :  { %v2137_v12 = vpop.permute.xlu1 %2136  ;;  %v1300_v17 = vadd.f32 %v4322_v42, %v1248_v24 }
 0x3b5   :  { %v2145_v46 = vadd.f32 %v2137_v12, %v2093_v57  ;;  %v2157_v9 = vadd.f32 %v2153_v10, %v2143_v60  ;;  %v4337_v60 = vld [vmem:[#allocation34_spill] sm:$0xff] }
 0x3b6   :  { %v2185_v39 = vpop.permute.xlu0 %2184 }
 0x3b7   :  { %v2159_v13 = vadd.f32 %v2155_v1, %v2145_v46  ;;  %v2194_v33 = vadd.f32 %v2185_v39, %v2158_v38  ;;  %v2307_v46 = vmul.f32 %v2305_v14, %v4317_v16  ;;  %v4323_v1 = vld [vmem:[#allocation17_spill] sm:$0xff]  ;;  %v4324_v39 = vld [vmem:[#allocation20_spill] sm:$0xff]  ;;  %v4330_v14 = vld [vmem:[#allocation26_spill] sm:$0xff] }
 0x3b8   :  { %v2183_v40 = vpop.permute.xlu1 %2182  ;;  %v1250_v28 = vadd.f32 %v4324_v39, %v4323_v1 }
 0x3b9   :  { %v2193_v7 = vadd.f32 %v2183_v40, %v2157_v9 }
 0x3ba   :  { %v2233_v31 = vpop.permute.xlu0 %2232 }
 0x3bb   :  { %v2244_v52 = vadd.f32 %v2233_v31, %v2192_v6  ;;  %v4326_v6 = vld [vmem:[#allocation19_spill] sm:$0xff] }
 0x3bc   :  { %v2187_v62 = vpop.permute.xlu1 %2186 }
 0x3bd   :  { %v2195_v44 = vadd.f32 %v2187_v62, %v2159_v13  ;;  %v4325_v13 = vld [vmem:[#allocation28_spill] sm:$0xff] }
 0x3be   :  { %v2237_v11 = vpop.permute.xlu0 %2236  ;;  %v1352_v31 = vadd.f32 %v4325_v13, %v1300_v17 }
 0x3bf   :  { %v2246_v27 = vadd.f32 %v2237_v11, %v2194_v33 }
 0x3c0   :  { %v2235_v41 = vpop.permute.xlu1 %2234 }
 0x3c1   :  { %v2245_v4 = vadd.f32 %v2235_v41, %v2193_v7  ;;  %v4327_v41 = vld [vmem:[#allocation22_spill] sm:$0xff] }
 0x3c2   :  { %v2285_v49 = vpop.permute.xlu0 %2284 }
 0x3c3   :  { %v2296_v36 = vadd.f32 %v2285_v49, %v2244_v52  ;;  %v1249_v52 = vadd.f32 %v4327_v41, %v4326_v6  ;;  %v4328_v49 = vld [vmem:[#allocation25_spill] sm:$0xff] }
 0x3c4   :  { %v2239_v5 = vpop.permute.xlu1 %2238  ;;  %v1302_v33 = vadd.f32 %v4328_v49, %v1250_v28 }
 0x3c5   :  { %v2310_v55 = vadd.f32 %v2306_v37, %v2296_v36  ;;  %v2247_v23 = vadd.f32 %v2239_v5, %v2195_v44  ;;  %v4329_v37 = vld [vmem:[#allocation31_spill] sm:$0xff]  ;;  %v2479_v44 = vstv %s4248_s1  ;;  %s2752_s1 = smov [#allocation11]  }
 0x3c6   :  { %v2289_v0 = vpop.permute.xlu0 %2288  ;;  %v1372_v5 = vadd.f32 %v4329_v37, %v1352_v31  ;;  %s2513_s22 = sshll.u32 %s2752_s1, 4  ;;  %s2514_s22 = int_to_ptr.vmem [resolvable:$true] %s2513_s22 }
 0x3c7   :  { %v2298_v35 = vadd.f32 %v2289_v0, %v2246_v27  ;;  %v1301_v0 = vadd.f32 %v4330_v14, %v1249_v52  ;;  %s2711_s24 = scalar_lea.vmem %s2514_s22, 512  ;;  %p2716_p8 = scmp.lt.s32.totalorder %s2514_s22, %s2514_s22 }
 0x3c8   :  { %v2287_v25 = vpop.permute.xlu1 %2286  ;;  %p2712_p7 = scmp.ne.s32.totalorder %s2514_s22, %s2711_s24  ;;  %p2717_p9 = scmp.lt.s32.totalorder %s2711_s24, %s2711_s24 }
 0x3c9   :  { %v2312_v58 = vadd.f32 %v2308_v29, %v2298_v35  ;;  %v2297_v38 = vadd.f32 %v2287_v25, %v2245_v4  ;;  %v4331_v35 = vld [vmem:[#allocation30_spill] sm:$0xff]  ;;  %v4338_v4 = vld [vmem:[#allocation32_spill] sm:$0xff] }
 0x3ca   :  { %v2335_v15 = vpop.permute.xlu0 %2334  ;;  %v1354_v29 = vadd.f32 %v4331_v35, %v1302_v33  ;;  %p2718_p10 = por %p2717_p9, %p2716_p8 }
 0x3cb   :  { %v2346_v53 = vadd.f32 %v2335_v15, %v2310_v55  ;;  %v2311_v62 = vadd.f32 %v2307_v46, %v2297_v38 }
 0x3cc   :  { %v2291_v61 = vpop.permute.xlu1 %2290  ;;  %p2719_p11 = pnand %p2718_p10, %p2712_p7 }
 0x3cd   :  { %v2299_v56 = vadd.f32 %v2291_v61, %v2247_v23  ;;  %v4332_v61 = vld [vmem:[#allocation21_spill] sm:$0xff] }
 0x3ce   :  { %v2339_v30 = vpop.permute.xlu0 %2338 }
 0x3cf   :  { %v2313_v32 = vadd.f32 %v2309_v26, %v2299_v56  ;;  %v2348_v40 = vadd.f32 %v2339_v30, %v2312_v58  ;;  %v4333_v56 = vld [vmem:[#allocation23_spill] sm:$0xff]  ;;  %v4334_v30 = vld [vmem:[#allocation29_spill] sm:$0xff] }
 0x3d0   :  { %v2337_v8 = vpop.permute.xlu1 %2336  ;;  %v1251_v26 = vadd.f32 %v4333_v56, %v4332_v61  ;;  %v1353_v22 = vadd.f32 %v4334_v30, %v1301_v0 }
 0x3d1   :  { %v2347_v27 = vadd.f32 %v2337_v8, %v2311_v62  ;;  %v4335_v8 = vld [vmem:[#allocation33_spill] sm:$0xff] }
 0x3d2   :  { %v2387_v45 = vpop.permute.xlu0 %2386  ;;  %v1374_v19 = vadd.f32 %v4335_v8, %v1354_v29  ;;  %v1373_v51 = vadd.f32 %v4337_v60, %v1353_v22 }
 0x3d3   :  { %v2398_v20 = vadd.f32 %v2387_v45, %v2346_v53 }
 0x3d4   :  { %v2341_v48 = vpop.permute.xlu1 %2340 }
 0x3d5   :  { %v2349_v47 = vadd.f32 %v2341_v48, %v2313_v32 }
 0x3d6   :  { %v2391_v21 = vpop.permute.xlu0 %2390 }
 0x3d7   :  { %v2400_v55 = vadd.f32 %v2391_v21, %v2348_v40  ;;  %v1303_v21 = vadd.f32 %v4336_v43, %v1251_v26 }
 0x3d8   :  { %v2389_v3 = vpop.permute.xlu1 %2388 }
 0x3d9   :  { %v2399_v58 = vadd.f32 %v2389_v3, %v2347_v27  ;;  %v1355_v50 = vadd.f32 %v4338_v4, %v1303_v21 }
 0x3da   :  { %v2439_v54 = vpop.permute.xlu0 %2438 }
 0x3db   :  { %v2450_v11 = vadd.f32 %v2439_v54, %v2398_v20 }
 0x3dc   :  { %v2393_v2 = vpop.permute.xlu1 %2392 }
 0x3dd   :  { %v2401_v3 = vadd.f32 %v2393_v2, %v2349_v47 }
 0x3de   :  { %v2443_v12 = vpop.permute.xlu0 %2442 }
 0x3df   :  { %v2452_v15 = vadd.f32 %v2443_v12, %v2400_v55  ;;  %v4339_v12 = vld [vmem:[#allocation35_spill] sm:$0xff] }
 0x3e0   :  { %v2441_v57 = vpop.permute.xlu1 %2440  ;;  %v1375_v32 = vadd.f32 %v4339_v12, %v1355_v50 }
 0x3e1   :  { %v2451_v45 = vadd.f32 %v2441_v57, %v2399_v58 }
 0x3e4   :  { %v2445_v25 = vpop.permute.xlu1 %2444 }
 0x3e5   :  { %v2453_v59 = vadd.f32 %v2445_v25, %v2401_v3 }
 0x3eb   :  { %v2459_v36 = vpop.permute.xlu0 %2458 }
 0x3ec   :  { %v2470_v16 = vadd.f32 %v2459_v36, %v2450_v11 }
 0x3ee   :  { %v2474_v23 = vadd.f32 %v2470_v16, %v1372_v5 }
 0x3ef   :  { %v2463_v18 = vpop.permute.xlu0 %2462 }
 0x3f0   :  { %v2480_v34 = vadd.f32 %v2479_v44, %v2474_v23  ;;  %v2472_v63 = vadd.f32 %v2463_v18, %v2452_v15 }
 0x3f1   :  { %v2461_v10 = vpop.permute.xlu1 %2460 }
 0x3f2   :  { %v2484_v9 = vsub.f32 0.0, %v2480_v34  ;;  %v2471_v54 = vadd.f32 %v2461_v10, %v2451_v45  ;;  %v2476_v7 = vadd.f32 %v2472_v63, %v1374_v19 }
 0x3f4   :  { %v2488_v24 = vmul.f32 1.442695, %v2484_v9  ;;  %v2475_v38 = vadd.f32 %v2471_v54, %v1373_v51  ;;  %v2482_v53 = vadd.f32 %v2479_v44, %v2476_v7 }
 0x3f5   :  { %v2465_v48 = vpop.permute.xlu1 %2464 }
 0x3f6   :  { %2636 = vpow2.f32 %v2488_v24  ;;  %v2481_v57 = vadd.f32 %v2479_v44, %v2475_v38  ;;  %v2486_v42 = vsub.f32 0.0, %v2482_v53  ;;  %v2473_v17 = vadd.f32 %v2465_v48, %v2453_v59 }
 0x3f8   :  { %v2485_v46 = vsub.f32 0.0, %v2481_v57  ;;  %v2492_v20 = vmul.f32 1.442695, %v2486_v42  ;;  %v2477_v1 = vadd.f32 %v2473_v17, %v1375_v32 }
 0x3fa   :  { %v2490_v2 = vmul.f32 1.442695, %v2485_v46  ;;  %2638 = vpow2.f32 %v2492_v20  ;;  %v2483_v39 = vadd.f32 %v2479_v44, %v2477_v1 }
 0x3fc   :  { %2640 = vpow2.f32 %v2490_v2  ;;  %v2487_v28 = vsub.f32 0.0, %v2483_v39 }
 0x3fe   :  { %v2494_v13 = vmul.f32 1.442695, %v2487_v28 }
 0x400   :  { %v2637_v31 = vpop.eup %2636  ;;  %2642 = vpow2.f32 %v2494_v13 }
 0x401   :  { %v2496_v62 = vadd.f32 1.0, %v2637_v31 }
 0x403   :  { %2644 = vrcp.f32 %v2496_v62 }
 0x404   :  { %v2639_v40 = vpop.eup %2638 }
 0x405   :  { %v2498_v11 = vadd.f32 1.0, %v2639_v40 }
 0x406   :  { %v2641_v6 = vpop.eup %2640 }
 0x407   :  { %v2497_v41 = vadd.f32 1.0, %v2641_v6  ;;  %2646 = vrcp.f32 %v2498_v11 }
 0x409   :  { %2648 = vrcp.f32 %v2497_v41 }
 0x40a   :  { %v2643_v52 = vpop.eup %2642 }
 0x40b   :  { %v2499_v49 = vadd.f32 1.0, %v2643_v52 }
 0x40d   :  { %v2645_v33 = vpop.eup %2644  ;;  %2650 = vrcp.f32 %v2499_v49 }
 0x40e   :  { %2504 = vst.msk [vmem:[#allocation11] sm:$0xff] %vm92_vm0, %v2645_v33 }
 0x411   :  { %v2647_v36 = vpop.eup %2646 }
 0x412   :  { %2506 = vst.msk [vmem:[#allocation11 + $0x10] sm:$0xff] %vm92_vm0, %v2647_v36 }
 0x413   :  { %v2649_v37 = vpop.eup %2648 }
 0x414   :  { %2505 = vst.msk [vmem:[#allocation11 + $0x8] sm:$0xff] %vm92_vm0, %v2649_v37 }
 0x417   :  { %v2651_v5 = vpop.eup %2650 }
 0x418   :  { %2507 = vst.msk [vmem:[#allocation11 + $0x18] sm:$0xff] %vm92_vm0, %v2651_v5 }
 0x419   :  { %2722 = shalt.err (!%p2719_p11)
}
 0x41a   :  { %s2723_s27 = scalar_lea.hbm %s4251_s4, 512 }
 0x41b   :  { %p2724_p12 = scmp.ne.s32.totalorder %s4251_s4, %s2723_s27  ;;  %p2727_p13 = scmp.lt.u32.totalorder %s2723_s27, %s4251_s4 }
 0x41d   :  { %p2729_p0 = pnand %p2727_p13, %p2724_p12 }
 0x41f   :  { %2732 = shalt.err (!%p2729_p0)
}
 0x420   :  { %2519 = dma.vmem_to_hbm [thread:$0]  %s2514_s22, 512, %s4251_s4, [#allocation6], %s2743_s29, %s2743_s29, %s2744_s30  }
 0x421   :  { %2739 = dma.done.wait [#allocation6], 512  }
 0x422   :  { %2740 = vsyncadd [#allocation6], 4294966784 }
 0x423   :  { %2523 = vsyncpa [#allocation5], 1 }
 0x424   :  { %2524 = vsyncpa [#allocation10], 1 }
 0x425   :  { %2525 = vsyncpa [#allocation6], 1 }
 0x426   :  { %2526 = vsyncpa [#allocation7], 1 }

</bundles_post_ra>
